<compile_context>
chip_gen: v5e
topology: v5e:2x2
jax: 0.10.0
libtpu: 0.0.40
codegen_flags: <defaults>
</compile_context>

<pallas_src>
import math
from functools import partial

import jax
import jax.numpy as jnp
from jax.experimental import pallas as pl
from jax.experimental.pallas import tpu as pltpu


# --------------------------------------------------------------------------- #
# tiling helper                                                                #
# --------------------------------------------------------------------------- #
def _pick_tile(dim, target, align):
    """Largest tile <= target that divides dim and is a multiple of align
    (or the full dim when small / nothing divides)."""
    if dim <= target:
        return dim
    t = (target // align) * align
    while t >= align:
        if dim % t == 0:
            return t
        t -= align
    return dim


# --------------------------------------------------------------------------- #
# tiled linear (bf16 MXU inputs cast in-kernel, f32 accumulation)              #
# --------------------------------------------------------------------------- #
def _linear_kernel_f32(x_ref, w_ref, b_ref, o_ref, *, relu):
    # f32 output: accumulate directly into the resident output block.
    k = pl.program_id(2)

    @pl.when(k == 0)
    def _():
        o_ref[...] = jnp.zeros_like(o_ref)

    o_ref[...] += jnp.dot(x_ref[...].astype(jnp.bfloat16),
                          w_ref[...].astype(jnp.bfloat16),
                          preferred_element_type=jnp.float32)

    @pl.when(k == pl.num_programs(2) - 1)
    def _():
        y = o_ref[...] + b_ref[...]
        if relu:
            y = jnp.maximum(y, 0.0)
        o_ref[...] = y


def _linear_kernel_cast(x_ref, w_ref, b_ref, o_ref, acc_ref, *, relu):
    # non-f32 output: keep an f32 VMEM accumulator, cast on the last k step.
    k = pl.program_id(2)

    @pl.when(k == 0)
    def _():
        acc_ref[...] = jnp.zeros_like(acc_ref)

    acc_ref[...] += jnp.dot(x_ref[...].astype(jnp.bfloat16),
                            w_ref[...].astype(jnp.bfloat16),
                            preferred_element_type=jnp.float32)

    @pl.when(k == pl.num_programs(2) - 1)
    def _():
        y = acc_ref[...] + b_ref[...]
        if relu:
            y = jnp.maximum(y, 0.0)
        o_ref[...] = y.astype(o_ref.dtype)


def linear(x, w, b, relu=False, out_dtype=jnp.float32):
    """y = x @ w + b.  x:[M,K] w:[K,N] b:[N].  Tiled / K-pipelined bf16 matmul."""
    M, K = x.shape
    N = w.shape[1]
    tm = _pick_tile(M, 256, 16)        # 16-aligned for bf16 sublane packing
    tn = _pick_tile(N, 512, 128)
    tk = _pick_tile(K, 512, 128)
    grid = (M // tm, N // tn, K // tk)
    in_specs = [
        pl.BlockSpec((tm, tk), lambda i, j, k: (i, k)),
        pl.BlockSpec((tk, tn), lambda i, j, k: (k, j)),
        pl.BlockSpec((1, tn), lambda i, j, k: (0, j)),
    ]
    out_spec = pl.BlockSpec((tm, tn), lambda i, j, k: (i, j))
    cp = pltpu.CompilerParams(
        dimension_semantics=("parallel", "parallel", "arbitrary"))
    b2 = b.reshape(1, N).astype(jnp.float32)

    if jnp.dtype(out_dtype) == jnp.dtype(jnp.float32):
        return pl.pallas_call(
            partial(_linear_kernel_f32, relu=relu),
            out_shape=jax.ShapeDtypeStruct((M, N), jnp.float32),
            grid=grid, in_specs=in_specs, out_specs=out_spec,
            compiler_params=cp,
        )(x, w, b2)

    return pl.pallas_call(
        partial(_linear_kernel_cast, relu=relu),
        out_shape=jax.ShapeDtypeStruct((M, N), out_dtype),
        grid=grid, in_specs=in_specs, out_specs=out_spec,
        scratch_shapes=[pltpu.VMEM((tm, tn), jnp.float32)],
        compiler_params=cp,
    )(x, w, b2)


# --------------------------------------------------------------------------- #
# fused FFN: relu(x@W1+b1)@W2 + b2 + residual, then LayerNorm                  #
# x streamed ONCE (f32); bf16 cast happens in-kernel under the MXU work.       #
# --------------------------------------------------------------------------- #
def _ffn_ln_kernel(x_ref, w1_ref, b1_ref, w2_ref, b2_ref, g_ref, bln_ref,
                   o_ref, acc_ref):
    k = pl.program_id(1)

    @pl.when(k == 0)
    def _():
        acc_ref[...] = jnp.zeros_like(acc_ref)

    h = jnp.dot(x_ref[...].astype(jnp.bfloat16),
                w1_ref[...].astype(jnp.bfloat16),
                preferred_element_type=jnp.float32)
    h = jnp.maximum(h + b1_ref[...], 0.0).astype(jnp.bfloat16)
    acc_ref[...] += jnp.dot(h, w2_ref[...].astype(jnp.bfloat16),
                            preferred_element_type=jnp.float32)

    @pl.when(k == pl.num_programs(1) - 1)
    def _():
        y = acc_ref[...] + b2_ref[...] + x_ref[...]        # residual from same stream
        mu = jnp.mean(y, axis=-1, keepdims=True)
        var = jnp.mean((y - mu) ** 2, axis=-1, keepdims=True)
        yn = (y - mu) * jax.lax.rsqrt(var + 1e-5)
        o_ref[...] = (yn * g_ref[...] + bln_ref[...]).astype(o_ref.dtype)


def ffn_layernorm(x, w1, b1, w2, b2, gamma, beta):
    """LayerNorm(relu(x@W1+b1)@W2 + b2 + x); [M, ff] intermediate stays in VMEM."""
    M, D = x.shape
    FF = w1.shape[1]
    tm = _pick_tile(M, 256, 16)
    tf = _pick_tile(FF, 512, 128)
    grid = (M // tm, FF // tf)
    return pl.pallas_call(
        _ffn_ln_kernel,
        out_shape=jax.ShapeDtypeStruct((M, D), jnp.float32),
        grid=grid,
        in_specs=[
            pl.BlockSpec((tm, D), lambda i, k: (i, 0)),
            pl.BlockSpec((D, tf), lambda i, k: (0, k)),
            pl.BlockSpec((1, tf), lambda i, k: (0, k)),
            pl.BlockSpec((tf, D), lambda i, k: (k, 0)),
            pl.BlockSpec((1, D), lambda i, k: (0, 0)),
            pl.BlockSpec((1, D), lambda i, k: (0, 0)),
            pl.BlockSpec((1, D), lambda i, k: (0, 0)),
        ],
        out_specs=pl.BlockSpec((tm, D), lambda i, k: (i, 0)),
        scratch_shapes=[pltpu.VMEM((tm, D), jnp.float32)],
        compiler_params=pltpu.CompilerParams(
            dimension_semantics=("parallel", "arbitrary")),
    )(x, w1, b1.reshape(1, FF), w2, b2.reshape(1, D),
      gamma.reshape(1, D), beta.reshape(1, D))


# --------------------------------------------------------------------------- #
# "adatrans" relative multi-head attention + residual + LayerNorm              #
# grid = (B, L//tq): query-tiled, full-[L] keys/values resident per batch.     #
#                                                                              #
# Relative terms via exact trig identities (no [L,L,Dh] tensors):              #
#   AC[i,j] = (q_i + r_r) . k_j                                                #
#   BD[i,j] = (q_i + r_w) . pos[j-i]  = rope_i(q_i+r_w) . [sin_j | cos_j]      #
#   E [i,j] = k_j . pos[i-j]          = [sin_i | cos_i] . rope_j(k_j)          #
# with rope_i(z) = [z_s*cos_i + z_c*sin_i | z_c*cos_i - z_s*sin_i].            #
# All three are fused into ONE dot per head by concatenating the operands.     #
# --------------------------------------------------------------------------- #
def _attn_ln_kernel(qv_ref, x_ref, rr_ref, rw_ref, sin_ref, cos_ref,
                    m_ref, g_ref, b_ref, o_ref, att_scr, *, n_head):
    L = x_ref.shape[1]
    D = x_ref.shape[2]
    Dh = D // n_head
    half = Dh // 2
    tq = o_ref.shape[1]
    q0 = pl.multiple_of(pl.program_id(1) * tq, 8)

    s_all = sin_ref[...]                        # [L, half] f32
    c_all = cos_ref[...]
    s_q = sin_ref[pl.ds(q0, tq), :]             # [tq, half]
    c_q = cos_ref[pl.ds(q0, tq), :]
    mrow = m_ref[0]                             # [1, L] key mask (1 = valid)
    qtile = qv_ref[0, pl.ds(q0, tq), :]         # [tq, 2D] bf16 (q lanes + unused v lanes)
    res = x_ref[0, pl.ds(q0, tq), :]            # [tq, D]  f32 residual rows
    dn_t = (((1,), (1,)), ((), ()))             # A @ B.T

    for h in range(n_head):
        lo = h * Dh
        qh = qtile[:, lo:lo + Dh].astype(jnp.float32)        # [tq, Dh]
        kh = x_ref[0, :, lo:lo + Dh]                         # [L, Dh] f32 (keys = x)
        vh = qv_ref[0, :, D + lo:D + lo + Dh]                # [L, Dh] bf16
        rr = rr_ref[:, lo:lo + Dh]                           # [1, Dh]
        rw = rw_ref[:, lo:lo + Dh]

        # query-side operand: [ (q+r_r) | a_q | b_q | sin_i | cos_i ]   [tq, 3Dh]
        qr = qh + rr
        qw = qh + rw
        u, w_ = qw[:, :half], qw[:, half:]
        a_q = u * c_q + w_ * s_q
        b_q = w_ * c_q - u * s_q
        left = jnp.concatenate([qr, a_q, b_q, s_q, c_q],
                               axis=-1).astype(jnp.bfloat16)

        # key-side operand:   [   k    | sin_j | cos_j | a_k | b_k ]    [L, 3Dh]
        ku, kw = kh[:, :half], kh[:, half:]
        a_k = ku * c_all + kw * s_all
        b_k = kw * c_all - ku * s_all
        right = jnp.concatenate([kh, s_all, c_all, a_k, b_k],
                                axis=-1).astype(jnp.bfloat16)

        scores = jax.lax.dot_general(left, right, dn_t,
                                     preferred_element_type=jnp.float32)  # [tq, L]
        scores = jnp.where(mrow > 0.5, scores, -1e30)     # scale=False -> no division
        scores = scores - jnp.max(scores, axis=-1, keepdims=True)
        p = jnp.exp(scores)
        p = p * pl.reciprocal(jnp.sum(p, axis=-1, keepdims=True))  # exact reciprocal
        att_scr[:, lo:lo + Dh] = jnp.dot(p.astype(jnp.bfloat16), vh,
                                         preferred_element_type=jnp.float32)

    y = att_scr[...] + res                      # residual add (f32)
    mu = jnp.mean(y, axis=-1, keepdims=True)
    var = jnp.mean((y - mu) ** 2, axis=-1, keepdims=True)
    yn = (y - mu) * jax.lax.rsqrt(var + 1e-5)
    o_ref[0] = (yn * g_ref[...] + b_ref[...]).astype(o_ref.dtype)


def rel_attention_layernorm(qv, x, rr, rw, sinT, cosT, mask_f, gamma, beta,
                            n_head):
    B, L, D = x.shape
    Dh = D // n_head
    half = Dh // 2
    tq = _pick_tile(L, 256, 8)
    nq = L // tq

    spec_qv = pl.BlockSpec((1, L, 2 * D), lambda b, qi: (b, 0, 0))
    spec_x = pl.BlockSpec((1, L, D), lambda b, qi: (b, 0, 0))
    spec_1d = pl.BlockSpec((1, D), lambda b, qi: (0, 0))
    spec_lh = pl.BlockSpec((L, half), lambda b, qi: (0, 0))
    spec_msk = pl.BlockSpec((1, 1, L), lambda b, qi: (b, 0, 0))
    spec_out = pl.BlockSpec((1, tq, D), lambda b, qi: (b, qi, 0))

    # rough per-step VMEM working set (double-buffered streams + transients)
    in_bytes = L * D * 4 + L * 2 * D * 2 + 2 * L * half * 4 + L * 4 + 4 * D * 4
    out_bytes = tq * D * 4
    transients = 8 * tq * L * 4 + 4 * (L + tq) * 3 * Dh * 4
    est = 2 * (in_bytes + out_bytes) + tq * D * 4 + transients

    ckw = dict(dimension_semantics=("parallel", "parallel"))
    try:
        cap = int(pltpu.get_tpu_info().vmem_capacity_bytes)
    except Exception:
        cap = 64 * 1024 * 1024          # v7x floor: never assume more than 64 MiB
    if est > 12 * 1024 * 1024:          # below v5e's 16 MiB scoped default
        ckw["vmem_limit_bytes"] = int(min(est + (8 << 20), cap - (8 << 20)))

    return pl.pallas_call(
        partial(_attn_ln_kernel, n_head=n_head),
        out_shape=jax.ShapeDtypeStruct((B, L, D), jnp.float32),
        grid=(B, nq),
        in_specs=[spec_qv, spec_x, spec_1d, spec_1d, spec_lh, spec_lh,
                  spec_msk, spec_1d, spec_1d],
        out_specs=spec_out,
        scratch_shapes=[pltpu.VMEM((tq, D), jnp.float32)],
        compiler_params=pltpu.CompilerParams(**ckw),
    )(qv, x, rr.reshape(1, D), rw.reshape(1, D), sinT, cosT, mask_f,
      gamma.reshape(1, D), beta.reshape(1, D))


# --------------------------------------------------------------------------- #
# NCRF++-style CRF Viterbi forward recursion — batch-vectorized                #
# START_TAG = T-2, STOP_TAG = T-1.  Tag axis padded to 128 lanes (Wtag) so all #
# per-step backpointer stores are lane-dense full vregs.                       #
# --------------------------------------------------------------------------- #
def _viterbi_kernel(feats_ref, mask_ref, trans_ref, bp_ref, ptr_ref):
    L, B, W = feats_ref.shape          # W = 128-padded tag width
    T = trans_ref.shape[0]             # true tag count (incl. START/STOP)

    lens = jnp.sum(mask_ref[...], axis=0)                # [B, 1] int32
    trans = trans_ref[...]                               # [T, W] f32 (pad cols = -1e30)

    bp_ref[...] = jnp.zeros_like(bp_ref)                 # includes pad_zero last row

    # init: partition = feats[0, :] + transitions[START_TAG, :]
    part0 = feats_ref[0] + trans[T - 2:T - 1, :]         # [B, W]

    def step(idx, carry):
        part, last = carry                               # [B, W] each
        feats_t = feats_ref[idx]                         # [B, W]
        # new[b, j] = max_i(part[b, i] + trans[i, j]);  first-index argmax on ties
        best = part[:, 0:1] + trans[0:1, :]
        bestidx = jnp.zeros((B, W), jnp.int32)
        for i in range(1, T):
            cand = part[:, i:i + 1] + trans[i:i + 1, :]
            upd = cand > best
            best = jnp.where(upd, cand, best)
            bestidx = jnp.where(upd, jnp.int32(i), bestidx)
        new_part = best + feats_t
        mcol = mask_ref[idx]                             # [B, 1] int32
        bp_row = jnp.where(mcol != 0, bestidx, 0)
        bp_ref[pl.ds(idx - 1, 1), :, :] = bp_row[None]   # lane-dense [B, 128] store
        new_last = jnp.where(lens == idx + 1, new_part, last)
        return (new_part, new_last)

    part, last = jax.lax.fori_loop(1, L, step, (part0, part0))

    # transition into STOP tag: pointer = argmax_i(last[b, i] + trans[i, STOP])
    best = last[:, 0:1] + trans[0:1, :]
    bestidx = jnp.zeros((B, W), jnp.int32)
    for i in range(1, T):
        cand = last[:, i:i + 1] + trans[i:i + 1, :]
        upd = cand > best
        best = jnp.where(upd, cand, best)
        bestidx = jnp.where(upd, jnp.int32(i), bestidx)
    ptr_col = bestidx[:, T - 1:T]                        # [B, 1]
    ptr_ref[...] = ptr_col

    # scatter insert_last at row length-1 (matches torch scatter_)
    def scat(l, c):
        row = bp_ref[l]                                  # [B, W]
        upd = (lens - 1) == l                            # [B, 1]
        bp_ref[pl.ds(l, 1), :, :] = jnp.where(upd, ptr_col, row)[None]
        return c

    jax.lax.fori_loop(0, L, scat, 0)


def crf_viterbi_decode(feats, mask, transitions):
    B, L, T = feats.shape
    W = max(128, ((T + 127) // 128) * 128)

    feats_t = jnp.transpose(feats, (1, 0, 2))                       # [L, B, T]
    feats_pad = jnp.pad(feats_t, ((0, 0), (0, 0), (0, W - T)))      # pad tags -> 128
    trans_pad = jnp.pad(transitions, ((0, 0), (0, W - T)),
                        constant_values=-1e30)                      # [T, W]
    mask_lb = jnp.transpose(mask.astype(jnp.int32), (1, 0))[:, :, None]  # [L, B, 1]

    bp, ptr = pl.pallas_call(
        _viterbi_kernel,
        out_shape=(jax.ShapeDtypeStruct((L, B, W), jnp.int32),
                   jax.ShapeDtypeStruct((B, 1), jnp.int32)),
        grid=(1,),
        in_specs=[
            pl.BlockSpec((L, B, W), lambda i: (0, 0, 0)),
            pl.BlockSpec((L, B, 1), lambda i: (0, 0, 0)),
            pl.BlockSpec((T, W), lambda i: (0, 0)),
        ],
        out_specs=(
            pl.BlockSpec((L, B, W), lambda i: (0, 0, 0)),
            pl.BlockSpec((B, 1), lambda i: (0, 0)),
        ),
        compiler_params=pltpu.CompilerParams(
            dimension_semantics=("arbitrary",)),
    )(feats_pad, mask_lb, trans_pad)

    # TODO(synk): sequential backtrace (data-dependent scalar gathers) stays in
    # plain JAX as a single lax.scan.
    pointer = ptr[:, 0]                                             # [B]

    def bt_step(p, bp_t):                                           # bp_t: [B, W]
        new = jnp.take_along_axis(bp_t, p[:, None], axis=1)[:, 0]
        return new, new

    bp_rev = jnp.flip(bp[:L - 1], axis=0)                           # [L-1, B, W]
    _, trace = jax.lax.scan(bt_step, pointer, bp_rev)               # [L-1, B]
    decode_rest = jnp.flip(jnp.transpose(trace, (1, 0)), axis=1)    # [B, L-1]
    return jnp.concatenate([decode_rest, pointer[:, None]], axis=1)  # [B, L]


# --------------------------------------------------------------------------- #
# model glue                                                                   #
# --------------------------------------------------------------------------- #
def transformer_layer(x, mask_f, lp, sinT, cosT, n_head):
    B, L, D = x.shape
    x2 = x.reshape(B * L, D)

    # qv projection (TENER qv_linear, bias-free) emitted as bf16; q/v sliced in-kernel
    qv = linear(x2, lp['w_qv'], jnp.zeros((2 * D,), jnp.float32),
                out_dtype=jnp.bfloat16).reshape(B, L, 2 * D)

    # attention + residual + LayerNorm1 (fused)
    x = rel_attention_layernorm(qv, x, lp['r_r'], lp['r_w'], sinT, cosT,
                                mask_f, lp['ln1_g'], lp['ln1_b'], n_head)

    # FFN + residual + LayerNorm2 (fused)
    y = ffn_layernorm(x.reshape(B * L, D), lp['w_ff1'], lp['b_ff1'],
                      lp['w_ff2'], lp['b_ff2'], lp['ln2_g'], lp['ln2_b'])
    return y.reshape(B, L, D)


def tener_forward(params, input_chars, n_head):
    B, L = input_chars.shape
    d_model = params['w_in'].shape[1]
    Dh = d_model // n_head
    half = Dh // 2

    mask = input_chars != 0                                         # [B, L]
    mask_f = mask.astype(jnp.float32).reshape(B, 1, L)

    # sin/cos tables for absolute positions (same inv_freq as TENER's relative
    # sinusoidal embedding); relative terms reconstructed exactly in-kernel.
    denom = max(half - 1, 1)
    inv_freq = jnp.exp(jnp.arange(half, dtype=jnp.float32)
                       * -(math.log(10000.0) / denom))
    ang = jnp.arange(L, dtype=jnp.float32)[:, None] * inv_freq[None, :]   # [L, half]
    sinT = jnp.sin(ang)
    cosT = jnp.cos(ang)

    # TODO(synk): embedding table gather stays in plain JAX (data-dependent gather).
    xe = params['embed'][input_chars]                               # [B, L, E]
    E = xe.shape[-1]
    x = linear(xe.reshape(B * L, E), params['w_in'],
               params['b_in']).reshape(B, L, d_model)

    for lp in params['layers']:
        x = transformer_layer(x, mask_f, lp, sinT, cosT, n_head)

    # fc_dropout is identity at eval
    tags = linear(x.reshape(B * L, d_model), params['w_out'], params['b_out'])
    tags = tags.reshape(B, L, params['w_out'].shape[1])
    return crf_viterbi_decode(tags, mask, params['transitions'])


# --------------------------------------------------------------------------- #
# deterministic parameter init                                                 #
# --------------------------------------------------------------------------- #
def init_params(key, char_size, embed_size, d_model, num_layers, n_head, ff_dim,
                tag_vocab_num):
    T = tag_vocab_num + 2
    Dh = d_model // n_head
    keys = iter(jax.random.split(key, 8 + 8 * num_layers))

    def nrm(shape, scale=0.1):
        return jax.random.normal(next(keys), shape, jnp.float32) * scale

    trans = nrm((T, T), 0.1)
    trans = trans.at[:, T - 2].set(-10000.0)    # nothing transitions INTO START
    trans = trans.at[T - 1, :].set(-10000.0)    # nothing transitions OUT OF STOP

    params = {
        'embed': nrm((char_size, embed_size), 0.5),
        'w_in': nrm((embed_size, d_model)),
        'b_in': jnp.zeros((d_model,), jnp.float32),
        'w_out': nrm((d_model, T)),
        'b_out': jnp.zeros((T,), jnp.float32),
        'transitions': trans,
        'layers': [],
    }
    for _ in range(num_layers):
        params['layers'].append({
            'w_qv': nrm((d_model, 2 * d_model)),
            'r_r': nrm((n_head, Dh)),
            'r_w': nrm((n_head, Dh)),
            'ln1_g': jnp.ones((d_model,), jnp.float32),
            'ln1_b': jnp.zeros((d_model,), jnp.float32),
            'w_ff1': nrm((d_model, ff_dim)),
            'b_ff1': jnp.zeros((ff_dim,), jnp.float32),
            'w_ff2': nrm((ff_dim, d_model)),
            'b_ff2': jnp.zeros((d_model,), jnp.float32),
            'ln2_g': jnp.ones((d_model,), jnp.float32),
            'ln2_b': jnp.zeros((d_model,), jnp.float32),
        })
    return params


# --------------------------------------------------------------------------- #
if __name__ == "__main__":
    B, L = 2, 8
    char_size, embed_size, d_model = 32, 16, 32
    num_layers, n_head, ff_dim = 2, 4, 64
    tag_vocab_num = 6                                   # out_fc -> tag_vocab_num + 2 = 8

    key = jax.random.PRNGKey(0)
    k_params, k_toks = jax.random.split(key)
    params = init_params(k_params, char_size, embed_size, d_model,
                         num_layers, n_head, ff_dim, tag_vocab_num)

    toks = jax.random.randint(k_toks, (B, L), 1, char_size, dtype=jnp.int32)
    lengths = jnp.array([8, 5], dtype=jnp.int32)
    valid = jnp.arange(L, dtype=jnp.int32)[None, :] < lengths[:, None]
    input_chars = jnp.where(valid, toks, 0).astype(jnp.int32)       # 0 = pad id

    run = jax.jit(partial(tener_forward, n_head=n_head))
    tag_seq = run(params, input_chars)
    jax.block_until_ready(tag_seq)
    assert tag_seq.shape == (B, L)
    print("KERNEL_OK")
</pallas_src>

<mosaic_0001>
module attributes {stable_mosaic.version = 11 : i64} {
  func.func @_linear_kernel_f32(%arg0: i32, %arg1: i32, %arg2: i32, %arg3: memref<16x16xf32, #tpu.memory_space<vmem>>, %arg4: memref<16x32xf32, #tpu.memory_space<vmem>>, %arg5: memref<1x32xf32, #tpu.memory_space<vmem>>, %arg6: memref<16x32xf32, #tpu.memory_space<vmem>>) attributes {dimension_semantics = [#tpu.dimension_semantics<parallel>, #tpu.dimension_semantics<parallel>, #tpu.dimension_semantics<arbitrary>], iteration_bounds = array<i64: 1, 1, 1>, scalar_prefetch = 0 : i64, scratch_operands = 0 : i64, tpu.core_type = #tpu.core_type<tc>, window_params = [{transform_indices = @transform_0, window_bounds = array<i64: 16, 16>}, {transform_indices = @transform_1, window_bounds = array<i64: 16, 32>}, {transform_indices = @transform_2, window_bounds = array<i64: 1, 32>}, {transform_indices = @transform_3, window_bounds = array<i64: 16, 32>}]} {
    %c0_i32 = arith.constant 0 : i32
    %0 = arith.cmpi eq, %arg2, %c0_i32 : i32
    %1 = arith.extui %0 : i1 to i32
    %c0_i32_0 = arith.constant 0 : i32
    %2 = arith.cmpi ne, %1, %c0_i32_0 : i32
    scf.if %2 {
      %cst_10 = arith.constant 0.000000e+00 : f32
      %14 = vector.broadcast %cst_10 : f32 to vector<16x32xf32>
      %c0_11 = arith.constant 0 : index
      %c0_12 = arith.constant 0 : index
      %15 = vector.load %arg6[%c0_11, %c0_12] : memref<16x32xf32, #tpu.memory_space<vmem>>, vector<16x32xf32>
      tpu.vector_store %arg6[%c0_11, %c0_12], %14 {strides = array<i32>} : memref<16x32xf32, #tpu.memory_space<vmem>>, vector<16x32xf32>,
    } else {
    }
    %c0 = arith.constant 0 : index
    %c0_1 = arith.constant 0 : index
    %3 = vector.load %arg6[%c0, %c0_1] : memref<16x32xf32, #tpu.memory_space<vmem>>, vector<16x32xf32>
    %c0_2 = arith.constant 0 : index
    %c0_3 = arith.constant 0 : index
    %4 = vector.load %arg3[%c0_2, %c0_3] : memref<16x16xf32, #tpu.memory_space<vmem>>, vector<16x16xf32>
    %5 = arith.truncf %4 : vector<16x16xf32> to vector<16x16xbf16>
    %c0_4 = arith.constant 0 : index
    %c0_5 = arith.constant 0 : index
    %6 = vector.load %arg4[%c0_4, %c0_5] : memref<16x32xf32, #tpu.memory_space<vmem>>, vector<16x32xf32>
    %7 = arith.truncf %6 : vector<16x32xf32> to vector<16x32xbf16>
    %cst = arith.constant dense<0.000000e+00> : vector<16x32xf32>
    %8 = tpu.matmul %5, %7, %cst {dimension_numbers = #tpu.dot_dimension_numbers<[1], [0], [0], [1], [0, 0, 1, 1], [], []>} : vector<16x16xbf16>, vector<16x32xbf16>, vector<16x32xf32> -> vector<16x32xf32>
    %9 = arith.addf %3, %8 : vector<16x32xf32>
    %c0_6 = arith.constant 0 : index
    %c0_7 = arith.constant 0 : index
    %10 = vector.load %arg6[%c0_6, %c0_7] : memref<16x32xf32, #tpu.memory_space<vmem>>, vector<16x32xf32>
    tpu.vector_store %arg6[%c0_6, %c0_7], %9 {strides = array<i32>} : memref<16x32xf32, #tpu.memory_space<vmem>>, vector<16x32xf32>,
    %c0_i32_8 = arith.constant 0 : i32
    %11 = arith.cmpi eq, %arg2, %c0_i32_8 : i32
    %12 = arith.extui %11 : i1 to i32
    %c0_i32_9 = arith.constant 0 : i32
    %13 = arith.cmpi ne, %12, %c0_i32_9 : i32
    scf.if %13 {
      %c0_10 = arith.constant 0 : index
      %c0_11 = arith.constant 0 : index
      %14 = vector.load %arg6[%c0_10, %c0_11] : memref<16x32xf32, #tpu.memory_space<vmem>>, vector<16x32xf32>
      %c0_12 = arith.constant 0 : index
      %c0_13 = arith.constant 0 : index
      %15 = vector.load %arg5[%c0_12, %c0_13] : memref<1x32xf32, #tpu.memory_space<vmem>>, vector<1x32xf32>
      %16 = vector.broadcast %15 : vector<1x32xf32> to vector<16x32xf32>
      %17 = arith.addf %14, %16 : vector<16x32xf32>
      %c0_14 = arith.constant 0 : index
      %c0_15 = arith.constant 0 : index
      %18 = vector.load %arg6[%c0_14, %c0_15] : memref<16x32xf32, #tpu.memory_space<vmem>>, vector<16x32xf32>
      tpu.vector_store %arg6[%c0_14, %c0_15], %17 {strides = array<i32>} : memref<16x32xf32, #tpu.memory_space<vmem>>, vector<16x32xf32>,
    } else {
    }
    return
  }
  func.func @transform_0(%arg0: i32, %arg1: i32, %arg2: i32) -> (i32, i32) {
    %c0_i32 = arith.constant 0 : i32
    return %arg0, %arg2 : i32, i32
  }
  func.func @transform_1(%arg0: i32, %arg1: i32, %arg2: i32) -> (i32, i32) {
    %c0_i32 = arith.constant 0 : i32
    return %arg2, %arg1 : i32, i32
  }
  func.func @transform_2(%arg0: i32, %arg1: i32, %arg2: i32) -> (i32, i32) {
    %c0_i32 = arith.constant 0 : i32
    %c0_i32_0 = arith.constant 0 : i32
    return %c0_i32, %arg1 : i32, i32
  }
  func.func @transform_3(%arg0: i32, %arg1: i32, %arg2: i32) -> (i32, i32) {
    %c0_i32 = arith.constant 0 : i32
    return %arg0, %arg1 : i32, i32
  }
}

module attributes {stable_mosaic.version = 11 : i64} {
  func.func @_linear_kernel_cast(%arg0: i32, %arg1: i32, %arg2: i32, %arg3: memref<16x32xf32, #tpu.memory_space<vmem>>, %arg4: memref<32x64xf32, #tpu.memory_space<vmem>>, %arg5: memref<1x64xf32, #tpu.memory_space<vmem>>, %arg6: memref<16x64xbf16, #tpu.memory_space<vmem>>, %arg7: memref<16x64xf32, #tpu.memory_space<vmem>>) attributes {dimension_semantics = [#tpu.dimension_semantics<parallel>, #tpu.dimension_semantics<parallel>, #tpu.dimension_semantics<arbitrary>], iteration_bounds = array<i64: 1, 1, 1>, scalar_prefetch = 0 : i64, scratch_operands = 1 : i64, tpu.core_type = #tpu.core_type<tc>, window_params = [{transform_indices = @transform_0, window_bounds = array<i64: 16, 32>}, {transform_indices = @transform_1, window_bounds = array<i64: 32, 64>}, {transform_indices = @transform_2, window_bounds = array<i64: 1, 64>}, {transform_indices = @transform_3, window_bounds = array<i64: 16, 64>}]} {
    %c0_i32 = arith.constant 0 : i32
    %0 = arith.cmpi eq, %arg2, %c0_i32 : i32
    %1 = arith.extui %0 : i1 to i32
    %c0_i32_0 = arith.constant 0 : i32
    %2 = arith.cmpi ne, %1, %c0_i32_0 : i32
    scf.if %2 {
      %cst_10 = arith.constant 0.000000e+00 : f32
      %14 = vector.broadcast %cst_10 : f32 to vector<16x64xf32>
      %c0_11 = arith.constant 0 : index
      %c0_12 = arith.constant 0 : index
      %15 = vector.load %arg7[%c0_11, %c0_12] : memref<16x64xf32, #tpu.memory_space<vmem>>, vector<16x64xf32>
      tpu.vector_store %arg7[%c0_11, %c0_12], %14 {strides = array<i32>} : memref<16x64xf32, #tpu.memory_space<vmem>>, vector<16x64xf32>,
    } else {
    }
    %c0 = arith.constant 0 : index
    %c0_1 = arith.constant 0 : index
    %3 = vector.load %arg7[%c0, %c0_1] : memref<16x64xf32, #tpu.memory_space<vmem>>, vector<16x64xf32>
    %c0_2 = arith.constant 0 : index
    %c0_3 = arith.constant 0 : index
    %4 = vector.load %arg3[%c0_2, %c0_3] : memref<16x32xf32, #tpu.memory_space<vmem>>, vector<16x32xf32>
    %5 = arith.truncf %4 : vector<16x32xf32> to vector<16x32xbf16>
    %c0_4 = arith.constant 0 : index
    %c0_5 = arith.constant 0 : index
    %6 = vector.load %arg4[%c0_4, %c0_5] : memref<32x64xf32, #tpu.memory_space<vmem>>, vector<32x64xf32>
    %7 = arith.truncf %6 : vector<32x64xf32> to vector<32x64xbf16>
    %cst = arith.constant dense<0.000000e+00> : vector<16x64xf32>
    %8 = tpu.matmul %5, %7, %cst {dimension_numbers = #tpu.dot_dimension_numbers<[1], [0], [0], [1], [0, 0, 1, 1], [], []>} : vector<16x32xbf16>, vector<32x64xbf16>, vector<16x64xf32> -> vector<16x64xf32>
    %9 = arith.addf %3, %8 : vector<16x64xf32>
    %c0_6 = arith.constant 0 : index
    %c0_7 = arith.constant 0 : index
    %10 = vector.load %arg7[%c0_6, %c0_7] : memref<16x64xf32, #tpu.memory_space<vmem>>, vector<16x64xf32>
    tpu.vector_store %arg7[%c0_6, %c0_7], %9 {strides = array<i32>} : memref<16x64xf32, #tpu.memory_space<vmem>>, vector<16x64xf32>,
    %c0_i32_8 = arith.constant 0 : i32
    %11 = arith.cmpi eq, %arg2, %c0_i32_8 : i32
    %12 = arith.extui %11 : i1 to i32
    %c0_i32_9 = arith.constant 0 : i32
    %13 = arith.cmpi ne, %12, %c0_i32_9 : i32
    scf.if %13 {
      %c0_10 = arith.constant 0 : index
      %c0_11 = arith.constant 0 : index
      %14 = vector.load %arg7[%c0_10, %c0_11] : memref<16x64xf32, #tpu.memory_space<vmem>>, vector<16x64xf32>
      %c0_12 = arith.constant 0 : index
      %c0_13 = arith.constant 0 : index
      %15 = vector.load %arg5[%c0_12, %c0_13] : memref<1x64xf32, #tpu.memory_space<vmem>>, vector<1x64xf32>
      %16 = vector.broadcast %15 : vector<1x64xf32> to vector<16x64xf32>
      %17 = arith.addf %14, %16 : vector<16x64xf32>
      %18 = arith.truncf %17 : vector<16x64xf32> to vector<16x64xbf16>
      %c0_14 = arith.constant 0 : index
      %c0_15 = arith.constant 0 : index
      %19 = vector.load %arg6[%c0_14, %c0_15] : memref<16x64xbf16, #tpu.memory_space<vmem>>, vector<16x64xbf16>
      tpu.vector_store %arg6[%c0_14, %c0_15], %18 {strides = array<i32>} : memref<16x64xbf16, #tpu.memory_space<vmem>>, vector<16x64xbf16>,
    } else {
    }
    return
  }
  func.func @transform_0(%arg0: i32, %arg1: i32, %arg2: i32) -> (i32, i32) {
    %c0_i32 = arith.constant 0 : i32
    return %arg0, %arg2 : i32, i32
  }
  func.func @transform_1(%arg0: i32, %arg1: i32, %arg2: i32) -> (i32, i32) {
    %c0_i32 = arith.constant 0 : i32
    return %arg2, %arg1 : i32, i32
  }
  func.func @transform_2(%arg0: i32, %arg1: i32, %arg2: i32) -> (i32, i32) {
    %c0_i32 = arith.constant 0 : i32
    %c0_i32_0 = arith.constant 0 : i32
    return %c0_i32, %arg1 : i32, i32
  }
  func.func @transform_3(%arg0: i32, %arg1: i32, %arg2: i32) -> (i32, i32) {
    %c0_i32 = arith.constant 0 : i32
    return %arg0, %arg1 : i32, i32
  }
}

module attributes {stable_mosaic.version = 11 : i64} {
  func.func @_attn_ln_kernel(%arg0: i32, %arg1: i32, %arg2: memref<1x8x64xbf16, #tpu.memory_space<vmem>>, %arg3: memref<1x8x32xf32, #tpu.memory_space<vmem>>, %arg4: memref<1x32xf32, #tpu.memory_space<vmem>>, %arg5: memref<1x32xf32, #tpu.memory_space<vmem>>, %arg6: memref<8x4xf32, #tpu.memory_space<vmem>>, %arg7: memref<8x4xf32, #tpu.memory_space<vmem>>, %arg8: memref<1x1x8xf32, #tpu.memory_space<vmem>>, %arg9: memref<1x32xf32, #tpu.memory_space<vmem>>, %arg10: memref<1x32xf32, #tpu.memory_space<vmem>>, %arg11: memref<1x8x32xf32, #tpu.memory_space<vmem>>, %arg12: memref<8x32xf32, #tpu.memory_space<vmem>>) attributes {dimension_semantics = [#tpu.dimension_semantics<parallel>, #tpu.dimension_semantics<parallel>], iteration_bounds = array<i64: 2, 1>, scalar_prefetch = 0 : i64, scratch_operands = 1 : i64, tpu.core_type = #tpu.core_type<tc>, window_params = [{transform_indices = @transform_0, window_bounds = array<i64: 1, 8, 64>}, {transform_indices = @transform_1, window_bounds = array<i64: 1, 8, 32>}, {pipeline_mode = #tpu.pipeline_mode<synchronous>, transform_indices = @transform_2, window_bounds = array<i64: 1, 32>}, {pipeline_mode = #tpu.pipeline_mode<synchronous>, transform_indices = @transform_3, window_bounds = array<i64: 1, 32>}, {pipeline_mode = #tpu.pipeline_mode<synchronous>, transform_indices = @transform_4, window_bounds = array<i64: 8, 4>}, {pipeline_mode = #tpu.pipeline_mode<synchronous>, transform_indices = @transform_5, window_bounds = array<i64: 8, 4>}, {transform_indices = @transform_6, window_bounds = array<i64: 1, 1, 8>}, {pipeline_mode = #tpu.pipeline_mode<synchronous>, transform_indices = @transform_7, window_bounds = array<i64: 1, 32>}, {pipeline_mode = #tpu.pipeline_mode<synchronous>, transform_indices = @transform_8, window_bounds = array<i64: 1, 32>}, {transform_indices = @transform_9, window_bounds = array<i64: 1, 8, 32>}]} {
    %c8_i32 = arith.constant 8 : i32
    %0 = arith.muli %arg1, %c8_i32 : i32
    %1 = tpu.assume_multiple %0, 8 : i32
    %c0 = arith.constant 0 : index
    %c0_0 = arith.constant 0 : index
    %2 = vector.load %arg6[%c0, %c0_0] : memref<8x4xf32, #tpu.memory_space<vmem>>, vector<8x4xf32>
    %c0_1 = arith.constant 0 : index
    %c0_2 = arith.constant 0 : index
    %3 = vector.load %arg7[%c0_1, %c0_2] : memref<8x4xf32, #tpu.memory_space<vmem>>, vector<8x4xf32>
    %4 = arith.index_cast %1 : i32 to index
    %c0_3 = arith.constant 0 : index
    %5 = vector.load %arg6[%4, %c0_3] : memref<8x4xf32, #tpu.memory_space<vmem>>, vector<8x4xf32>
    %6 = arith.index_cast %1 : i32 to index
    %c0_4 = arith.constant 0 : index
    %7 = vector.load %arg7[%6, %c0_4] : memref<8x4xf32, #tpu.memory_space<vmem>>, vector<8x4xf32>
    %c0_5 = arith.constant 0 : index
    %c0_6 = arith.constant 0 : index
    %c0_7 = arith.constant 0 : index
    %8 = vector.load %arg8[%c0_5, %c0_6, %c0_7] : memref<1x1x8xf32, #tpu.memory_space<vmem>>, vector<1x1x8xf32>
    %9 = vector.shape_cast %8 : vector<1x1x8xf32> to vector<1x8xf32>
    %c0_8 = arith.constant 0 : index
    %10 = arith.index_cast %1 : i32 to index
    %c0_9 = arith.constant 0 : index
    %11 = vector.load %arg2[%c0_8, %10, %c0_9] : memref<1x8x64xbf16, #tpu.memory_space<vmem>>, vector<1x8x64xbf16>
    %12 = vector.shape_cast %11 : vector<1x8x64xbf16> to vector<8x64xbf16>
    %c0_10 = arith.constant 0 : index
    %13 = arith.index_cast %1 : i32 to index
    %c0_11 = arith.constant 0 : index
    %14 = vector.load %arg3[%c0_10, %13, %c0_11] : memref<1x8x32xf32, #tpu.memory_space<vmem>>, vector<1x8x32xf32>
    %15 = vector.shape_cast %14 : vector<1x8x32xf32> to vector<8x32xf32>
    %16 = vector.extract_strided_slice %12 {offsets = [0, 0], sizes = [8, 8], strides = [1, 1]} : vector<8x64xbf16> to vector<8x8xbf16>
    %17 = arith.extf %16 : vector<8x8xbf16> to vector<8x8xf32>
    %c0_12 = arith.constant 0 : index
    %c0_13 = arith.constant 0 : index
    %c0_14 = arith.constant 0 : index
    %18 = vector.load %arg3[%c0_12, %c0_13, %c0_14] : memref<1x8x32xf32, #tpu.memory_space<vmem>>, vector<1x8x8xf32>
    %19 = vector.shape_cast %18 : vector<1x8x8xf32> to vector<8x8xf32>
    %c0_15 = arith.constant 0 : index
    %c0_16 = arith.constant 0 : index
    %c32 = arith.constant 32 : index
    %20 = vector.load %arg2[%c0_15, %c0_16, %c32] : memref<1x8x64xbf16, #tpu.memory_space<vmem>>, vector<1x8x8xbf16>
    %21 = vector.shape_cast %20 : vector<1x8x8xbf16> to vector<8x8xbf16>
    %c0_17 = arith.constant 0 : index
    %c0_18 = arith.constant 0 : index
    %22 = vector.load %arg4[%c0_17, %c0_18] : memref<1x32xf32, #tpu.memory_space<vmem>>, vector<1x8xf32>
    %c0_19 = arith.constant 0 : index
    %c0_20 = arith.constant 0 : index
    %23 = vector.load %arg5[%c0_19, %c0_20] : memref<1x32xf32, #tpu.memory_space<vmem>>, vector<1x8xf32>
    %24 = vector.broadcast %22 : vector<1x8xf32> to vector<8x8xf32>
    %25 = arith.addf %17, %24 : vector<8x8xf32>
    %26 = vector.broadcast %23 : vector<1x8xf32> to vector<8x8xf32>
    %27 = arith.addf %17, %26 : vector<8x8xf32>
    %28 = vector.extract_strided_slice %27 {offsets = [0, 0], sizes = [8, 4], strides = [1, 1]} : vector<8x8xf32> to vector<8x4xf32>
    %29 = vector.extract_strided_slice %27 {offsets = [0, 4], sizes = [8, 4], strides = [1, 1]} : vector<8x8xf32> to vector<8x4xf32>
    %30 = arith.mulf %28, %7 : vector<8x4xf32>
    %31 = arith.mulf %29, %5 : vector<8x4xf32>
    %32 = arith.addf %30, %31 : vector<8x4xf32>
    %33 = arith.mulf %29, %7 : vector<8x4xf32>
    %34 = arith.mulf %28, %5 : vector<8x4xf32>
    %35 = arith.subf %33, %34 : vector<8x4xf32>
    %36 = tpu.concatenate %25, %32, %35, %5, %7 in 1 : vector<8x8xf32>, vector<8x4xf32>, vector<8x4xf32>, vector<8x4xf32>, vector<8x4xf32> -> vector<8x24xf32>
    %37 = arith.truncf %36 : vector<8x24xf32> to vector<8x24xbf16>
    %38 = vector.extract_strided_slice %19 {offsets = [0, 0], sizes = [8, 4], strides = [1, 1]} : vector<8x8xf32> to vector<8x4xf32>
    %39 = vector.extract_strided_slice %19 {offsets = [0, 4], sizes = [8, 4], strides = [1, 1]} : vector<8x8xf32> to vector<8x4xf32>
    %40 = arith.mulf %38, %3 : vector<8x4xf32>
    %41 = arith.mulf %39, %2 : vector<8x4xf32>
    %42 = arith.addf %40, %41 : vector<8x4xf32>
    %43 = arith.mulf %39, %3 : vector<8x4xf32>
    %44 = arith.mulf %38, %2 : vector<8x4xf32>
    %45 = arith.subf %43, %44 : vector<8x4xf32>
    %46 = tpu.concatenate %19, %2, %3, %42, %45 in 1 : vector<8x8xf32>, vector<8x4xf32>, vector<8x4xf32>, vector<8x4xf32>, vector<8x4xf32> -> vector<8x24xf32>
    %47 = arith.truncf %46 : vector<8x24xf32> to vector<8x24xbf16>
    %cst = arith.constant dense<0.000000e+00> : vector<8x8xf32>
    %48 = tpu.matmul %37, %47, %cst {dimension_numbers = #tpu.dot_dimension_numbers<[1], [1], [0], [0], [0, 0, 1, 0], [], []>} : vector<8x24xbf16>, vector<8x24xbf16>, vector<8x8xf32> -> vector<8x8xf32>
    %cst_21 = arith.constant 5.000000e-01 : f32
    %49 = vector.broadcast %cst_21 : f32 to vector<1x8xf32>
    %50 = arith.cmpf ogt, %9, %49 : vector<1x8xf32>
    %cst_22 = arith.constant -1.000000e+30 : f32
    %51 = vector.shape_cast %50 : vector<1x8xi1> to vector<1x8xi1>
    %52 = vector.broadcast %51 : vector<1x8xi1> to vector<8x8xi1>
    %53 = vector.broadcast %cst_22 : f32 to vector<8x8xf32>
    %54 = arith.select %52, %48, %53 : vector<8x8xi1>, vector<8x8xf32>
    %cst_23 = arith.constant dense<0xFF800000> : vector<8xf32>
    %55 = vector.multi_reduction <maximumf>, %54, %cst_23 [1] : vector<8x8xf32> to vector<8xf32>
    %56 = vector.shape_cast %55 : vector<8xf32> to vector<8x1xf32>
    %57 = vector.broadcast %56 : vector<8x1xf32> to vector<8x8xf32>
    %58 = arith.subf %54, %57 : vector<8x8xf32>
    %59 = math.exp %58 : vector<8x8xf32>
    %cst_24 = arith.constant dense<0.000000e+00> : vector<8xf32>
    %60 = vector.multi_reduction <add>, %59, %cst_24 [1] : vector<8x8xf32> to vector<8xf32>
    %61 = vector.shape_cast %60 : vector<8xf32> to vector<8x1xf32>
    %62 = tpu.reciprocal %61 : vector<8x1xf32> -> vector<8x1xf32>
    %63 = vector.broadcast %62 : vector<8x1xf32> to vector<8x8xf32>
    %64 = arith.mulf %59, %63 : vector<8x8xf32>
    %65 = arith.truncf %64 : vector<8x8xf32> to vector<8x8xbf16>
    %cst_25 = arith.constant dense<0.000000e+00> : vector<8x8xf32>
    %66 = tpu.matmul %65, %21, %cst_25 {dimension_numbers = #tpu.dot_dimension_numbers<[1], [0], [0], [1], [0, 0, 1, 1], [], []>} : vector<8x8xbf16>, vector<8x8xbf16>, vector<8x8xf32> -> vector<8x8xf32>
    %c0_26 = arith.constant 0 : index
    %c0_27 = arith.constant 0 : index
    %67 = vector.load %arg12[%c0_26, %c0_27] : memref<8x32xf32, #tpu.memory_space<vmem>>, vector<8x8xf32>
    tpu.vector_store %arg12[%c0_26, %c0_27], %66 {strides = array<i32>} : memref<8x32xf32, #tpu.memory_space<vmem>>, vector<8x8xf32>,
    %68 = vector.extract_strided_slice %12 {offsets = [0, 8], sizes = [8, 8], strides = [1, 1]} : vector<8x64xbf16> to vector<8x8xbf16>
    %69 = arith.extf %68 : vector<8x8xbf16> to vector<8x8xf32>
    %c0_28 = arith.constant 0 : index
    %c0_29 = arith.constant 0 : index
    %c8 = arith.constant 8 : index
    %70 = vector.load %arg3[%c0_28, %c0_29, %c8] : memref<1x8x32xf32, #tpu.memory_space<vmem>>, vector<1x8x8xf32>
    %71 = vector.shape_cast %70 : vector<1x8x8xf32> to vector<8x8xf32>
    %c0_30 = arith.constant 0 : index
    %c0_31 = arith.constant 0 : index
    %c40 = arith.constant 40 : index
    %72 = vector.load %arg2[%c0_30, %c0_31, %c40] : memref<1x8x64xbf16, #tpu.memory_space<vmem>>, vector<1x8x8xbf16>
    %73 = vector.shape_cast %72 : vector<1x8x8xbf16> to vector<8x8xbf16>
    %c0_32 = arith.constant 0 : index
    %c8_33 = arith.constant 8 : index
    %74 = vector.load %arg4[%c0_32, %c8_33] : memref<1x32xf32, #tpu.memory_space<vmem>>, vector<1x8xf32>
    %c0_34 = arith.constant 0 : index
    %c8_35 = arith.constant 8 : index
    %75 = vector.load %arg5[%c0_34, %c8_35] : memref<1x32xf32, #tpu.memory_space<vmem>>, vector<1x8xf32>
    %76 = vector.broadcast %74 : vector<1x8xf32> to vector<8x8xf32>
    %77 = arith.addf %69, %76 : vector<8x8xf32>
    %78 = vector.broadcast %75 : vector<1x8xf32> to vector<8x8xf32>
    %79 = arith.addf %69, %78 : vector<8x8xf32>
    %80 = vector.extract_strided_slice %79 {offsets = [0, 0], sizes = [8, 4], strides = [1, 1]} : vector<8x8xf32> to vector<8x4xf32>
    %81 = vector.extract_strided_slice %79 {offsets = [0, 4], sizes = [8, 4], strides = [1, 1]} : vector<8x8xf32> to vector<8x4xf32>
    %82 = arith.mulf %80, %7 : vector<8x4xf32>
    %83 = arith.mulf %81, %5 : vector<8x4xf32>
    %84 = arith.addf %82, %83 : vector<8x4xf32>
    %85 = arith.mulf %81, %7 : vector<8x4xf32>
    %86 = arith.mulf %80, %5 : vector<8x4xf32>
    %87 = arith.subf %85, %86 : vector<8x4xf32>
    %88 = tpu.concatenate %77, %84, %87, %5, %7 in 1 : vector<8x8xf32>, vector<8x4xf32>, vector<8x4xf32>, vector<8x4xf32>, vector<8x4xf32> -> vector<8x24xf32>
    %89 = arith.truncf %88 : vector<8x24xf32> to vector<8x24xbf16>
    %90 = vector.extract_strided_slice %71 {offsets = [0, 0], sizes = [8, 4], strides = [1, 1]} : vector<8x8xf32> to vector<8x4xf32>
    %91 = vector.extract_strided_slice %71 {offsets = [0, 4], sizes = [8, 4], strides = [1, 1]} : vector<8x8xf32> to vector<8x4xf32>
    %92 = arith.mulf %90, %3 : vector<8x4xf32>
    %93 = arith.mulf %91, %2 : vector<8x4xf32>
    %94 = arith.addf %92, %93 : vector<8x4xf32>
    %95 = arith.mulf %91, %3 : vector<8x4xf32>
    %96 = arith.mulf %90, %2 : vector<8x4xf32>
    %97 = arith.subf %95, %96 : vector<8x4xf32>
    %98 = tpu.concatenate %71, %2, %3, %94, %97 in 1 : vector<8x8xf32>, vector<8x4xf32>, vector<8x4xf32>, vector<8x4xf32>, vector<8x4xf32> -> vector<8x24xf32>
    %99 = arith.truncf %98 : vector<8x24xf32> to vector<8x24xbf16>
    %cst_36 = arith.constant dense<0.000000e+00> : vector<8x8xf32>
    %100 = tpu.matmul %89, %99, %cst_36 {dimension_numbers = #tpu.dot_dimension_numbers<[1], [1], [0], [0], [0, 0, 1, 0], [], []>} : vector<8x24xbf16>, vector<8x24xbf16>, vector<8x8xf32> -> vector<8x8xf32>
    %cst_37 = arith.constant 5.000000e-01 : f32
    %101 = vector.broadcast %cst_37 : f32 to vector<1x8xf32>
    %102 = arith.cmpf ogt, %9, %101 : vector<1x8xf32>
    %cst_38 = arith.constant -1.000000e+30 : f32
    %103 = vector.shape_cast %102 : vector<1x8xi1> to vector<1x8xi1>
    %104 = vector.broadcast %103 : vector<1x8xi1> to vector<8x8xi1>
    %105 = vector.broadcast %cst_38 : f32 to vector<8x8xf32>
    %106 = arith.select %104, %100, %105 : vector<8x8xi1>, vector<8x8xf32>
    %cst_39 = arith.constant dense<0xFF800000> : vector<8xf32>
    %107 = vector.multi_reduction <maximumf>, %106, %cst_39 [1] : vector<8x8xf32> to vector<8xf32>
    %108 = vector.shape_cast %107 : vector<8xf32> to vector<8x1xf32>
    %109 = vector.broadcast %108 : vector<8x1xf32> to vector<8x8xf32>
    %110 = arith.subf %106, %109 : vector<8x8xf32>
    %111 = math.exp %110 : vector<8x8xf32>
    %cst_40 = arith.constant dense<0.000000e+00> : vector<8xf32>
    %112 = vector.multi_reduction <add>, %111, %cst_40 [1] : vector<8x8xf32> to vector<8xf32>
    %113 = vector.shape_cast %112 : vector<8xf32> to vector<8x1xf32>
    %114 = tpu.reciprocal %113 : vector<8x1xf32> -> vector<8x1xf32>
    %115 = vector.broadcast %114 : vector<8x1xf32> to vector<8x8xf32>
    %116 = arith.mulf %111, %115 : vector<8x8xf32>
    %117 = arith.truncf %116 : vector<8x8xf32> to vector<8x8xbf16>
    %cst_41 = arith.constant dense<0.000000e+00> : vector<8x8xf32>
    %118 = tpu.matmul %117, %73, %cst_41 {dimension_numbers = #tpu.dot_dimension_numbers<[1], [0], [0], [1], [0, 0, 1, 1], [], []>} : vector<8x8xbf16>, vector<8x8xbf16>, vector<8x8xf32> -> vector<8x8xf32>
    %c0_42 = arith.constant 0 : index
    %c8_43 = arith.constant 8 : index
    %119 = vector.load %arg12[%c0_42, %c8_43] : memref<8x32xf32, #tpu.memory_space<vmem>>, vector<8x8xf32>
    tpu.vector_store %arg12[%c0_42, %c8_43], %118 {strides = array<i32>} : memref<8x32xf32, #tpu.memory_space<vmem>>, vector<8x8xf32>,
    %120 = vector.extract_strided_slice %12 {offsets = [0, 16], sizes = [8, 8], strides = [1, 1]} : vector<8x64xbf16> to vector<8x8xbf16>
    %121 = arith.extf %120 : vector<8x8xbf16> to vector<8x8xf32>
    %c0_44 = arith.constant 0 : index
    %c0_45 = arith.constant 0 : index
    %c16 = arith.constant 16 : index
    %122 = vector.load %arg3[%c0_44, %c0_45, %c16] : memref<1x8x32xf32, #tpu.memory_space<vmem>>, vector<1x8x8xf32>
    %123 = vector.shape_cast %122 : vector<1x8x8xf32> to vector<8x8xf32>
    %c0_46 = arith.constant 0 : index
    %c0_47 = arith.constant 0 : index
    %c48 = arith.constant 48 : index
    %124 = vector.load %arg2[%c0_46, %c0_47, %c48] : memref<1x8x64xbf16, #tpu.memory_space<vmem>>, vector<1x8x8xbf16>
    %125 = vector.shape_cast %124 : vector<1x8x8xbf16> to vector<8x8xbf16>
    %c0_48 = arith.constant 0 : index
    %c16_49 = arith.constant 16 : index
    %126 = vector.load %arg4[%c0_48, %c16_49] : memref<1x32xf32, #tpu.memory_space<vmem>>, vector<1x8xf32>
    %c0_50 = arith.constant 0 : index
    %c16_51 = arith.constant 16 : index
    %127 = vector.load %arg5[%c0_50, %c16_51] : memref<1x32xf32, #tpu.memory_space<vmem>>, vector<1x8xf32>
    %128 = vector.broadcast %126 : vector<1x8xf32> to vector<8x8xf32>
    %129 = arith.addf %121, %128 : vector<8x8xf32>
    %130 = vector.broadcast %127 : vector<1x8xf32> to vector<8x8xf32>
    %131 = arith.addf %121, %130 : vector<8x8xf32>
    %132 = vector.extract_strided_slice %131 {offsets = [0, 0], sizes = [8, 4], strides = [1, 1]} : vector<8x8xf32> to vector<8x4xf32>
    %133 = vector.extract_strided_slice %131 {offsets = [0, 4], sizes = [8, 4], strides = [1, 1]} : vector<8x8xf32> to vector<8x4xf32>
    %134 = arith.mulf %132, %7 : vector<8x4xf32>
    %135 = arith.mulf %133, %5 : vector<8x4xf32>
    %136 = arith.addf %134, %135 : vector<8x4xf32>
    %137 = arith.mulf %133, %7 : vector<8x4xf32>
    %138 = arith.mulf %132, %5 : vector<8x4xf32>
    %139 = arith.subf %137, %138 : vector<8x4xf32>
    %140 = tpu.concatenate %129, %136, %139, %5, %7 in 1 : vector<8x8xf32>, vector<8x4xf32>, vector<8x4xf32>, vector<8x4xf32>, vector<8x4xf32> -> vector<8x24xf32>
    %141 = arith.truncf %140 : vector<8x24xf32> to vector<8x24xbf16>
    %142 = vector.extract_strided_slice %123 {offsets = [0, 0], sizes = [8, 4], strides = [1, 1]} : vector<8x8xf32> to vector<8x4xf32>
    %143 = vector.extract_strided_slice %123 {offsets = [0, 4], sizes = [8, 4], strides = [1, 1]} : vector<8x8xf32> to vector<8x4xf32>
    %144 = arith.mulf %142, %3 : vector<8x4xf32>
    %145 = arith.mulf %143, %2 : vector<8x4xf32>
    %146 = arith.addf %144, %145 : vector<8x4xf32>
    %147 = arith.mulf %143, %3 : vector<8x4xf32>
    %148 = arith.mulf %142, %2 : vector<8x4xf32>
    %149 = arith.subf %147, %148 : vector<8x4xf32>
    %150 = tpu.concatenate %123, %2, %3, %146, %149 in 1 : vector<8x8xf32>, vector<8x4xf32>, vector<8x4xf32>, vector<8x4xf32>, vector<8x4xf32> -> vector<8x24xf32>
    %151 = arith.truncf %150 : vector<8x24xf32> to vector<8x24xbf16>
    %cst_52 = arith.constant dense<0.000000e+00> : vector<8x8xf32>
    %152 = tpu.matmul %141, %151, %cst_52 {dimension_numbers = #tpu.dot_dimension_numbers<[1], [1], [0], [0], [0, 0, 1, 0], [], []>} : vector<8x24xbf16>, vector<8x24xbf16>, vector<8x8xf32> -> vector<8x8xf32>
    %cst_53 = arith.constant 5.000000e-01 : f32
    %153 = vector.broadcast %cst_53 : f32 to vector<1x8xf32>
    %154 = arith.cmpf ogt, %9, %153 : vector<1x8xf32>
    %cst_54 = arith.constant -1.000000e+30 : f32
    %155 = vector.shape_cast %154 : vector<1x8xi1> to vector<1x8xi1>
    %156 = vector.broadcast %155 : vector<1x8xi1> to vector<8x8xi1>
    %157 = vector.broadcast %cst_54 : f32 to vector<8x8xf32>
    %158 = arith.select %156, %152, %157 : vector<8x8xi1>, vector<8x8xf32>
    %cst_55 = arith.constant dense<0xFF800000> : vector<8xf32>
    %159 = vector.multi_reduction <maximumf>, %158, %cst_55 [1] : vector<8x8xf32> to vector<8xf32>
    %160 = vector.shape_cast %159 : vector<8xf32> to vector<8x1xf32>
    %161 = vector.broadcast %160 : vector<8x1xf32> to vector<8x8xf32>
    %162 = arith.subf %158, %161 : vector<8x8xf32>
    %163 = math.exp %162 : vector<8x8xf32>
    %cst_56 = arith.constant dense<0.000000e+00> : vector<8xf32>
    %164 = vector.multi_reduction <add>, %163, %cst_56 [1] : vector<8x8xf32> to vector<8xf32>
    %165 = vector.shape_cast %164 : vector<8xf32> to vector<8x1xf32>
    %166 = tpu.reciprocal %165 : vector<8x1xf32> -> vector<8x1xf32>
    %167 = vector.broadcast %166 : vector<8x1xf32> to vector<8x8xf32>
    %168 = arith.mulf %163, %167 : vector<8x8xf32>
    %169 = arith.truncf %168 : vector<8x8xf32> to vector<8x8xbf16>
    %cst_57 = arith.constant dense<0.000000e+00> : vector<8x8xf32>
    %170 = tpu.matmul %169, %125, %cst_57 {dimension_numbers = #tpu.dot_dimension_numbers<[1], [0], [0], [1], [0, 0, 1, 1], [], []>} : vector<8x8xbf16>, vector<8x8xbf16>, vector<8x8xf32> -> vector<8x8xf32>
    %c0_58 = arith.constant 0 : index
    %c16_59 = arith.constant 16 : index
    %171 = vector.load %arg12[%c0_58, %c16_59] : memref<8x32xf32, #tpu.memory_space<vmem>>, vector<8x8xf32>
    tpu.vector_store %arg12[%c0_58, %c16_59], %170 {strides = array<i32>} : memref<8x32xf32, #tpu.memory_space<vmem>>, vector<8x8xf32>,
    %172 = vector.extract_strided_slice %12 {offsets = [0, 24], sizes = [8, 8], strides = [1, 1]} : vector<8x64xbf16> to vector<8x8xbf16>
    %173 = arith.extf %172 : vector<8x8xbf16> to vector<8x8xf32>
    %c0_60 = arith.constant 0 : index
    %c0_61 = arith.constant 0 : index
    %c24 = arith.constant 24 : index
    %174 = vector.load %arg3[%c0_60, %c0_61, %c24] : memref<1x8x32xf32, #tpu.memory_space<vmem>>, vector<1x8x8xf32>
    %175 = vector.shape_cast %174 : vector<1x8x8xf32> to vector<8x8xf32>
    %c0_62 = arith.constant 0 : index
    %c0_63 = arith.constant 0 : index
    %c56 = arith.constant 56 : index
    %176 = vector.load %arg2[%c0_62, %c0_63, %c56] : memref<1x8x64xbf16, #tpu.memory_space<vmem>>, vector<1x8x8xbf16>
    %177 = vector.shape_cast %176 : vector<1x8x8xbf16> to vector<8x8xbf16>
    %c0_64 = arith.constant 0 : index
    %c24_65 = arith.constant 24 : index
    %178 = vector.load %arg4[%c0_64, %c24_65] : memref<1x32xf32, #tpu.memory_space<vmem>>, vector<1x8xf32>
    %c0_66 = arith.constant 0 : index
    %c24_67 = arith.constant 24 : index
    %179 = vector.load %arg5[%c0_66, %c24_67] : memref<1x32xf32, #tpu.memory_space<vmem>>, vector<1x8xf32>
    %180 = vector.broadcast %178 : vector<1x8xf32> to vector<8x8xf32>
    %181 = arith.addf %173, %180 : vector<8x8xf32>
    %182 = vector.broadcast %179 : vector<1x8xf32> to vector<8x8xf32>
    %183 = arith.addf %173, %182 : vector<8x8xf32>
    %184 = vector.extract_strided_slice %183 {offsets = [0, 0], sizes = [8, 4], strides = [1, 1]} : vector<8x8xf32> to vector<8x4xf32>
    %185 = vector.extract_strided_slice %183 {offsets = [0, 4], sizes = [8, 4], strides = [1, 1]} : vector<8x8xf32> to vector<8x4xf32>
    %186 = arith.mulf %184, %7 : vector<8x4xf32>
    %187 = arith.mulf %185, %5 : vector<8x4xf32>
    %188 = arith.addf %186, %187 : vector<8x4xf32>
    %189 = arith.mulf %185, %7 : vector<8x4xf32>
    %190 = arith.mulf %184, %5 : vector<8x4xf32>
    %191 = arith.subf %189, %190 : vector<8x4xf32>
    %192 = tpu.concatenate %181, %188, %191, %5, %7 in 1 : vector<8x8xf32>, vector<8x4xf32>, vector<8x4xf32>, vector<8x4xf32>, vector<8x4xf32> -> vector<8x24xf32>
    %193 = arith.truncf %192 : vector<8x24xf32> to vector<8x24xbf16>
    %194 = vector.extract_strided_slice %175 {offsets = [0, 0], sizes = [8, 4], strides = [1, 1]} : vector<8x8xf32> to vector<8x4xf32>
    %195 = vector.extract_strided_slice %175 {offsets = [0, 4], sizes = [8, 4], strides = [1, 1]} : vector<8x8xf32> to vector<8x4xf32>
    %196 = arith.mulf %194, %3 : vector<8x4xf32>
    %197 = arith.mulf %195, %2 : vector<8x4xf32>
    %198 = arith.addf %196, %197 : vector<8x4xf32>
    %199 = arith.mulf %195, %3 : vector<8x4xf32>
    %200 = arith.mulf %194, %2 : vector<8x4xf32>
    %201 = arith.subf %199, %200 : vector<8x4xf32>
    %202 = tpu.concatenate %175, %2, %3, %198, %201 in 1 : vector<8x8xf32>, vector<8x4xf32>, vector<8x4xf32>, vector<8x4xf32>, vector<8x4xf32> -> vector<8x24xf32>
    %203 = arith.truncf %202 : vector<8x24xf32> to vector<8x24xbf16>
    %cst_68 = arith.constant dense<0.000000e+00> : vector<8x8xf32>
    %204 = tpu.matmul %193, %203, %cst_68 {dimension_numbers = #tpu.dot_dimension_numbers<[1], [1], [0], [0], [0, 0, 1, 0], [], []>} : vector<8x24xbf16>, vector<8x24xbf16>, vector<8x8xf32> -> vector<8x8xf32>
    %cst_69 = arith.constant 5.000000e-01 : f32
    %205 = vector.broadcast %cst_69 : f32 to vector<1x8xf32>
    %206 = arith.cmpf ogt, %9, %205 : vector<1x8xf32>
    %cst_70 = arith.constant -1.000000e+30 : f32
    %207 = vector.shape_cast %206 : vector<1x8xi1> to vector<1x8xi1>
    %208 = vector.broadcast %207 : vector<1x8xi1> to vector<8x8xi1>
    %209 = vector.broadcast %cst_70 : f32 to vector<8x8xf32>
    %210 = arith.select %208, %204, %209 : vector<8x8xi1>, vector<8x8xf32>
    %cst_71 = arith.constant dense<0xFF800000> : vector<8xf32>
    %211 = vector.multi_reduction <maximumf>, %210, %cst_71 [1] : vector<8x8xf32> to vector<8xf32>
    %212 = vector.shape_cast %211 : vector<8xf32> to vector<8x1xf32>
    %213 = vector.broadcast %212 : vector<8x1xf32> to vector<8x8xf32>
    %214 = arith.subf %210, %213 : vector<8x8xf32>
    %215 = math.exp %214 : vector<8x8xf32>
    %cst_72 = arith.constant dense<0.000000e+00> : vector<8xf32>
    %216 = vector.multi_reduction <add>, %215, %cst_72 [1] : vector<8x8xf32> to vector<8xf32>
    %217 = vector.shape_cast %216 : vector<8xf32> to vector<8x1xf32>
    %218 = tpu.reciprocal %217 : vector<8x1xf32> -> vector<8x1xf32>
    %219 = vector.broadcast %218 : vector<8x1xf32> to vector<8x8xf32>
    %220 = arith.mulf %215, %219 : vector<8x8xf32>
    %221 = arith.truncf %220 : vector<8x8xf32> to vector<8x8xbf16>
    %cst_73 = arith.constant dense<0.000000e+00> : vector<8x8xf32>
    %222 = tpu.matmul %221, %177, %cst_73 {dimension_numbers = #tpu.dot_dimension_numbers<[1], [0], [0], [1], [0, 0, 1, 1], [], []>} : vector<8x8xbf16>, vector<8x8xbf16>, vector<8x8xf32> -> vector<8x8xf32>
    %c0_74 = arith.constant 0 : index
    %c24_75 = arith.constant 24 : index
    %223 = vector.load %arg12[%c0_74, %c24_75] : memref<8x32xf32, #tpu.memory_space<vmem>>, vector<8x8xf32>
    tpu.vector_store %arg12[%c0_74, %c24_75], %222 {strides = array<i32>} : memref<8x32xf32, #tpu.memory_space<vmem>>, vector<8x8xf32>,
    %c0_76 = arith.constant 0 : index
    %c0_77 = arith.constant 0 : index
    %224 = vector.load %arg12[%c0_76, %c0_77] : memref<8x32xf32, #tpu.memory_space<vmem>>, vector<8x32xf32>
    %225 = arith.addf %224, %15 : vector<8x32xf32>
    %cst_78 = arith.constant dense<0.000000e+00> : vector<8xf32>
    %226 = vector.multi_reduction <add>, %225, %cst_78 [1] : vector<8x32xf32> to vector<8xf32>
    %227 = vector.shape_cast %226 : vector<8xf32> to vector<8x1xf32>
    %cst_79 = arith.constant 3.200000e+01 : f32
    %228 = vector.broadcast %cst_79 : f32 to vector<8x1xf32>
    %229 = arith.divf %227, %228 : vector<8x1xf32>
    %230 = vector.broadcast %229 : vector<8x1xf32> to vector<8x32xf32>
    %231 = arith.subf %225, %230 : vector<8x32xf32>
    %232 = arith.mulf %231, %231 : vector<8x32xf32>
    %cst_80 = arith.constant dense<0.000000e+00> : vector<8xf32>
    %233 = vector.multi_reduction <add>, %232, %cst_80 [1] : vector<8x32xf32> to vector<8xf32>
    %234 = vector.shape_cast %233 : vector<8xf32> to vector<8x1xf32>
    %cst_81 = arith.constant 3.200000e+01 : f32
    %235 = vector.broadcast %cst_81 : f32 to vector<8x1xf32>
    %236 = arith.divf %234, %235 : vector<8x1xf32>
    %237 = vector.broadcast %229 : vector<8x1xf32> to vector<8x32xf32>
    %238 = arith.subf %225, %237 : vector<8x32xf32>
    %cst_82 = arith.constant 9.99999974E-6 : f32
    %239 = vector.broadcast %cst_82 : f32 to vector<8x1xf32>
    %240 = arith.addf %236, %239 : vector<8x1xf32>
    %241 = math.rsqrt %240 : vector<8x1xf32>
    %242 = vector.broadcast %241 : vector<8x1xf32> to vector<8x32xf32>
    %243 = arith.mulf %238, %242 : vector<8x32xf32>
    %c0_83 = arith.constant 0 : index
    %c0_84 = arith.constant 0 : index
    %244 = vector.load %arg9[%c0_83, %c0_84] : memref<1x32xf32, #tpu.memory_space<vmem>>, vector<1x32xf32>
    %245 = vector.broadcast %244 : vector<1x32xf32> to vector<8x32xf32>
    %246 = arith.mulf %243, %245 : vector<8x32xf32>
    %c0_85 = arith.constant 0 : index
    %c0_86 = arith.constant 0 : index
    %247 = vector.load %arg10[%c0_85, %c0_86] : memref<1x32xf32, #tpu.memory_space<vmem>>, vector<1x32xf32>
    %248 = vector.broadcast %247 : vector<1x32xf32> to vector<8x32xf32>
    %249 = arith.addf %246, %248 : vector<8x32xf32>
    %c0_87 = arith.constant 0 : index
    %c0_88 = arith.constant 0 : index
    %c0_89 = arith.constant 0 : index
    %250 = vector.load %arg11[%c0_87, %c0_88, %c0_89] : memref<1x8x32xf32, #tpu.memory_space<vmem>>, vector<1x8x32xf32>
    %251 = vector.shape_cast %250 : vector<1x8x32xf32> to vector<8x32xf32>
    %252 = vector.shape_cast %249 : vector<8x32xf32> to vector<1x8x32xf32>
    tpu.vector_store %arg11[%c0_87, %c0_88, %c0_89], %252 {strides = array<i32>} : memref<1x8x32xf32, #tpu.memory_space<vmem>>, vector<1x8x32xf32>,
    return
  }
  func.func @transform_0(%arg0: i32, %arg1: i32) -> (i32, i32, i32) {
    %c0_i32 = arith.constant 0 : i32
    %c0_i32_0 = arith.constant 0 : i32
    %c0_i32_1 = arith.constant 0 : i32
    return %arg0, %c0_i32, %c0_i32_0 : i32, i32, i32
  }
  func.func @transform_1(%arg0: i32, %arg1: i32) -> (i32, i32, i32) {
    %c0_i32 = arith.constant 0 : i32
    %c0_i32_0 = arith.constant 0 : i32
    %c0_i32_1 = arith.constant 0 : i32
    return %arg0, %c0_i32, %c0_i32_0 : i32, i32, i32
  }
  func.func @transform_2(%arg0: i32, %arg1: i32) -> (i32, i32) {
    %c0_i32 = arith.constant 0 : i32
    %c0_i32_0 = arith.constant 0 : i32
    %c0_i32_1 = arith.constant 0 : i32
    return %c0_i32, %c0_i32_0 : i32, i32
  }
  func.func @transform_3(%arg0: i32, %arg1: i32) -> (i32, i32) {
    %c0_i32 = arith.constant 0 : i32
    %c0_i32_0 = arith.constant 0 : i32
    %c0_i32_1 = arith.constant 0 : i32
    return %c0_i32, %c0_i32_0 : i32, i32
  }
  func.func @transform_4(%arg0: i32, %arg1: i32) -> (i32, i32) {
    %c0_i32 = arith.constant 0 : i32
    %c0_i32_0 = arith.constant 0 : i32
    %c0_i32_1 = arith.constant 0 : i32
    return %c0_i32, %c0_i32_0 : i32, i32
  }
  func.func @transform_5(%arg0: i32, %arg1: i32) -> (i32, i32) {
    %c0_i32 = arith.constant 0 : i32
    %c0_i32_0 = arith.constant 0 : i32
    %c0_i32_1 = arith.constant 0 : i32
    return %c0_i32, %c0_i32_0 : i32, i32
  }
  func.func @transform_6(%arg0: i32, %arg1: i32) -> (i32, i32, i32) {
    %c0_i32 = arith.constant 0 : i32
    %c0_i32_0 = arith.constant 0 : i32
    %c0_i32_1 = arith.constant 0 : i32
    return %arg0, %c0_i32, %c0_i32_0 : i32, i32, i32
  }
  func.func @transform_7(%arg0: i32, %arg1: i32) -> (i32, i32) {
    %c0_i32 = arith.constant 0 : i32
    %c0_i32_0 = arith.constant 0 : i32
    %c0_i32_1 = arith.constant 0 : i32
    return %c0_i32, %c0_i32_0 : i32, i32
  }
  func.func @transform_8(%arg0: i32, %arg1: i32) -> (i32, i32) {
    %c0_i32 = arith.constant 0 : i32
    %c0_i32_0 = arith.constant 0 : i32
    %c0_i32_1 = arith.constant 0 : i32
    return %c0_i32, %c0_i32_0 : i32, i32
  }
  func.func @transform_9(%arg0: i32, %arg1: i32) -> (i32, i32, i32) {
    %c0_i32 = arith.constant 0 : i32
    %c0_i32_0 = arith.constant 0 : i32
    return %arg0, %arg1, %c0_i32 : i32, i32, i32
  }
}

module attributes {stable_mosaic.version = 11 : i64} {
  func.func @_ffn_ln_kernel(%arg0: i32, %arg1: i32, %arg2: memref<16x32xf32, #tpu.memory_space<vmem>>, %arg3: memref<32x64xf32, #tpu.memory_space<vmem>>, %arg4: memref<1x64xf32, #tpu.memory_space<vmem>>, %arg5: memref<64x32xf32, #tpu.memory_space<vmem>>, %arg6: memref<1x32xf32, #tpu.memory_space<vmem>>, %arg7: memref<1x32xf32, #tpu.memory_space<vmem>>, %arg8: memref<1x32xf32, #tpu.memory_space<vmem>>, %arg9: memref<16x32xf32, #tpu.memory_space<vmem>>, %arg10: memref<16x32xf32, #tpu.memory_space<vmem>>) attributes {dimension_semantics = [#tpu.dimension_semantics<parallel>, #tpu.dimension_semantics<arbitrary>], iteration_bounds = array<i64: 1, 1>, scalar_prefetch = 0 : i64, scratch_operands = 1 : i64, tpu.core_type = #tpu.core_type<tc>, window_params = [{transform_indices = @transform_0, window_bounds = array<i64: 16, 32>}, {transform_indices = @transform_1, window_bounds = array<i64: 32, 64>}, {transform_indices = @transform_2, window_bounds = array<i64: 1, 64>}, {transform_indices = @transform_3, window_bounds = array<i64: 64, 32>}, {pipeline_mode = #tpu.pipeline_mode<synchronous>, transform_indices = @transform_4, window_bounds = array<i64: 1, 32>}, {pipeline_mode = #tpu.pipeline_mode<synchronous>, transform_indices = @transform_5, window_bounds = array<i64: 1, 32>}, {pipeline_mode = #tpu.pipeline_mode<synchronous>, transform_indices = @transform_6, window_bounds = array<i64: 1, 32>}, {transform_indices = @transform_7, window_bounds = array<i64: 16, 32>}]} {
    %c0_i32 = arith.constant 0 : i32
    %0 = arith.cmpi eq, %arg1, %c0_i32 : i32
    %1 = arith.extui %0 : i1 to i32
    %c0_i32_0 = arith.constant 0 : i32
    %2 = arith.cmpi ne, %1, %c0_i32_0 : i32
    scf.if %2 {
      %cst_16 = arith.constant 0.000000e+00 : f32
      %23 = vector.broadcast %cst_16 : f32 to vector<16x32xf32>
      %c0_17 = arith.constant 0 : index
      %c0_18 = arith.constant 0 : index
      %24 = vector.load %arg10[%c0_17, %c0_18] : memref<16x32xf32, #tpu.memory_space<vmem>>, vector<16x32xf32>
      tpu.vector_store %arg10[%c0_17, %c0_18], %23 {strides = array<i32>} : memref<16x32xf32, #tpu.memory_space<vmem>>, vector<16x32xf32>,
    } else {
    }
    %c0 = arith.constant 0 : index
    %c0_1 = arith.constant 0 : index
    %3 = vector.load %arg2[%c0, %c0_1] : memref<16x32xf32, #tpu.memory_space<vmem>>, vector<16x32xf32>
    %4 = arith.truncf %3 : vector<16x32xf32> to vector<16x32xbf16>
    %c0_2 = arith.constant 0 : index
    %c0_3 = arith.constant 0 : index
    %5 = vector.load %arg3[%c0_2, %c0_3] : memref<32x64xf32, #tpu.memory_space<vmem>>, vector<32x64xf32>
    %6 = arith.truncf %5 : vector<32x64xf32> to vector<32x64xbf16>
    %cst = arith.constant dense<0.000000e+00> : vector<16x64xf32>
    %7 = tpu.matmul %4, %6, %cst {dimension_numbers = #tpu.dot_dimension_numbers<[1], [0], [0], [1], [0, 0, 1, 1], [], []>} : vector<16x32xbf16>, vector<32x64xbf16>, vector<16x64xf32> -> vector<16x64xf32>
    %c0_4 = arith.constant 0 : index
    %c0_5 = arith.constant 0 : index
    %8 = vector.load %arg4[%c0_4, %c0_5] : memref<1x64xf32, #tpu.memory_space<vmem>>, vector<1x64xf32>
    %9 = vector.broadcast %8 : vector<1x64xf32> to vector<16x64xf32>
    %10 = arith.addf %7, %9 : vector<16x64xf32>
    %cst_6 = arith.constant 0.000000e+00 : f32
    %11 = vector.broadcast %cst_6 : f32 to vector<16x64xf32>
    %12 = arith.maximumf %10, %11 : vector<16x64xf32>
    %13 = arith.truncf %12 : vector<16x64xf32> to vector<16x64xbf16>
    %c0_7 = arith.constant 0 : index
    %c0_8 = arith.constant 0 : index
    %14 = vector.load %arg10[%c0_7, %c0_8] : memref<16x32xf32, #tpu.memory_space<vmem>>, vector<16x32xf32>
    %c0_9 = arith.constant 0 : index
    %c0_10 = arith.constant 0 : index
    %15 = vector.load %arg5[%c0_9, %c0_10] : memref<64x32xf32, #tpu.memory_space<vmem>>, vector<64x32xf32>
    %16 = arith.truncf %15 : vector<64x32xf32> to vector<64x32xbf16>
    %cst_11 = arith.constant dense<0.000000e+00> : vector<16x32xf32>
    %17 = tpu.matmul %13, %16, %cst_11 {dimension_numbers = #tpu.dot_dimension_numbers<[1], [0], [0], [1], [0, 0, 1, 1], [], []>} : vector<16x64xbf16>, vector<64x32xbf16>, vector<16x32xf32> -> vector<16x32xf32>
    %18 = arith.addf %14, %17 : vector<16x32xf32>
    %c0_12 = arith.constant 0 : index
    %c0_13 = arith.constant 0 : index
    %19 = vector.load %arg10[%c0_12, %c0_13] : memref<16x32xf32, #tpu.memory_space<vmem>>, vector<16x32xf32>
    tpu.vector_store %arg10[%c0_12, %c0_13], %18 {strides = array<i32>} : memref<16x32xf32, #tpu.memory_space<vmem>>, vector<16x32xf32>,
    %c0_i32_14 = arith.constant 0 : i32
    %20 = arith.cmpi eq, %arg1, %c0_i32_14 : i32
    %21 = arith.extui %20 : i1 to i32
    %c0_i32_15 = arith.constant 0 : i32
    %22 = arith.cmpi ne, %21, %c0_i32_15 : i32
    scf.if %22 {
      %c0_16 = arith.constant 0 : index
      %c0_17 = arith.constant 0 : index
      %23 = vector.load %arg10[%c0_16, %c0_17] : memref<16x32xf32, #tpu.memory_space<vmem>>, vector<16x32xf32>
      %c0_18 = arith.constant 0 : index
      %c0_19 = arith.constant 0 : index
      %24 = vector.load %arg6[%c0_18, %c0_19] : memref<1x32xf32, #tpu.memory_space<vmem>>, vector<1x32xf32>
      %25 = vector.broadcast %24 : vector<1x32xf32> to vector<16x32xf32>
      %26 = arith.addf %23, %25 : vector<16x32xf32>
      %c0_20 = arith.constant 0 : index
      %c0_21 = arith.constant 0 : index
      %27 = vector.load %arg2[%c0_20, %c0_21] : memref<16x32xf32, #tpu.memory_space<vmem>>, vector<16x32xf32>
      %28 = arith.addf %26, %27 : vector<16x32xf32>
      %cst_22 = arith.constant dense<0.000000e+00> : vector<16xf32>
      %29 = vector.multi_reduction <add>, %28, %cst_22 [1] : vector<16x32xf32> to vector<16xf32>
      %30 = vector.shape_cast %29 : vector<16xf32> to vector<16x1xf32>
      %cst_23 = arith.constant 3.200000e+01 : f32
      %31 = vector.broadcast %cst_23 : f32 to vector<16x1xf32>
      %32 = arith.divf %30, %31 : vector<16x1xf32>
      %33 = vector.broadcast %32 : vector<16x1xf32> to vector<16x32xf32>
      %34 = arith.subf %28, %33 : vector<16x32xf32>
      %35 = arith.mulf %34, %34 : vector<16x32xf32>
      %cst_24 = arith.constant dense<0.000000e+00> : vector<16xf32>
      %36 = vector.multi_reduction <add>, %35, %cst_24 [1] : vector<16x32xf32> to vector<16xf32>
      %37 = vector.shape_cast %36 : vector<16xf32> to vector<16x1xf32>
      %cst_25 = arith.constant 3.200000e+01 : f32
      %38 = vector.broadcast %cst_25 : f32 to vector<16x1xf32>
      %39 = arith.divf %37, %38 : vector<16x1xf32>
      %40 = vector.broadcast %32 : vector<16x1xf32> to vector<16x32xf32>
      %41 = arith.subf %28, %40 : vector<16x32xf32>
      %cst_26 = arith.constant 9.99999974E-6 : f32
      %42 = vector.broadcast %cst_26 : f32 to vector<16x1xf32>
      %43 = arith.addf %39, %42 : vector<16x1xf32>
      %44 = math.rsqrt %43 : vector<16x1xf32>
      %45 = vector.broadcast %44 : vector<16x1xf32> to vector<16x32xf32>
      %46 = arith.mulf %41, %45 : vector<16x32xf32>
      %c0_27 = arith.constant 0 : index
      %c0_28 = arith.constant 0 : index
      %47 = vector.load %arg7[%c0_27, %c0_28] : memref<1x32xf32, #tpu.memory_space<vmem>>, vector<1x32xf32>
      %48 = vector.broadcast %47 : vector<1x32xf32> to vector<16x32xf32>
      %49 = arith.mulf %46, %48 : vector<16x32xf32>
      %c0_29 = arith.constant 0 : index
      %c0_30 = arith.constant 0 : index
      %50 = vector.load %arg8[%c0_29, %c0_30] : memref<1x32xf32, #tpu.memory_space<vmem>>, vector<1x32xf32>
      %51 = vector.broadcast %50 : vector<1x32xf32> to vector<16x32xf32>
      %52 = arith.addf %49, %51 : vector<16x32xf32>
      %c0_31 = arith.constant 0 : index
      %c0_32 = arith.constant 0 : index
      %53 = vector.load %arg9[%c0_31, %c0_32] : memref<16x32xf32, #tpu.memory_space<vmem>>, vector<16x32xf32>
      tpu.vector_store %arg9[%c0_31, %c0_32], %52 {strides = array<i32>} : memref<16x32xf32, #tpu.memory_space<vmem>>, vector<16x32xf32>,
    } else {
    }
    return
  }
  func.func @transform_0(%arg0: i32, %arg1: i32) -> (i32, i32) {
    %c0_i32 = arith.constant 0 : i32
    %c0_i32_0 = arith.constant 0 : i32
    return %arg0, %c0_i32 : i32, i32
  }
  func.func @transform_1(%arg0: i32, %arg1: i32) -> (i32, i32) {
    %c0_i32 = arith.constant 0 : i32
    %c0_i32_0 = arith.constant 0 : i32
    return %c0_i32, %arg1 : i32, i32
  }
  func.func @transform_2(%arg0: i32, %arg1: i32) -> (i32, i32) {
    %c0_i32 = arith.constant 0 : i32
    %c0_i32_0 = arith.constant 0 : i32
    return %c0_i32, %arg1 : i32, i32
  }
  func.func @transform_3(%arg0: i32, %arg1: i32) -> (i32, i32) {
    %c0_i32 = arith.constant 0 : i32
    %c0_i32_0 = arith.constant 0 : i32
    return %arg1, %c0_i32 : i32, i32
  }
  func.func @transform_4(%arg0: i32, %arg1: i32) -> (i32, i32) {
    %c0_i32 = arith.constant 0 : i32
    %c0_i32_0 = arith.constant 0 : i32
    %c0_i32_1 = arith.constant 0 : i32
    return %c0_i32, %c0_i32_0 : i32, i32
  }
  func.func @transform_5(%arg0: i32, %arg1: i32) -> (i32, i32) {
    %c0_i32 = arith.constant 0 : i32
    %c0_i32_0 = arith.constant 0 : i32
    %c0_i32_1 = arith.constant 0 : i32
    return %c0_i32, %c0_i32_0 : i32, i32
  }
  func.func @transform_6(%arg0: i32, %arg1: i32) -> (i32, i32) {
    %c0_i32 = arith.constant 0 : i32
    %c0_i32_0 = arith.constant 0 : i32
    %c0_i32_1 = arith.constant 0 : i32
    return %c0_i32, %c0_i32_0 : i32, i32
  }
  func.func @transform_7(%arg0: i32, %arg1: i32) -> (i32, i32) {
    %c0_i32 = arith.constant 0 : i32
    %c0_i32_0 = arith.constant 0 : i32
    return %arg0, %c0_i32 : i32, i32
  }
}

module attributes {stable_mosaic.version = 11 : i64} {
  func.func @_linear_kernel_f32(%arg0: i32, %arg1: i32, %arg2: i32, %arg3: memref<16x32xf32, #tpu.memory_space<vmem>>, %arg4: memref<32x8xf32, #tpu.memory_space<vmem>>, %arg5: memref<1x8xf32, #tpu.memory_space<vmem>>, %arg6: memref<16x8xf32, #tpu.memory_space<vmem>>) attributes {dimension_semantics = [#tpu.dimension_semantics<parallel>, #tpu.dimension_semantics<parallel>, #tpu.dimension_semantics<arbitrary>], iteration_bounds = array<i64: 1, 1, 1>, scalar_prefetch = 0 : i64, scratch_operands = 0 : i64, tpu.core_type = #tpu.core_type<tc>, window_params = [{transform_indices = @transform_0, window_bounds = array<i64: 16, 32>}, {transform_indices = @transform_1, window_bounds = array<i64: 32, 8>}, {transform_indices = @transform_2, window_bounds = array<i64: 1, 8>}, {transform_indices = @transform_3, window_bounds = array<i64: 16, 8>}]} {
    %c0_i32 = arith.constant 0 : i32
    %0 = arith.cmpi eq, %arg2, %c0_i32 : i32
    %1 = arith.extui %0 : i1 to i32
    %c0_i32_0 = arith.constant 0 : i32
    %2 = arith.cmpi ne, %1, %c0_i32_0 : i32
    scf.if %2 {
      %cst_10 = arith.constant 0.000000e+00 : f32
      %14 = vector.broadcast %cst_10 : f32 to vector<16x8xf32>
      %c0_11 = arith.constant 0 : index
      %c0_12 = arith.constant 0 : index
      %15 = vector.load %arg6[%c0_11, %c0_12] : memref<16x8xf32, #tpu.memory_space<vmem>>, vector<16x8xf32>
      tpu.vector_store %arg6[%c0_11, %c0_12], %14 {strides = array<i32>} : memref<16x8xf32, #tpu.memory_space<vmem>>, vector<16x8xf32>,
    } else {
    }
    %c0 = arith.constant 0 : index
    %c0_1 = arith.constant 0 : index
    %3 = vector.load %arg6[%c0, %c0_1] : memref<16x8xf32, #tpu.memory_space<vmem>>, vector<16x8xf32>
    %c0_2 = arith.constant 0 : index
    %c0_3 = arith.constant 0 : index
    %4 = vector.load %arg3[%c0_2, %c0_3] : memref<16x32xf32, #tpu.memory_space<vmem>>, vector<16x32xf32>
    %5 = arith.truncf %4 : vector<16x32xf32> to vector<16x32xbf16>
    %c0_4 = arith.constant 0 : index
    %c0_5 = arith.constant 0 : index
    %6 = vector.load %arg4[%c0_4, %c0_5] : memref<32x8xf32, #tpu.memory_space<vmem>>, vector<32x8xf32>
    %7 = arith.truncf %6 : vector<32x8xf32> to vector<32x8xbf16>
    %cst = arith.constant dense<0.000000e+00> : vector<16x8xf32>
    %8 = tpu.matmul %5, %7, %cst {dimension_numbers = #tpu.dot_dimension_numbers<[1], [0], [0], [1], [0, 0, 1, 1], [], []>} : vector<16x32xbf16>, vector<32x8xbf16>, vector<16x8xf32> -> vector<16x8xf32>
    %9 = arith.addf %3, %8 : vector<16x8xf32>
    %c0_6 = arith.constant 0 : index
    %c0_7 = arith.constant 0 : index
    %10 = vector.load %arg6[%c0_6, %c0_7] : memref<16x8xf32, #tpu.memory_space<vmem>>, vector<16x8xf32>
    tpu.vector_store %arg6[%c0_6, %c0_7], %9 {strides = array<i32>} : memref<16x8xf32, #tpu.memory_space<vmem>>, vector<16x8xf32>,
    %c0_i32_8 = arith.constant 0 : i32
    %11 = arith.cmpi eq, %arg2, %c0_i32_8 : i32
    %12 = arith.extui %11 : i1 to i32
    %c0_i32_9 = arith.constant 0 : i32
    %13 = arith.cmpi ne, %12, %c0_i32_9 : i32
    scf.if %13 {
      %c0_10 = arith.constant 0 : index
      %c0_11 = arith.constant 0 : index
      %14 = vector.load %arg6[%c0_10, %c0_11] : memref<16x8xf32, #tpu.memory_space<vmem>>, vector<16x8xf32>
      %c0_12 = arith.constant 0 : index
      %c0_13 = arith.constant 0 : index
      %15 = vector.load %arg5[%c0_12, %c0_13] : memref<1x8xf32, #tpu.memory_space<vmem>>, vector<1x8xf32>
      %16 = vector.broadcast %15 : vector<1x8xf32> to vector<16x8xf32>
      %17 = arith.addf %14, %16 : vector<16x8xf32>
      %c0_14 = arith.constant 0 : index
      %c0_15 = arith.constant 0 : index
      %18 = vector.load %arg6[%c0_14, %c0_15] : memref<16x8xf32, #tpu.memory_space<vmem>>, vector<16x8xf32>
      tpu.vector_store %arg6[%c0_14, %c0_15], %17 {strides = array<i32>} : memref<16x8xf32, #tpu.memory_space<vmem>>, vector<16x8xf32>,
    } else {
    }
    return
  }
  func.func @transform_0(%arg0: i32, %arg1: i32, %arg2: i32) -> (i32, i32) {
    %c0_i32 = arith.constant 0 : i32
    return %arg0, %arg2 : i32, i32
  }
  func.func @transform_1(%arg0: i32, %arg1: i32, %arg2: i32) -> (i32, i32) {
    %c0_i32 = arith.constant 0 : i32
    return %arg2, %arg1 : i32, i32
  }
  func.func @transform_2(%arg0: i32, %arg1: i32, %arg2: i32) -> (i32, i32) {
    %c0_i32 = arith.constant 0 : i32
    %c0_i32_0 = arith.constant 0 : i32
    return %c0_i32, %arg1 : i32, i32
  }
  func.func @transform_3(%arg0: i32, %arg1: i32, %arg2: i32) -> (i32, i32) {
    %c0_i32 = arith.constant 0 : i32
    return %arg0, %arg1 : i32, i32
  }
}

module attributes {stable_mosaic.version = 11 : i64} {
  func.func @_viterbi_kernel(%arg0: i32, %arg1: memref<8x2x128xf32, #tpu.memory_space<vmem>>, %arg2: memref<8x2x1xi32, #tpu.memory_space<vmem>>, %arg3: memref<8x128xf32, #tpu.memory_space<vmem>>, %arg4: memref<8x2x128xi32, #tpu.memory_space<vmem>>, %arg5: memref<2x1xi32, #tpu.memory_space<vmem>>) attributes {dimension_semantics = [#tpu.dimension_semantics<arbitrary>], iteration_bounds = array<i64: 1>, scalar_prefetch = 0 : i64, scratch_operands = 0 : i64, tpu.core_type = #tpu.core_type<tc>, window_params = [{pipeline_mode = #tpu.pipeline_mode<synchronous>, transform_indices = @transform_0, window_bounds = array<i64: 8, 2, 128>}, {pipeline_mode = #tpu.pipeline_mode<synchronous>, transform_indices = @transform_1, window_bounds = array<i64: 8, 2, 1>}, {pipeline_mode = #tpu.pipeline_mode<synchronous>, transform_indices = @transform_2, window_bounds = array<i64: 8, 128>}, {pipeline_mode = #tpu.pipeline_mode<synchronous>, transform_indices = @transform_3, window_bounds = array<i64: 8, 2, 128>}, {pipeline_mode = #tpu.pipeline_mode<synchronous>, transform_indices = @transform_4, window_bounds = array<i64: 2, 1>}]} {
    %c0 = arith.constant 0 : index
    %c0_0 = arith.constant 0 : index
    %c0_1 = arith.constant 0 : index
    %0 = vector.load %arg2[%c0, %c0_0, %c0_1] : memref<8x2x1xi32, #tpu.memory_space<vmem>>, vector<8x2x1xi32>
    %cst = arith.constant dense<0> : vector<2x1xi32>
    %1 = vector.multi_reduction <add>, %0, %cst [0] : vector<8x2x1xi32> to vector<2x1xi32>
    %c0_2 = arith.constant 0 : index
    %c0_3 = arith.constant 0 : index
    %2 = vector.load %arg3[%c0_2, %c0_3] : memref<8x128xf32, #tpu.memory_space<vmem>>, vector<8x128xf32>
    %c0_i32 = arith.constant 0 : i32
    %3 = vector.broadcast %c0_i32 : i32 to vector<8x2x128xi32>
    %c0_4 = arith.constant 0 : index
    %c0_5 = arith.constant 0 : index
    %c0_6 = arith.constant 0 : index
    %4 = vector.load %arg4[%c0_4, %c0_5, %c0_6] : memref<8x2x128xi32, #tpu.memory_space<vmem>>, vector<8x2x128xi32>
    tpu.vector_store %arg4[%c0_4, %c0_5, %c0_6], %3 {strides = array<i32>} : memref<8x2x128xi32, #tpu.memory_space<vmem>>, vector<8x2x128xi32>,
    %c0_7 = arith.constant 0 : index
    %c0_8 = arith.constant 0 : index
    %c0_9 = arith.constant 0 : index
    %5 = vector.load %arg1[%c0_7, %c0_8, %c0_9] : memref<8x2x128xf32, #tpu.memory_space<vmem>>, vector<1x2x128xf32>
    %6 = vector.shape_cast %5 : vector<1x2x128xf32> to vector<2x128xf32>
    %7 = vector.extract_strided_slice %2 {offsets = [6, 0], sizes = [1, 128], strides = [1, 1]} : vector<8x128xf32> to vector<1x128xf32>
    %8 = vector.broadcast %7 : vector<1x128xf32> to vector<2x128xf32>
    %9 = arith.addf %6, %8 : vector<2x128xf32>
    %c1_i32 = arith.constant 1 : i32
    %c7_i32 = arith.constant 7 : i32
    %10 = arith.addi %c1_i32, %c7_i32 : i32
    %c1_i32_10 = arith.constant 1 : i32
    %11:2 = scf.for %arg6 = %c1_i32 to %10 step %c1_i32_10 iter_args(%arg7 = %9, %arg8 = %9) -> (vector<2x128xf32>, vector<2x128xf32>)  : i32 {
      %83 = arith.index_cast %arg6 : i32 to index
      %c0_20 = arith.constant 0 : index
      %c0_21 = arith.constant 0 : index
      %84 = vector.load %arg1[%83, %c0_20, %c0_21] : memref<8x2x128xf32, #tpu.memory_space<vmem>>, vector<1x2x128xf32>
      %85 = vector.shape_cast %84 : vector<1x2x128xf32> to vector<2x128xf32>
      %86 = vector.extract_strided_slice %arg7 {offsets = [0, 0], sizes = [2, 1], strides = [1, 1]} : vector<2x128xf32> to vector<2x1xf32>
      %87 = vector.extract_strided_slice %2 {offsets = [0, 0], sizes = [1, 128], strides = [1, 1]} : vector<8x128xf32> to vector<1x128xf32>
      %88 = vector.broadcast %86 : vector<2x1xf32> to vector<2x128xf32>
      %89 = vector.broadcast %87 : vector<1x128xf32> to vector<2x128xf32>
      %90 = arith.addf %88, %89 : vector<2x128xf32>
      %c0_i32_22 = arith.constant 0 : i32
      %91 = vector.broadcast %c0_i32_22 : i32 to vector<2x128xi32>
      %92 = vector.extract_strided_slice %arg7 {offsets = [0, 1], sizes = [2, 1], strides = [1, 1]} : vector<2x128xf32> to vector<2x1xf32>
      %93 = vector.extract_strided_slice %2 {offsets = [1, 0], sizes = [1, 128], strides = [1, 1]} : vector<8x128xf32> to vector<1x128xf32>
      %94 = vector.broadcast %92 : vector<2x1xf32> to vector<2x128xf32>
      %95 = vector.broadcast %93 : vector<1x128xf32> to vector<2x128xf32>
      %96 = arith.addf %94, %95 : vector<2x128xf32>
      %97 = arith.cmpf ogt, %96, %90 : vector<2x128xf32>
      %98 = arith.select %97, %96, %90 : vector<2x128xi1>, vector<2x128xf32>
      %c1_i32_23 = arith.constant 1 : i32
      %99 = vector.broadcast %c1_i32_23 : i32 to vector<2x128xi32>
      %100 = arith.select %97, %99, %91 : vector<2x128xi1>, vector<2x128xi32>
      %101 = vector.extract_strided_slice %arg7 {offsets = [0, 2], sizes = [2, 1], strides = [1, 1]} : vector<2x128xf32> to vector<2x1xf32>
      %102 = vector.extract_strided_slice %2 {offsets = [2, 0], sizes = [1, 128], strides = [1, 1]} : vector<8x128xf32> to vector<1x128xf32>
      %103 = vector.broadcast %101 : vector<2x1xf32> to vector<2x128xf32>
      %104 = vector.broadcast %102 : vector<1x128xf32> to vector<2x128xf32>
      %105 = arith.addf %103, %104 : vector<2x128xf32>
      %106 = arith.cmpf ogt, %105, %98 : vector<2x128xf32>
      %107 = arith.select %106, %105, %98 : vector<2x128xi1>, vector<2x128xf32>
      %c2_i32_24 = arith.constant 2 : i32
      %108 = vector.broadcast %c2_i32_24 : i32 to vector<2x128xi32>
      %109 = arith.select %106, %108, %100 : vector<2x128xi1>, vector<2x128xi32>
      %110 = vector.extract_strided_slice %arg7 {offsets = [0, 3], sizes = [2, 1], strides = [1, 1]} : vector<2x128xf32> to vector<2x1xf32>
      %111 = vector.extract_strided_slice %2 {offsets = [3, 0], sizes = [1, 128], strides = [1, 1]} : vector<8x128xf32> to vector<1x128xf32>
      %112 = vector.broadcast %110 : vector<2x1xf32> to vector<2x128xf32>
      %113 = vector.broadcast %111 : vector<1x128xf32> to vector<2x128xf32>
      %114 = arith.addf %112, %113 : vector<2x128xf32>
      %115 = arith.cmpf ogt, %114, %107 : vector<2x128xf32>
      %116 = arith.select %115, %114, %107 : vector<2x128xi1>, vector<2x128xf32>
      %c3_i32_25 = arith.constant 3 : i32
      %117 = vector.broadcast %c3_i32_25 : i32 to vector<2x128xi32>
      %118 = arith.select %115, %117, %109 : vector<2x128xi1>, vector<2x128xi32>
      %119 = vector.extract_strided_slice %arg7 {offsets = [0, 4], sizes = [2, 1], strides = [1, 1]} : vector<2x128xf32> to vector<2x1xf32>
      %120 = vector.extract_strided_slice %2 {offsets = [4, 0], sizes = [1, 128], strides = [1, 1]} : vector<8x128xf32> to vector<1x128xf32>
      %121 = vector.broadcast %119 : vector<2x1xf32> to vector<2x128xf32>
      %122 = vector.broadcast %120 : vector<1x128xf32> to vector<2x128xf32>
      %123 = arith.addf %121, %122 : vector<2x128xf32>
      %124 = arith.cmpf ogt, %123, %116 : vector<2x128xf32>
      %125 = arith.select %124, %123, %116 : vector<2x128xi1>, vector<2x128xf32>
      %c4_i32_26 = arith.constant 4 : i32
      %126 = vector.broadcast %c4_i32_26 : i32 to vector<2x128xi32>
      %127 = arith.select %124, %126, %118 : vector<2x128xi1>, vector<2x128xi32>
      %128 = vector.extract_strided_slice %arg7 {offsets = [0, 5], sizes = [2, 1], strides = [1, 1]} : vector<2x128xf32> to vector<2x1xf32>
      %129 = vector.extract_strided_slice %2 {offsets = [5, 0], sizes = [1, 128], strides = [1, 1]} : vector<8x128xf32> to vector<1x128xf32>
      %130 = vector.broadcast %128 : vector<2x1xf32> to vector<2x128xf32>
      %131 = vector.broadcast %129 : vector<1x128xf32> to vector<2x128xf32>
      %132 = arith.addf %130, %131 : vector<2x128xf32>
      %133 = arith.cmpf ogt, %132, %125 : vector<2x128xf32>
      %134 = arith.select %133, %132, %125 : vector<2x128xi1>, vector<2x128xf32>
      %c5_i32_27 = arith.constant 5 : i32
      %135 = vector.broadcast %c5_i32_27 : i32 to vector<2x128xi32>
      %136 = arith.select %133, %135, %127 : vector<2x128xi1>, vector<2x128xi32>
      %137 = vector.extract_strided_slice %arg7 {offsets = [0, 6], sizes = [2, 1], strides = [1, 1]} : vector<2x128xf32> to vector<2x1xf32>
      %138 = vector.extract_strided_slice %2 {offsets = [6, 0], sizes = [1, 128], strides = [1, 1]} : vector<8x128xf32> to vector<1x128xf32>
      %139 = vector.broadcast %137 : vector<2x1xf32> to vector<2x128xf32>
      %140 = vector.broadcast %138 : vector<1x128xf32> to vector<2x128xf32>
      %141 = arith.addf %139, %140 : vector<2x128xf32>
      %142 = arith.cmpf ogt, %141, %134 : vector<2x128xf32>
      %143 = arith.select %142, %141, %134 : vector<2x128xi1>, vector<2x128xf32>
      %c6_i32_28 = arith.constant 6 : i32
      %144 = vector.broadcast %c6_i32_28 : i32 to vector<2x128xi32>
      %145 = arith.select %142, %144, %136 : vector<2x128xi1>, vector<2x128xi32>
      %146 = vector.extract_strided_slice %arg7 {offsets = [0, 7], sizes = [2, 1], strides = [1, 1]} : vector<2x128xf32> to vector<2x1xf32>
      %147 = vector.extract_strided_slice %2 {offsets = [7, 0], sizes = [1, 128], strides = [1, 1]} : vector<8x128xf32> to vector<1x128xf32>
      %148 = vector.broadcast %146 : vector<2x1xf32> to vector<2x128xf32>
      %149 = vector.broadcast %147 : vector<1x128xf32> to vector<2x128xf32>
      %150 = arith.addf %148, %149 : vector<2x128xf32>
      %151 = arith.cmpf ogt, %150, %143 : vector<2x128xf32>
      %152 = arith.select %151, %150, %143 : vector<2x128xi1>, vector<2x128xf32>
      %c7_i32_29 = arith.constant 7 : i32
      %153 = vector.broadcast %c7_i32_29 : i32 to vector<2x128xi32>
      %154 = arith.select %151, %153, %145 : vector<2x128xi1>, vector<2x128xi32>
      %155 = arith.addf %152, %85 : vector<2x128xf32>
      %156 = arith.index_cast %arg6 : i32 to index
      %c0_30 = arith.constant 0 : index
      %c0_31 = arith.constant 0 : index
      %157 = vector.load %arg2[%156, %c0_30, %c0_31] : memref<8x2x1xi32, #tpu.memory_space<vmem>>, vector<1x2x1xi32>
      %158 = vector.shape_cast %157 : vector<1x2x1xi32> to vector<2x1xi32>
      %c0_i32_32 = arith.constant 0 : i32
      %159 = vector.broadcast %c0_i32_32 : i32 to vector<2x1xi32>
      %160 = arith.cmpi ne, %158, %159 : vector<2x1xi32>
      %c0_i32_33 = arith.constant 0 : i32
      %161 = vector.shape_cast %160 : vector<2x1xi1> to vector<2x1xi1>
      %162 = vector.broadcast %161 : vector<2x1xi1> to vector<2x128xi1>
      %163 = vector.broadcast %c0_i32_33 : i32 to vector<2x128xi32>
      %164 = arith.select %162, %154, %163 : vector<2x128xi1>, vector<2x128xi32>
      %165 = vector.shape_cast %164 : vector<2x128xi32> to vector<1x2x128xi32>
      %c1_i32_34 = arith.constant 1 : i32
      %166 = arith.subi %arg6, %c1_i32_34 : i32
      %167 = arith.index_cast %166 : i32 to index
      %c0_35 = arith.constant 0 : index
      %c0_36 = arith.constant 0 : index
      %168 = vector.load %arg4[%167, %c0_35, %c0_36] : memref<8x2x128xi32, #tpu.memory_space<vmem>>, vector<1x2x128xi32>
      tpu.vector_store %arg4[%167, %c0_35, %c0_36], %165 {strides = array<i32>} : memref<8x2x128xi32, #tpu.memory_space<vmem>>, vector<1x2x128xi32>,
      %c1_i32_37 = arith.constant 1 : i32
      %169 = arith.addi %arg6, %c1_i32_37 : i32
      %170 = vector.broadcast %169 : i32 to vector<2x1xi32>
      %171 = arith.cmpi eq, %1, %170 : vector<2x1xi32>
      %172 = vector.shape_cast %171 : vector<2x1xi1> to vector<2x1xi1>
      %173 = vector.broadcast %172 : vector<2x1xi1> to vector<2x128xi1>
      %174 = arith.select %173, %155, %arg8 : vector<2x128xi1>, vector<2x128xf32>
      scf.yield %155, %174 : vector<2x128xf32>, vector<2x128xf32>
    }
    %c7_i32_11 = arith.constant 7 : i32
    %12 = vector.extract_strided_slice %11#1 {offsets = [0, 0], sizes = [2, 1], strides = [1, 1]} : vector<2x128xf32> to vector<2x1xf32>
    %13 = vector.extract_strided_slice %2 {offsets = [0, 0], sizes = [1, 128], strides = [1, 1]} : vector<8x128xf32> to vector<1x128xf32>
    %14 = vector.broadcast %12 : vector<2x1xf32> to vector<2x128xf32>
    %15 = vector.broadcast %13 : vector<1x128xf32> to vector<2x128xf32>
    %16 = arith.addf %14, %15 : vector<2x128xf32>
    %c0_i32_12 = arith.constant 0 : i32
    %17 = vector.broadcast %c0_i32_12 : i32 to vector<2x128xi32>
    %18 = vector.extract_strided_slice %11#1 {offsets = [0, 1], sizes = [2, 1], strides = [1, 1]} : vector<2x128xf32> to vector<2x1xf32>
    %19 = vector.extract_strided_slice %2 {offsets = [1, 0], sizes = [1, 128], strides = [1, 1]} : vector<8x128xf32> to vector<1x128xf32>
    %20 = vector.broadcast %18 : vector<2x1xf32> to vector<2x128xf32>
    %21 = vector.broadcast %19 : vector<1x128xf32> to vector<2x128xf32>
    %22 = arith.addf %20, %21 : vector<2x128xf32>
    %23 = arith.cmpf ogt, %22, %16 : vector<2x128xf32>
    %24 = arith.select %23, %22, %16 : vector<2x128xi1>, vector<2x128xf32>
    %c1_i32_13 = arith.constant 1 : i32
    %25 = vector.broadcast %c1_i32_13 : i32 to vector<2x128xi32>
    %26 = arith.select %23, %25, %17 : vector<2x128xi1>, vector<2x128xi32>
    %27 = vector.extract_strided_slice %11#1 {offsets = [0, 2], sizes = [2, 1], strides = [1, 1]} : vector<2x128xf32> to vector<2x1xf32>
    %28 = vector.extract_strided_slice %2 {offsets = [2, 0], sizes = [1, 128], strides = [1, 1]} : vector<8x128xf32> to vector<1x128xf32>
    %29 = vector.broadcast %27 : vector<2x1xf32> to vector<2x128xf32>
    %30 = vector.broadcast %28 : vector<1x128xf32> to vector<2x128xf32>
    %31 = arith.addf %29, %30 : vector<2x128xf32>
    %32 = arith.cmpf ogt, %31, %24 : vector<2x128xf32>
    %33 = arith.select %32, %31, %24 : vector<2x128xi1>, vector<2x128xf32>
    %c2_i32 = arith.constant 2 : i32
    %34 = vector.broadcast %c2_i32 : i32 to vector<2x128xi32>
    %35 = arith.select %32, %34, %26 : vector<2x128xi1>, vector<2x128xi32>
    %36 = vector.extract_strided_slice %11#1 {offsets = [0, 3], sizes = [2, 1], strides = [1, 1]} : vector<2x128xf32> to vector<2x1xf32>
    %37 = vector.extract_strided_slice %2 {offsets = [3, 0], sizes = [1, 128], strides = [1, 1]} : vector<8x128xf32> to vector<1x128xf32>
    %38 = vector.broadcast %36 : vector<2x1xf32> to vector<2x128xf32>
    %39 = vector.broadcast %37 : vector<1x128xf32> to vector<2x128xf32>
    %40 = arith.addf %38, %39 : vector<2x128xf32>
    %41 = arith.cmpf ogt, %40, %33 : vector<2x128xf32>
    %42 = arith.select %41, %40, %33 : vector<2x128xi1>, vector<2x128xf32>
    %c3_i32 = arith.constant 3 : i32
    %43 = vector.broadcast %c3_i32 : i32 to vector<2x128xi32>
    %44 = arith.select %41, %43, %35 : vector<2x128xi1>, vector<2x128xi32>
    %45 = vector.extract_strided_slice %11#1 {offsets = [0, 4], sizes = [2, 1], strides = [1, 1]} : vector<2x128xf32> to vector<2x1xf32>
    %46 = vector.extract_strided_slice %2 {offsets = [4, 0], sizes = [1, 128], strides = [1, 1]} : vector<8x128xf32> to vector<1x128xf32>
    %47 = vector.broadcast %45 : vector<2x1xf32> to vector<2x128xf32>
    %48 = vector.broadcast %46 : vector<1x128xf32> to vector<2x128xf32>
    %49 = arith.addf %47, %48 : vector<2x128xf32>
    %50 = arith.cmpf ogt, %49, %42 : vector<2x128xf32>
    %51 = arith.select %50, %49, %42 : vector<2x128xi1>, vector<2x128xf32>
    %c4_i32 = arith.constant 4 : i32
    %52 = vector.broadcast %c4_i32 : i32 to vector<2x128xi32>
    %53 = arith.select %50, %52, %44 : vector<2x128xi1>, vector<2x128xi32>
    %54 = vector.extract_strided_slice %11#1 {offsets = [0, 5], sizes = [2, 1], strides = [1, 1]} : vector<2x128xf32> to vector<2x1xf32>
    %55 = vector.extract_strided_slice %2 {offsets = [5, 0], sizes = [1, 128], strides = [1, 1]} : vector<8x128xf32> to vector<1x128xf32>
    %56 = vector.broadcast %54 : vector<2x1xf32> to vector<2x128xf32>
    %57 = vector.broadcast %55 : vector<1x128xf32> to vector<2x128xf32>
    %58 = arith.addf %56, %57 : vector<2x128xf32>
    %59 = arith.cmpf ogt, %58, %51 : vector<2x128xf32>
    %60 = arith.select %59, %58, %51 : vector<2x128xi1>, vector<2x128xf32>
    %c5_i32 = arith.constant 5 : i32
    %61 = vector.broadcast %c5_i32 : i32 to vector<2x128xi32>
    %62 = arith.select %59, %61, %53 : vector<2x128xi1>, vector<2x128xi32>
    %63 = vector.extract_strided_slice %11#1 {offsets = [0, 6], sizes = [2, 1], strides = [1, 1]} : vector<2x128xf32> to vector<2x1xf32>
    %64 = vector.extract_strided_slice %2 {offsets = [6, 0], sizes = [1, 128], strides = [1, 1]} : vector<8x128xf32> to vector<1x128xf32>
    %65 = vector.broadcast %63 : vector<2x1xf32> to vector<2x128xf32>
    %66 = vector.broadcast %64 : vector<1x128xf32> to vector<2x128xf32>
    %67 = arith.addf %65, %66 : vector<2x128xf32>
    %68 = arith.cmpf ogt, %67, %60 : vector<2x128xf32>
    %69 = arith.select %68, %67, %60 : vector<2x128xi1>, vector<2x128xf32>
    %c6_i32 = arith.constant 6 : i32
    %70 = vector.broadcast %c6_i32 : i32 to vector<2x128xi32>
    %71 = arith.select %68, %70, %62 : vector<2x128xi1>, vector<2x128xi32>
    %72 = vector.extract_strided_slice %11#1 {offsets = [0, 7], sizes = [2, 1], strides = [1, 1]} : vector<2x128xf32> to vector<2x1xf32>
    %73 = vector.extract_strided_slice %2 {offsets = [7, 0], sizes = [1, 128], strides = [1, 1]} : vector<8x128xf32> to vector<1x128xf32>
    %74 = vector.broadcast %72 : vector<2x1xf32> to vector<2x128xf32>
    %75 = vector.broadcast %73 : vector<1x128xf32> to vector<2x128xf32>
    %76 = arith.addf %74, %75 : vector<2x128xf32>
    %77 = arith.cmpf ogt, %76, %69 : vector<2x128xf32>
    %c7_i32_14 = arith.constant 7 : i32
    %78 = vector.broadcast %c7_i32_14 : i32 to vector<2x128xi32>
    %79 = arith.select %77, %78, %71 : vector<2x128xi1>, vector<2x128xi32>
    %80 = vector.extract_strided_slice %79 {offsets = [0, 7], sizes = [2, 1], strides = [1, 1]} : vector<2x128xi32> to vector<2x1xi32>
    %c0_15 = arith.constant 0 : index
    %c0_16 = arith.constant 0 : index
    %81 = vector.load %arg5[%c0_15, %c0_16] : memref<2x1xi32, #tpu.memory_space<vmem>>, vector<2x1xi32>
    tpu.vector_store %arg5[%c0_15, %c0_16], %80 {strides = array<i32>} : memref<2x1xi32, #tpu.memory_space<vmem>>, vector<2x1xi32>,
    %c0_i32_17 = arith.constant 0 : i32
    %c8_i32 = arith.constant 8 : i32
    %82 = arith.addi %c0_i32_17, %c8_i32 : i32
    %c1_i32_18 = arith.constant 1 : i32
    scf.for %arg6 = %c0_i32_17 to %82 step %c1_i32_18  : i32 {
      %83 = arith.index_cast %arg6 : i32 to index
      %c0_20 = arith.constant 0 : index
      %c0_21 = arith.constant 0 : index
      %84 = vector.load %arg4[%83, %c0_20, %c0_21] : memref<8x2x128xi32, #tpu.memory_space<vmem>>, vector<1x2x128xi32>
      %85 = vector.shape_cast %84 : vector<1x2x128xi32> to vector<2x128xi32>
      %c1_i32_22 = arith.constant 1 : i32
      %86 = vector.broadcast %c1_i32_22 : i32 to vector<2x1xi32>
      %87 = arith.subi %1, %86 : vector<2x1xi32>
      %88 = vector.broadcast %arg6 : i32 to vector<2x1xi32>
      %89 = arith.cmpi eq, %87, %88 : vector<2x1xi32>
      %90 = vector.shape_cast %89 : vector<2x1xi1> to vector<2x1xi1>
      %91 = vector.broadcast %90 : vector<2x1xi1> to vector<2x128xi1>
      %92 = vector.shape_cast %80 : vector<2x1xi32> to vector<2x1xi32>
      %93 = vector.broadcast %92 : vector<2x1xi32> to vector<2x128xi32>
      %94 = arith.select %91, %93, %85 : vector<2x128xi1>, vector<2x128xi32>
      %95 = vector.shape_cast %94 : vector<2x128xi32> to vector<1x2x128xi32>
      %96 = arith.index_cast %arg6 : i32 to index
      %c0_23 = arith.constant 0 : index
      %c0_24 = arith.constant 0 : index
      %97 = vector.load %arg4[%96, %c0_23, %c0_24] : memref<8x2x128xi32, #tpu.memory_space<vmem>>, vector<1x2x128xi32>
      tpu.vector_store %arg4[%96, %c0_23, %c0_24], %95 {strides = array<i32>} : memref<8x2x128xi32, #tpu.memory_space<vmem>>, vector<1x2x128xi32>,
    }
    %c8_i32_19 = arith.constant 8 : i32
    return
  }
  func.func @transform_0(%arg0: i32) -> (i32, i32, i32) {
    %c0_i32 = arith.constant 0 : i32
    %c0_i32_0 = arith.constant 0 : i32
    %c0_i32_1 = arith.constant 0 : i32
    %c0_i32_2 = arith.constant 0 : i32
    return %c0_i32, %c0_i32_0, %c0_i32_1 : i32, i32, i32
  }
  func.func @transform_1(%arg0: i32) -> (i32, i32, i32) {
    %c0_i32 = arith.constant 0 : i32
    %c0_i32_0 = arith.constant 0 : i32
    %c0_i32_1 = arith.constant 0 : i32
    %c0_i32_2 = arith.constant 0 : i32
    return %c0_i32, %c0_i32_0, %c0_i32_1 : i32, i32, i32
  }
  func.func @transform_2(%arg0: i32) -> (i32, i32) {
    %c0_i32 = arith.constant 0 : i32
    %c0_i32_0 = arith.constant 0 : i32
    %c0_i32_1 = arith.constant 0 : i32
    return %c0_i32, %c0_i32_0 : i32, i32
  }
  func.func @transform_3(%arg0: i32) -> (i32, i32, i32) {
    %c0_i32 = arith.constant 0 : i32
    %c0_i32_0 = arith.constant 0 : i32
    %c0_i32_1 = arith.constant 0 : i32
    %c0_i32_2 = arith.constant 0 : i32
    return %c0_i32, %c0_i32_0, %c0_i32_1 : i32, i32, i32
  }
  func.func @transform_4(%arg0: i32) -> (i32, i32) {
    %c0_i32 = arith.constant 0 : i32
    %c0_i32_0 = arith.constant 0 : i32
    %c0_i32_1 = arith.constant 0 : i32
    return %c0_i32, %c0_i32_0 : i32, i32
  }
}

</mosaic_0001>

<bundles_post_ra>
// kernel: tener_forward.9
= control target key start
LH: loop header
LB: loop body
LE: loop exit
PB: predicated region body
PF: predicated region fallthrough
CT: control target
= control target key end

     0   :  { %vm19_vm0 = vcmask 261120   ;;  %v73_v3 = vmov 0.0   ;;  %vm30_vm1 = vcmask 130048   ;;  %s145_s1 = inlined_call_operand.vmem [shape: f32[16,32], index: 1, kind: input, shape index: {}]   ;;  %s146_s0 = inlined_call_operand.vmem [shape: f32[16,16], index: 0, kind: input, shape index: {}]   ;;  %s147_s3 = inlined_call_operand.vmem [shape: f32[16,32], index: 3, kind: output, shape index: {}]   ;;  %s148_s2 = inlined_call_operand.vmem [shape: f32[1,32], index: 2, kind: input, shape index: {}]  }
   0x1   :  { %v27_v0 = vld [vmem:[%s145_s1] sm:$0xff]  ;;  %v28_v1 = vld [vmem:[%s145_s1 + $0x8] sm:$0xff]  ;;  %20 = vst.msk [vmem:[%s147_s3] sm:$0xff] %vm19_vm0, %v73_v3 }
   0x2   :  { %v24_v2 = vld [vmem:[%s146_s0] sm:$0xff]  ;;  %v29_v4 = vpack.c.bf16 %v28_v1, %v27_v0  ;;  %v25_v5 = vld [vmem:[%s146_s0 + $0x8] sm:$0xff]  ;;  %21 = vst.msk [vmem:[%s147_s3 + $0x8] sm:$0xff] %vm19_vm0, %v73_v3 }
   0x3   :  { %v26_v6 = vpack.c.bf16 %v25_v5, %v24_v2  ;;  %v72_v11 = vld [vmem:[%s148_s2] ss:$0 sm:$0xff] }
   0x4   :  { %41 = vmatpush.bf16.msra.mxu0 %v29_v4 }
   0x7   :  { %70 = vmatmul.msk.bf16.vlgmr.msra.gmra.mxu0 %vm30_vm1, %v26_v6 }
   0x8   :  { %v22_v7 = vld [vmem:[%s147_s3] sm:$0xff] }
   0x9   :  { %v23_v10 = vld [vmem:[%s147_s3 + $0x8] sm:$0xff] }
  0x84   :  { %v43_v8 = vpop.f32.mrf.mxu0 }
  0x85   :  { %v48_v9 = vadd.f32 %v43_v8, %v22_v7 }
  0x87   :  { %51 = vst.msk [vmem:[%s147_s3] sm:$0xff] %vm19_vm0, %v48_v9 }
  0x8c   :  { %v45_v12 = vpop.f32.mrf.mxu0 }
  0x8d   :  { %v49_v13 = vadd.f32 %v45_v12, %v23_v10 }
  0x8e   :  { %v56_v14 = vld [vmem:[%s147_s3] sm:$0xff] }
  0x8f   :  { %v62_v15 = vadd.f32 %v72_v11, %v56_v14  ;;  %52 = vst.msk [vmem:[%s147_s3 + $0x8] sm:$0xff] %vm19_vm0, %v49_v13 }
  0x91   :  { %64 = vst.msk [vmem:[%s147_s3] sm:$0xff] %vm19_vm0, %v62_v15 }
  0x96   :  { %v57_v16 = vld [vmem:[%s147_s3 + $0x8] sm:$0xff] }
  0x97   :  { %v63_v17 = vadd.f32 %v72_v11, %v57_v16 }
  0x99   :  { %65 = vst.msk [vmem:[%s147_s3 + $0x8] sm:$0xff] %vm19_vm0, %v63_v17 }

// kernel: tener_forward.10
= control target key start
LH: loop header
LB: loop body
LE: loop exit
PB: predicated region body
PF: predicated region fallthrough
CT: control target
= control target key end

     0   :  { %vm19_vm0 = vcmask 523264   ;;  %v79_v3 = vmov 0.0   ;;  %vm33_vm1 = vcmask 261120   ;;  %vm69_vm2 = vcmask 519168   ;;  %s131_s1 = inlined_call_operand.vmem [shape: f32[32,64], index: 1, kind: input, shape index: {}]   ;;  %s132_s0 = inlined_call_operand.vmem [shape: f32[16,32], index: 0, kind: input, shape index: {}]   ;;  %s133_s2 = inlined_call_operand.vmem [shape: f32[1,64], index: 2, kind: input, shape index: {}]   ;;  %s134_s3 = inlined_call_operand.vmem [shape: bf16[16,64], index: 3, kind: output, shape index: {}]  }
   0x1   :  { %v29_v0 = vld [vmem:[%s131_s1 + $0x10] sm:$0xff]  ;;  %v30_v1 = vld [vmem:[%s131_s1 + $0x18] sm:$0xff]  ;;  %v27_v2 = vld [vmem:[%s131_s1] sm:$0xff]  ;;  %20 = vst.msk [vmem:[#allocation2] sm:$0xff] %vm19_vm0, %v79_v3 }
   0x2   :  { %v32_v4 = vpack.c.bf16 %v30_v1, %v29_v0  ;;  %v28_v5 = vld [vmem:[%s131_s1 + $0x8] sm:$0xff]  ;;  %21 = vst.msk [vmem:[#allocation2 + $0x8] sm:$0xff] %vm19_vm0, %v79_v3  ;;  %v24_v7 = vld [vmem:[%s132_s0] sm:$0xff] }
   0x3   :  { %v31_v6 = vpack.c.bf16 %v28_v5, %v27_v2  ;;  %v25_v8 = vld [vmem:[%s132_s0 + $0x8] sm:$0xff]  ;;  %v78_v14 = vld [vmem:[%s133_s2] ss:$0 sm:$0xff] }
   0x4   :  { %43 = vmatpush.bf16.msra.mxu0 %v32_v4  ;;  %v26_v9 = vpack.c.bf16 %v25_v8, %v24_v7 }
   0x8   :  { %44 = vmatpush.bf16.msra.mxu0 %v31_v6  ;;  %v22_v10 = vld [vmem:[#allocation2] sm:$0xff] }
   0x9   :  { %v23_v13 = vld [vmem:[#allocation2 + $0x8] sm:$0xff] }
   0xb   :  { %76 = vmatmul.msk.bf16.vlgmr.msra.gmra.mxu0 %vm33_vm1, %v26_v9 }
  0x88   :  { %v46_v11 = vpop.f32.mrf.mxu0 }
  0x89   :  { %v51_v12 = vadd.f32 %v46_v11, %v22_v10 }
  0x8b   :  { %54 = vst.msk [vmem:[#allocation2] sm:$0xff] %vm19_vm0, %v51_v12 }
  0x90   :  { %v48_v15 = vpop.f32.mrf.mxu0 }
  0x91   :  { %v52_v16 = vadd.f32 %v48_v15, %v23_v13 }
  0x92   :  { %v59_v17 = vld [vmem:[#allocation2] sm:$0xff] }
  0x93   :  { %v65_v18 = vadd.f32 %v78_v14, %v59_v17  ;;  %55 = vst.msk [vmem:[#allocation2 + $0x8] sm:$0xff] %vm19_vm0, %v52_v16 }
  0x95   :  { %v67_v19 = vpack.c.bf16 %v65_v18, %v65_v18 }
  0x97   :  { %70 = vst.msk [vmem:[%s134_s3] sm:$0xf] %vm69_vm2, %v67_v19 }
  0x9a   :  { %v60_v20 = vld [vmem:[#allocation2 + $0x8] sm:$0xff] }
  0x9b   :  { %v66_v21 = vadd.f32 %v78_v14, %v60_v20 }
  0x9d   :  { %v68_v22 = vpack.c.bf16 %v66_v21, %v66_v21 }
  0x9f   :  { %71 = vst.msk [vmem:[%s134_s3 + $0x4] sm:$0xf] %vm69_vm2, %v68_v22 }

// kernel: tener_forward.12
= control target key start
LH: loop header
LB: loop body
LE: loop exit
PB: predicated region body
PF: predicated region fallthrough
CT: control target
= control target key end

     0   :  { %vm31_vm0 = vcmask 261120   ;;  %v202_v21 = vmov 0.0   ;;  %vm82_vm1 = vcmask 523264   ;;  %v203_v45 = vmov 32.0   ;;  %s315_s1 = inlined_call_operand.vmem [shape: f32[32,64], index: 1, kind: input, shape index: {}]   ;;  %s316_s0 = inlined_call_operand.vmem [shape: f32[16,32], index: 0, kind: input, shape index: {}]   ;;  %s317_s2 = inlined_call_operand.vmem [shape: f32[1,64], index: 2, kind: input, shape index: {}]   ;;  %s318_s3 = inlined_call_operand.vmem [shape: f32[64,32], index: 3, kind: input, shape index: {}]   ;;  %s319_s4 = inlined_call_operand.vmem [shape: f32[1,32], index: 4, kind: input, shape index: {}]   ;;  %s320_s5 = inlined_call_operand.vmem [shape: f32[1,32], index: 5, kind: input, shape index: {}]   ;;  %s321_s6 = inlined_call_operand.vmem [shape: f32[1,32], index: 6, kind: input, shape index: {}]   ;;  %s322_s7 = inlined_call_operand.vmem [shape: f32[16,32], index: 7, kind: output, shape index: {}]  }
   0x1   :  { %v39_v0 = vld [vmem:[%s315_s1 + $0x10] sm:$0xff]  ;;  %v40_v1 = vld [vmem:[%s315_s1 + $0x18] sm:$0xff]  ;;  %v37_v2 = vld [vmem:[%s315_s1] sm:$0xff]  ;;  %32 = vst.msk [vmem:[#allocation2] sm:$0xff] %vm31_vm0, %v202_v21  ;;  %196 = vrcp.f32 %v203_v45 }
   0x2   :  { %v42_v3 = vpack.c.bf16 %v40_v1, %v39_v0  ;;  %v38_v4 = vld [vmem:[%s315_s1 + $0x8] sm:$0xff]  ;;  %v34_v6 = vld [vmem:[%s316_s0] sm:$0xff]  ;;  %v76_v9 = vld [vmem:[%s318_s3 + $0x30] sm:$0xff]  ;;  %33 = vst.msk [vmem:[#allocation2 + $0x8] sm:$0xff] %vm31_vm0, %v202_v21 }
   0x3   :  { %v41_v5 = vpack.c.bf16 %v38_v4, %v37_v2  ;;  %v35_v7 = vld [vmem:[%s316_s0 + $0x8] sm:$0xff]  ;;  %v77_v10 = vld [vmem:[%s318_s3 + $0x38] sm:$0xff]  ;;  %v74_v12 = vld [vmem:[%s318_s3 + $0x20] sm:$0xff] }
   0x4   :  { %57 = vmatpush.bf16.msra.mxu0 %v42_v3  ;;  %v36_v8 = vpack.c.bf16 %v35_v7, %v34_v6  ;;  %v81_v11 = vpack.c.bf16 %v77_v10, %v76_v9  ;;  %v75_v13 = vld [vmem:[%s318_s3 + $0x28] sm:$0xff]  ;;  %v72_v15 = vld [vmem:[%s318_s3 + $0x10] sm:$0xff]  ;;  %v73_v16 = vld [vmem:[%s318_s3 + $0x18] sm:$0xff] }
   0x5   :  { %v80_v14 = vpack.c.bf16 %v75_v13, %v74_v12  ;;  %v79_v17 = vpack.c.bf16 %v73_v16, %v72_v15  ;;  %v70_v18 = vld [vmem:[%s318_s3] sm:$0xff]  ;;  %v71_v19 = vld [vmem:[%s318_s3 + $0x8] sm:$0xff] }
   0x6   :  { %90 = vmatpush.bf16.msra.mxu1 %v81_v11  ;;  %v78_v20 = vpack.c.bf16 %v71_v19, %v70_v18  ;;  %v192_v23 = vld [vmem:[%s317_s2] ss:$0 sm:$0xff] }
   0x7   :  { %v193_v34 = vld [vmem:[%s319_s4] ss:$0 sm:$0xff]  ;;  %v197_v46 = vpop.eup %196 }
   0x8   :  { %58 = vmatpush.bf16.msra.mxu0 %v41_v5  ;;  %v68_v30 = vld [vmem:[#allocation2] sm:$0xff]  ;;  %v126_v47 = vmul.f32 32.0, %v197_v46  ;;  %vm130_vm2 = vweird.f32 %v197_v46 }
   0x9   :  { %v69_v33 = vld [vmem:[#allocation2 + $0x8] sm:$0xff]  ;;  %v194_v12 = vld [vmem:[%s320_s5] ss:$0 sm:$0xff] }
   0xa   :  { %91 = vmatpush.bf16.msra.mxu1 %v80_v14  ;;  %v127_v48 = vsub.f32 1.0, %v126_v47  ;;  %v195_v15 = vld [vmem:[%s321_s6] ss:$0 sm:$0xff] }
   0xb   :  { %188 = vmatmul.msk.bf16.vlgmr.msra.gmra.mxu0 %vm31_vm0, %v36_v8 }
   0xc   :  { %v128_v49 = vmul.f32 %v197_v46, %v127_v48 }
   0xe   :  { %92 = vmatpush.bf16.msra.mxu1 %v79_v17  ;;  %v129_v50 = vadd.f32 %v197_v46, %v128_v49 }
  0x10   :  { %v131_v51 = vsel %vm130_vm2, %v197_v46, %v129_v50 }
  0x12   :  { %93 = vmatpush.bf16.msra.mxu1 %v78_v20 }
  0x88   :  { %v60_v22 = vpop.f32.mrf.mxu0 }
  0x89   :  { %v61_v24 = vadd.f32 %v192_v23, %v60_v22 }
  0x8b   :  { %v65_v27 = vmax.f32 %v61_v24, 0.0 }
  0x90   :  { %v62_v25 = vpop.f32.mrf.mxu0 }
  0x91   :  { %v63_v26 = vadd.f32 %v192_v23, %v62_v25 }
  0x93   :  { %v66_v28 = vmax.f32 %v63_v26, 0.0 }
  0x95   :  { %v67_v29 = vpack.c.bf16 %v66_v28, %v65_v27 }
  0x97   :  { %189 = vmatmul.msk.bf16.vlgmr.msra.gmra.mxu1 %vm82_vm1, %v67_v29 }
 0x114   :  { %v95_v31 = vpop.f32.mrf.mxu1 }
 0x115   :  { %v100_v32 = vadd.f32 %v95_v31, %v68_v30 }
 0x117   :  { %102 = vst.msk [vmem:[#allocation2] sm:$0xff] %vm31_vm0, %v100_v32 }
 0x11c   :  { %v97_v35 = vpop.f32.mrf.mxu1 }
 0x11d   :  { %v101_v36 = vadd.f32 %v97_v35, %v69_v33 }
 0x11e   :  { %v107_v37 = vld [vmem:[#allocation2] sm:$0xff] }
 0x11f   :  { %103 = vst.msk [vmem:[#allocation2 + $0x8] sm:$0xff] %vm31_vm0, %v101_v36  ;;  %v113_v38 = vadd.f32 %v193_v34, %v107_v37 }
 0x121   :  { %v117_v39 = vadd.f32 %v113_v38, %v34_v6 }
 0x123   :  { %v119_v40 = vsel %vm31_vm0, %v117_v39, 0.0 }
 0x124   :  { %120 = vadd.xlane.f32.xlu0 %v119_v40 }
 0x126   :  { %v108_v41 = vld [vmem:[#allocation2 + $0x8] sm:$0xff] }
 0x127   :  { %v114_v42 = vadd.f32 %v193_v34, %v108_v41 }
 0x129   :  { %v118_v43 = vadd.f32 %v114_v42, %v35_v7 }
 0x12b   :  { %v122_v44 = vsel %vm31_vm0, %v118_v43, 0.0 }
 0x12c   :  { %123 = vadd.xlane.f32.xlu0 %v122_v44 }
 0x197   :  { %v121_v52 = vpop.xlane.xlu0 %120 }
 0x198   :  { %v132_v53 = vmul.f32 %v131_v51, %v121_v52 }
 0x19a   :  { %v134_v54 = vsub.f32 %v117_v39, %v132_v53 }
 0x19c   :  { %v136_v55 = vmul.f32 %v134_v54, %v134_v54 }
 0x19e   :  { %v138_v56 = vsel %vm31_vm0, %v136_v55, 0.0 }
 0x19f   :  { %139 = vadd.xlane.f32.xlu1 %v138_v56  ;;  %v124_v57 = vpop.xlane.xlu0 %123 }
 0x1a0   :  { %v133_v58 = vmul.f32 %v131_v51, %v124_v57 }
 0x1a2   :  { %v135_v59 = vsub.f32 %v118_v43, %v133_v58 }
 0x1a4   :  { %v137_v60 = vmul.f32 %v135_v59, %v135_v59 }
 0x1a6   :  { %v141_v61 = vsel %vm31_vm0, %v137_v60, 0.0 }
 0x1a7   :  { %142 = vadd.xlane.f32.xlu1 %v141_v61 }
 0x212   :  { %v140_v62 = vpop.xlane.xlu1 %139 }
 0x213   :  { %v144_v63 = vmul.f32 %v140_v62, %v131_v51 }
 0x215   :  { %v146_v0 = vadd.f32 1e-05, %v144_v63 }
 0x217   :  { %198 = vrsqrt.f32 %v146_v0  ;;  %vm154_vm4 = vweird.f32 %v146_v0 }
 0x21a   :  { %v143_v1 = vpop.xlane.xlu1 %142 }
 0x21b   :  { %v145_v2 = vmul.f32 %v143_v1, %v131_v51 }
 0x21d   :  { %v199_v3 = vpop.eup %198  ;;  %v147_v4 = vadd.f32 1e-05, %v145_v2 }
 0x21e   :  { %v149_v5 = vmul.f32 %v199_v3, %v146_v0  ;;  %vm155_vm3 = vweird.f32 %v199_v3 }
 0x21f   :  { %200 = vrsqrt.f32 %v147_v4  ;;  %vm156_vm5 = vmor %vm154_vm4, %vm155_vm3  ;;  %vm164_vm7 = vweird.f32 %v147_v4 }
 0x220   :  { %v150_v6 = vmul.f32 %v199_v3, %v149_v5 }
 0x222   :  { %v151_v7 = vmul.f32 0.5, %v150_v6 }
 0x224   :  { %v152_v8 = vsub.f32 1.5, %v151_v7 }
 0x225   :  { %v201_v9 = vpop.eup %200 }
 0x226   :  { %v153_v10 = vmul.f32 %v199_v3, %v152_v8  ;;  %v159_v11 = vmul.f32 %v201_v9, %v147_v4  ;;  %vm165_vm6 = vweird.f32 %v201_v9 }
 0x227   :  { %vm166_vm8 = vmor %vm164_vm7, %vm165_vm6 }
 0x228   :  { %v157_v13 = vsel %vm156_vm5, %v199_v3, %v153_v10  ;;  %v160_v14 = vmul.f32 %v201_v9, %v159_v11 }
 0x229   :  { %v168_v16 = vmul.f32 %v157_v13, %v134_v54 }
 0x22a   :  { %v161_v17 = vmul.f32 0.5, %v160_v14 }
 0x22b   :  { %v174_v18 = vmul.f32 %v194_v12, %v168_v16 }
 0x22c   :  { %v162_v19 = vsub.f32 1.5, %v161_v17 }
 0x22d   :  { %v180_v20 = vadd.f32 %v195_v15, %v174_v18 }
 0x22e   :  { %v163_v21 = vmul.f32 %v201_v9, %v162_v19 }
 0x22f   :  { %182 = vst.msk [vmem:[%s322_s7] sm:$0xff] %vm31_vm0, %v180_v20 }
 0x230   :  { %v167_v22 = vsel %vm166_vm8, %v201_v9, %v163_v21 }
 0x231   :  { %v169_v23 = vmul.f32 %v167_v22, %v135_v59 }
 0x233   :  { %v175_v24 = vmul.f32 %v194_v12, %v169_v23 }
 0x235   :  { %v181_v25 = vadd.f32 %v195_v15, %v175_v24 }
 0x237   :  { %183 = vst.msk [vmem:[%s322_s7 + $0x8] sm:$0xff] %vm31_vm0, %v181_v25 }

// kernel: tener_forward.11
= control target key start
LH: loop header
LB: loop body
LE: loop exit
PB: predicated region body
PF: predicated region fallthrough
CT: control target
= control target key end

     0   :  { %s1424_s30 = smov 0   ;;  %s1426_s10 = smov 0   ;;  %s1759_s0 = inlined_call_operand.vmem [shape: bf16[2,8,64], index: 0, kind: input, shape index: {}]   ;;  %s1760_s1 = inlined_call_operand.vmem [shape: f32[2,8,32], index: 1, kind: input, shape index: {}]   ;;  %s1761_s2 = inlined_call_operand.vmem [shape: f32[1,32], index: 2, kind: input, shape index: {}]   ;;  %s1762_s3 = inlined_call_operand.vmem [shape: f32[1,32], index: 3, kind: input, shape index: {}]   ;;  %s1763_s4 = inlined_call_operand.vmem [shape: f32[8,4], index: 4, kind: input, shape index: {}]   ;;  %s1764_s5 = inlined_call_operand.vmem [shape: f32[8,4], index: 5, kind: input, shape index: {}]   ;;  %s1765_s6 = inlined_call_operand.vmem [shape: f32[2,1,8], index: 6, kind: input, shape index: {}]   ;;  %s1766_s7 = inlined_call_operand.vmem [shape: f32[1,32], index: 7, kind: input, shape index: {}]   ;;  %s1767_s8 = inlined_call_operand.vmem [shape: f32[1,32], index: 8, kind: input, shape index: {}]   ;;  %s1768_s9 = inlined_call_operand.vmem [shape: f32[2,8,32], index: 9, kind: output, shape index: {}]  }
   0x1   :  { %s1428_s11 = smov 0  }
   0x2 LB: > { %s31_s12 = sadd.s32 1, %s1351_s10  ;;  %p1208_p0 = scmp.ge.s32.totalorder %s1355_s11, 1  ;;  %s1355_s11 = sphi %s1428_s11, %s19_s11   ;;  %s1351_s10 = sphi %s1426_s10, %s1772_s10   ;;  %s1347_s30 = sphi %s1424_s30, %s1771_s30  }
   0x3   : > { %p33_p1 = scmp.ge.s32.totalorder %s31_s12, 2  ;;  %p317_p2 = scmp.lt.s32.totalorder %s1355_s11, 3 }
   0x5   : > { %s1774_s12 = smov (%p33_p1, %s31_s12), 0  ;;  %p318_p3 = pnand %p1208_p0, %p317_p2 }
   0x6   : > { %s1357_s17 = smov (!%p318_p3), 4   ;;  %p361_p4 = scmp.lt.s32.totalorder (!%p318_p3), %s1347_s30, 1 }
   0x7   : > { %321 = sbr.rel (%p318_p3) target bundleno = 1714 (0x6b2), region = 56  ;;  %s1358_s26 = smov (!%p318_p3), 8  }
   0x8   : > { %s1359_s29 = smov (!%p318_p3), 124   ;;  %s1360_s13 = smov (!%p318_p3), 12  }
   0x9   : > { %s1361_s14 = smov (!%p318_p3), 16   ;;  %s1362_s15 = smov (!%p318_p3), 28  }
   0xa   : > { %s1363_s16 = smov (!%p318_p3), 20   ;;  %s1364_s19 = smov (!%p318_p3), 24  }
   0xb   : > { %s1366_s23 = smov (!%p318_p3), 96   ;;  %s1369_s24 = smov (!%p318_p3), 104  }
   0xc   : > { %v1445_v0 = vld [vmem:[%s1763_s4] sm:$0xff]  ;;  %s1776_s30 = smov (!%p361_p4, %s1347_s30), 1  ;;  %vm444_vm0 = vcmask 64512   ;;  %vm446_vm1 = vcmask 97280   ;;  %vm450_vm2 = vcmask 162816   ;;  %vm448_vm3 = vcmask 130048  }
   0xd   : > { %v1450_v1 = vld [vmem:[%s1764_s5] sm:$0xff]  ;;  %455 = vrot.lane.b32.xlu0 %v1445_v0, %s1357_s17  ;;  %s1210_s18 = sshll.u32 %s1776_s30, 3  ;;  %s1209_s22 = sshll.u32 %s1776_s30, 2  ;;  %vm494_vm4 = vcmask 195584   ;;  %vm552_vm7 = vcmask 1043456  }
   0xe   : > { %465 = vrot.lane.b32.xlu1 %v1450_v1, %s1357_s17  ;;  %s368_s21 = scalar_lea.vmem %s1760_s1, %s1210_s18  ;;  %s1477_s25 = scalar_lea.vmem %s1759_s0, %s1209_s22  ;;  %v1303_v6 = vld [vmem:[%s1762_s3] ss:$0 sm:$0xff] }
   0xf   : > { %v1466_v2 = vld [vmem:[%s368_s21] sm:$0xff]  ;;  %s1365_s21 = smov 120   ;;  %s371_s28 = scalar_lea.vmem %s1765_s6, %s1776_s30 }
  0x10   : > { %v469_v3 = vmul.f32 %v1466_v2, %v1445_v0  ;;  %v392_v4 = vld [vmem:[%s1477_s25] sm:$0xf]  ;;  %v453_v16 = vmul.f32 %v1466_v2, %v1450_v1  ;;  %s1368_s22 = smov 112  }
  0x11   : > { %v1482_v5 = vunpack.c.l.bf16 %v392_v4  ;;  %v1305_v35 = vld [vmem:[%s1762_s3] ss:$0 sm:$0xff] }
  0x12   : > { %471 = vrot.lane.b32.xlu2 %v469_v3, %s1357_s17  ;;  %v1304_v42 = vld [vmem:[%s1761_s2] ss:$0 sm:$0xff] }
  0x13   : > { %v407_v9 = vadd.f32 %v1303_v6, %v1482_v5  ;;  %v1544_v36 = vadd.f32 %v1305_v35, %v1482_v5  ;;  %v403_v45 = vadd.f32 %v1304_v42, %v1482_v5  ;;  %v1306_v56 = vld [vmem:[%s1762_s3] ss:$0 sm:$0xff] }
  0x14   : > { %v1576_v61 = vadd.f32 %v1306_v56, %v1482_v5  ;;  %v387_v35 = vld [vmem:[%s371_s28] sm:$0x1]  ;;  %s378_s28 = scalar_lea.vmem %s1768_s9, %s1210_s18 }
  0x15   : > { %410 = vrot.lane.b32.xlu0 %v1445_v0, %s1357_s17  ;;  %v424_v10 = vmul.f32 %v407_v9, %v1445_v0  ;;  %v408_v23 = vmul.f32 %v407_v9, %v1450_v1  ;;  %vm514_vm5 = vcmp.gt.f32.partialorder %v387_v35, 0.5 }
  0x1a   : > { %420 = vrot.lane.b32.xlu2 %v1450_v1, %s1357_s17 }
  0x22   : > { %475 = vrot.lane.b32.xlu2 %v1445_v0, %s1358_s26 }
  0x6c   : > { %v472_v14 = vpop.permute.xlu2 %471 }
  0x74   : > { %v421_v20 = vpop.permute.xlu2 %420 }
  0x75   : > { %v423_v22 = vmul.f32 %v421_v20, %v407_v9 }
  0x7c   : > { %v1523_v29 = vpop.permute.xlu2 %475 }
  0x7d   : > { %v631_v30 = vmul.f32 %v1523_v29, %v1466_v2  ;;  %v489_v43 = vsel %vm444_vm0, %v1466_v2, %v1523_v29 }
  0x7f   : > { %v456_v7 = vpop.permute.xlu0 %455 }
  0x80   : > { %v458_v8 = vmul.f32 %v456_v7, %v1466_v2  ;;  %v466_v13 = vpop.permute.xlu1 %465  ;;  %v1307_v7 = vld [vmem:[%s1761_s2] ss:$0 sm:$0xff] }
  0x81   : > { %v468_v15 = vmul.f32 %v466_v13, %v1466_v2 }
  0x82   : > { %460 = vrot.lane.b32.xlu1 %v458_v8, %s1359_s29 }
  0x83   : > { %v474_v18 = vsub.f32 %v468_v15, %v472_v14 }
  0x87   : > { %v411_v11 = vpop.permute.xlu0 %410 }
  0x88   : > { %v413_v12 = vmul.f32 %v411_v11, %v407_v9  ;;  %v577_v9 = vadd.f32 %v1307_v7, %v1482_v5 }
  0x8a   : > { %426 = vrot.lane.b32.xlu1 %v424_v10, %s1357_s17  ;;  %415 = vrot.lane.b32.xlu0 %v413_v12, %s1359_s29  ;;  %v1273_v10 = vpack.i.bf16 %v577_v9, %v1466_v2 }
  0x92   : > { %478 = vrot.lane.b32.xlu0 %v1450_v1, %s1360_s13 }
  0x9a   : > { %438 = vrot.lane.b32.xlu0 %v1445_v0, %s1361_s14 }
  0xa2   : > { %947 = vrot.lane.b32.xlu0 %v1445_v0, %s1362_s15 }
  0xaa   : > { %745 = vrot.lane.b32.xlu0 %v1445_v0, %s1363_s16 }
  0xb2   : > { %917 = vrot.lane.b32.xlu0 %v1445_v0, %s1364_s19 }
  0xf4   : > { %v461_v17 = vpop.permute.xlu1 %460 }
  0xf5   : > { %v463_v19 = vadd.f32 %v461_v17, %v453_v16 }
  0xf7   : > { %v1263_v21 = vpack.i.bf16 %v474_v18, %v463_v19  ;;  %v1308_v18 = vld [vmem:[%s1762_s3] ss:$0 sm:$0xff] }
  0xf9   : > { %1264 = vrot.lane.b32.xlu1 %v1263_v21, %s1361_s14  ;;  %v1609_v21 = vadd.f32 %v1308_v18, %v1482_v5 }
  0xfc   : > { %v427_v24 = vpop.permute.xlu1 %426  ;;  %v416_v25 = vpop.permute.xlu0 %415 }
  0xfd   : > { %v429_v26 = vsub.f32 %v423_v22, %v427_v24  ;;  %v418_v27 = vadd.f32 %v416_v25, %v408_v23  ;;  %v397_v23 = vld [vmem:[%s1477_s25] sm:$0xf] }
  0xfe   : > { %v545_v25 = vunpack.c.l.b16 %v397_v23 }
  0xff   : > { %v1268_v28 = vpack.i.bf16 %v429_v26, %v418_v27 }
 0x100   : > { %v546_v27 = vpack.c.b16 %v545_v25, %v545_v25 }
 0x101   : > { %441 = vrot.lane.b32.xlu1 %v1450_v1, %s1363_s16  ;;  %1269 = vrot.lane.b32.xlu2 %v1268_v28, %s1358_s26 }
 0x104   : > { %v1532_v31 = vpop.permute.xlu0 %478 }
 0x105   : > { %v490_v50 = vsel %vm446_vm1, %v489_v43, %v1532_v31  ;;  %v630_v15 = vmul.f32 %v1532_v31, %v1466_v2  ;;  %v1367_v43 = vmov 0  }
 0x109   : > { %960 = vrot.lane.b32.xlu1 %v1445_v0, %s1364_s19  ;;  %621 = vrot.lane.b32.xlu2 %v1445_v0, %s1360_s13 }
 0x10c   : > { %v1534_v32 = vpop.permute.xlu0 %438 }
 0x10d   : > { %v755_v11 = vmul.f32 %v1544_v36, %v1534_v32 }
 0x111   : > { %904 = vrot.lane.b32.xlu1 %v1445_v0, %s1362_s15  ;;  %943 = vrot.lane.b32.xlu2 %v1450_v1, %s1364_s19 }
 0x114   : > { %v948_v33 = vpop.permute.xlu0 %947 }
 0x115   : > { %v950_v34 = vmul.f32 %v948_v33, %v1466_v2 }
 0x119   : > { %617 = vrot.lane.b32.xlu1 %v1450_v1, %s1358_s26  ;;  %913 = vrot.lane.b32.xlu2 %v1450_v1, %s1362_s15 }
 0x11c   : > { %v746_v38 = vpop.permute.xlu0 %745 }
 0x11d   : > { %v748_v39 = vmul.f32 %v746_v38, %v1544_v36 }
 0x121   : > { %633 = vrot.lane.b32.xlu1 %v631_v30, %s1357_s17  ;;  %v1309_v30 = vld [vmem:[%s1761_s2] ss:$0 sm:$0xff] }
 0x124   : > { %v918_v62 = vpop.permute.xlu0 %917 }
 0x125   : > { %v920_v63 = vmul.f32 %v918_v62, %v1576_v61 }
 0x127   : > { %922 = vrot.lane.b32.xlu2 %v920_v63, %s1357_s17 }
 0x129   : > { %599 = vrot.lane.b32.xlu1 %v1445_v0, %s1358_s26 }
 0x131   : > { %795 = vrot.lane.b32.xlu1 %v1445_v0, %s1361_s14 }
 0x139   : > { %952 = vrot.lane.b32.xlu1 %v950_v34, %s1359_s29 }
 0x141   : > { %741 = vrot.lane.b32.xlu1 %v1450_v1, %s1361_s14 }
 0x149   : > { %750 = vrot.lane.b32.xlu1 %v748_v39, %s1359_s29 }
 0x15b   : > { %v1270_v37 = vpop.permute.xlu2 %1269 }
 0x15c   : > { %v1271_v44 = vunpack.i.l.bf16 %v1270_v37  ;;  %v1272_v49 = vunpack.i.h.bf16 %v1270_v37  ;;  %v736_v37 = vadd.f32 %v1309_v30, %v1482_v5 }
 0x15e   : > { %v445_v51 = vsel %vm444_vm0, %v403_v45, %v1271_v44  ;;  %v515_v44 = vsel %vm514_vm5, 1, %v1367_v43 }
 0x15f   : > { %v447_v55 = vsel %vm446_vm1, %v445_v51, %v1272_v49 }
 0x160   : > { %v449_v59 = vsel %vm448_vm3, %v447_v55, %v1534_v32 }
 0x163   : > { %v622_v40 = vpop.permute.xlu2 %621 }
 0x164   : > { %v624_v41 = vmul.f32 %v622_v40, %v1466_v2 }
 0x166   : > { %626 = vrot.lane.b32.xlu0 %v624_v41, %s1359_s29  ;;  %v1283_v41 = vpack.i.bf16 %v736_v37, %v1466_v2 }
 0x16b   : > { %v1265_v46 = vpop.permute.xlu1 %1264  ;;  %v944_v38 = vpop.permute.xlu2 %943 }
 0x16c   : > { %v1267_v47 = vunpack.i.h.bf16 %v1265_v46  ;;  %v1266_v48 = vunpack.i.l.bf16 %v1265_v46  ;;  %v946_v42 = vmul.f32 %v944_v38, %v1466_v2 }
 0x16e   : > { %586 = vrot.lane.b32.xlu0 %v1445_v0, %s1360_s13  ;;  %v491_v52 = vsel %vm448_vm3, %v490_v50, %v1266_v48 }
 0x16f   : > { %v492_v53 = vsel %vm450_vm2, %v491_v52, %v1267_v47  ;;  %v516_v47 = vperm.slane %v515_v44, 0 }
 0x170   : > { %v493_v54 = vpack.c.bf16 %v492_v53, %v492_v53 }
 0x171   : > { %vm1629_vm6 = vcmp.eq.s32.totalorder %v516_v47, 1 }
 0x172   : > { %v499_v57 = vsel %vm494_vm4, %v493_v54, 0 }
 0x173   : > { %v1569_v58 = vpop.permute.xlu1 %441  ;;  %508 = vmatpush.bf16.xpose.msra.mxu0 %v499_v57  ;;  %v1310_v57 = vld [vmem:[%s1761_s2] ss:$0 sm:$0xff]  ;;  %v914_v63 = vpop.permute.xlu2 %913 }
 0x174   : > { %v451_v60 = vsel %vm450_vm2, %v449_v59, %v1569_v58  ;;  %v895_v59 = vadd.f32 %v1310_v57, %v1482_v5 }
 0x175   : > { %v452_v3 = vpack.c.bf16 %v451_v60, %v451_v60 }
 0x176   : > { %782 = vrot.lane.b32.xlu0 %v1445_v0, %s1363_s16 }
 0x17a   : > { %1212 = vmatmul.msk.bf16.vlgmr.msra.gmra.mxu0 %vm494_vm4, %v452_v3 }
 0x17b   : > { %v961_v4 = vpop.permute.xlu1 %960 }
 0x17c   : > { %v963_v6 = vmul.f32 %v961_v4, %v1466_v2 }
 0x17e   : > { %956 = vrot.lane.b32.xlu0 %v1450_v1, %s1362_s15 }
 0x181   : > { %v923_v4 = vpop.permute.xlu2 %922 }
 0x183   : > { %v905_v8 = vpop.permute.xlu1 %904 }
 0x184   : > { %v907_v0 = vmul.f32 %v905_v8, %v1576_v61 }
 0x186   : > { %909 = vrot.lane.b32.xlu1 %v907_v0, %s1359_s29  ;;  %965 = vrot.lane.b32.xlu0 %v963_v6, %s1357_s17 }
 0x18b   : > { %v618_v12 = vpop.permute.xlu1 %617 }
 0x18c   : > { %v620_v14 = vmul.f32 %v618_v12, %v1466_v2 }
 0x18e   : > { %1274 = vrot.lane.b32.xlu1 %v1273_v10, %s1365_s21  ;;  %900 = vrot.lane.b32.xlu0 %v1450_v1, %s1364_s19 }
 0x193   : > { %v634_v13 = vpop.permute.xlu1 %633 }
 0x194   : > { %v636_v17 = vsub.f32 %v630_v15, %v634_v13 }
 0x196   : > { %757 = vrot.lane.b32.xlu0 %v755_v11, %s1357_s17  ;;  %582 = vrot.lane.b32.xlu1 %v1450_v1, %s1358_s26 }
 0x19b   : > { %v600_v26 = vpop.permute.xlu1 %599 }
 0x19c   : > { %v602_v60 = vmul.f32 %v600_v26, %v1609_v21 }
 0x1a3   : > { %v796_v33 = vpop.permute.xlu1 %795 }
 0x1a4   : > { %v798_v12 = vmul.f32 %v796_v33, %v1466_v2 }
 0x1ab   : > { %v953_v45 = vpop.permute.xlu1 %952 }
 0x1ac   : > { %v955_v49 = vadd.f32 %v953_v45, %v946_v42 }
 0x1b3   : > { %v742_v55 = vpop.permute.xlu1 %741 }
 0x1bb   : > { %v751_v56 = vpop.permute.xlu1 %750 }
 0x1d8   : > { %v627_v16 = vpop.permute.xlu0 %626 }
 0x1d9   : > { %v629_v19 = vadd.f32 %v627_v16, %v620_v14  ;;  %v744_v14 = vmul.f32 %v742_v55, %v1544_v36 }
 0x1db   : > { %v1278_v20 = vpack.i.bf16 %v636_v17, %v629_v19  ;;  %v754_v17 = vmul.f32 %v1544_v36, %v1569_v58  ;;  %v753_v19 = vadd.f32 %v751_v56, %v744_v14 }
 0x1dd   : > { %1279 = vrot.lane.b32.xlu2 %v1278_v20, %s1358_s26 }
 0x1e0   : > { %v587_v22 = vpop.permute.xlu0 %586 }
 0x1e1   : > { %v589_v24 = vmul.f32 %v587_v22, %v1609_v21 }
 0x1e3   : > { %591 = vrot.lane.b32.xlu1 %v589_v24, %s1359_s29  ;;  %v916_v24 = vmul.f32 %v914_v63, %v1576_v61 }
 0x1e5   : > { %v925_v26 = vsub.f32 %v916_v24, %v923_v4 }
 0x1e8   : > { %v783_v28 = vpop.permute.xlu0 %782 }
 0x1e9   : > { %v785_v6 = vmul.f32 %v783_v28, %v1466_v2 }
 0x1eb   : > { %547 = vrot.lane.b32.xlu1 %v546_v27, %s1366_s23 }
 0x1f0   : > { %v957_v34 = vpop.permute.xlu0 %956 }
 0x1f1   : > { %v959_v39 = vmul.f32 %v957_v34, %v1466_v2 }
 0x1f3   : > { %791 = vrot.lane.b32.xlu1 %v1450_v1, %s1363_s16 }
 0x1f7   : > { %v510_v40 = vpop.f32.mrf.mxu0 }
 0x1f8   : > { %v966_v46 = vpop.permute.xlu0 %965  ;;  %v518_v53 = vsel %vm1629_vm6, %v510_v40, -1e+30  ;;  %v910_v62 = vpop.permute.xlu1 %909 }
 0x1f9   : > { %v968_v48 = vsub.f32 %v959_v39, %v966_v46  ;;  %v519_v54 = vsel %vm444_vm0, %v518_v53, -inf }
 0x1fb   : > { %1284 = vrot.lane.b32.xlu1 %v1283_v41, %s1368_s22  ;;  %v1288_v52 = vpack.i.bf16 %v968_v48, %v955_v49 }
 0x1ff   : > { %v512_v51 = vpop.f32.mrf.mxu0 }
 0x200   : > { %v1275_v3 = vpop.permute.xlu1 %1274  ;;  %v901_v8 = vpop.permute.xlu0 %900 }
 0x201   : > { %v1276_v7 = vunpack.i.l.bf16 %v1275_v3  ;;  %v903_v22 = vmul.f32 %v901_v8, %v1576_v61  ;;  %v1277_v40 = vunpack.i.h.bf16 %v1275_v3 }
 0x203   : > { %1289 = vrot.lane.b32.xlu1 %v1288_v52, %s1365_s21  ;;  %v649_v5 = vsel %vm444_vm0, %v1276_v7, %v1523_v29  ;;  %v912_v25 = vadd.f32 %v910_v62, %v903_v22 }
 0x204   : > { %v650_v11 = vsel %vm446_vm1, %v649_v5, %v1532_v31 }
 0x205   : > { %v1298_v27 = vpack.i.bf16 %v925_v26, %v912_v25 }
 0x206   : > { %520 = vmax.xlane.f32.xlu2 %v519_v54 }
 0x208   : > { %v758_v16 = vpop.permute.xlu0 %757  ;;  %v583_v36 = vpop.permute.xlu1 %582 }
 0x209   : > { %v760_v20 = vsub.f32 %v754_v17, %v758_v16  ;;  %v585_v35 = vmul.f32 %v583_v36, %v1609_v21 }
 0x20b   : > { %927 = vrot.lane.b32.xlu1 %v895_v59, %s1369_s24  ;;  %v1293_v23 = vpack.i.bf16 %v760_v20, %v753_v19 }
 0x21e   : > { %595 = vrot.lane.b32.xlu2 %v1450_v1, %s1360_s13  ;;  %s1372_s13 = smov 80  }
 0x226   : > { %604 = vrot.lane.b32.xlu2 %v602_v60, %s1357_s17 }
 0x22e   : > { %778 = vrot.lane.b32.xlu2 %v1450_v1, %s1361_s14 }
 0x236   : > { %787 = vrot.lane.b32.xlu2 %v785_v6, %s1359_s29  ;;  %s1371_s29 = smov 72  }
 0x237   : > { %v1280_v0 = vpop.permute.xlu2 %1279 }
 0x238   : > { %v1282_v9 = vunpack.i.h.bf16 %v1280_v0  ;;  %v1281_v10 = vunpack.i.l.bf16 %v1280_v0 }
 0x23a   : > { %v651_v1 = vsel %vm448_vm3, %v650_v11, %v1281_v10 }
 0x23b   : > { %v652_v13 = vsel %vm450_vm2, %v651_v1, %v1282_v9 }
 0x23c   : > { %v653_v15 = vpack.c.bf16 %v652_v13, %v652_v13 }
 0x23e   : > { %800 = vrot.lane.b32.xlu2 %v798_v12, %s1357_s17  ;;  %v658_v18 = vsel %vm494_vm4, %v653_v15, 0  ;;  %s1370_s17 = smov 88  }
 0x23f   : > { %667 = vmatpush.bf16.xpose.msra.mxu2 %v658_v18 }
 0x246   : > { %1294 = vrot.lane.b32.xlu2 %v1293_v23, %s1365_s21 }
 0x24e   : > { %1299 = vrot.lane.b32.xlu2 %v1298_v27, %s1368_s22 }
 0x255   : > { %v592_v28 = vpop.permute.xlu1 %591 }
 0x256   : > { %v594_v41 = vadd.f32 %v592_v28, %v585_v35 }
 0x258   : > { %v612_v44 = vsel %vm444_vm0, %v1277_v40, %v594_v41 }
 0x25d   : > { %v548_v38 = vpop.permute.xlu1 %547 }
 0x25e   : > { %v554_v61 = vsel %vm552_vm7, %v548_v38, 0 }
 0x25f   : > { %563 = vmatpush.bf16.msra.mxu1 %v554_v61 }
 0x265   : > { %v792_v49 = vpop.permute.xlu1 %791 }
 0x266   : > { %v794_v57 = vmul.f32 %v792_v49, %v1466_v2 }
 0x26d   : > { %v1285_v54 = vpop.permute.xlu1 %1284 }
 0x26e   : > { %v1286_v55 = vunpack.i.l.bf16 %v1285_v54  ;;  %v1287_v24 = vunpack.i.h.bf16 %v1285_v54 }
 0x270   : > { %v808_v59 = vsel %vm444_vm0, %v1286_v55, %v1523_v29 }
 0x271   : > { %v809_v3 = vsel %vm446_vm1, %v808_v59, %v1532_v31 }
 0x275   : > { %v1290_v11 = vpop.permute.xlu1 %1289 }
 0x276   : > { %v1291_v25 = vunpack.i.l.bf16 %v1290_v11 }
 0x279   : > { %v521_v30 = vpop.xlane.xlu2 %520 }
 0x27a   : > { %v522_v33 = vsub.f32 %v518_v53, %v521_v30 }
 0x27c   : > { %v523_v34 = vmul.f32 1.442695, %v522_v33 }
 0x27d   : > { %v928_v20 = vpop.permute.xlu1 %927 }
 0x27e   : > { %1313 = vpow2.f32 %v523_v34  ;;  %v1292_v34 = vunpack.i.h.bf16 %v1290_v11 }
 0x281   : > { %v596_v37 = vpop.permute.xlu2 %595 }
 0x282   : > { %v598_v43 = vmul.f32 %v596_v37, %v1609_v21 }
 0x284   : > { %v1314_v39 = vpop.eup %1313 }
 0x285   : > { %v525_v42 = vsel %vm444_vm0, %v1314_v39, 0.0 }
 0x286   : > { %526 = vadd.xlane.f32.xlu0 %v525_v42 }
 0x289   : > { %v605_v45 = vpop.permute.xlu2 %604 }
 0x28a   : > { %v607_v46 = vsub.f32 %v598_v43, %v605_v45 }
 0x28c   : > { %v613_v47 = vsel %vm446_vm1, %v612_v44, %v607_v46 }
 0x28d   : > { %v614_v48 = vsel %vm448_vm3, %v613_v47, %v1534_v32 }
 0x28e   : > { %v615_v51 = vsel %vm450_vm2, %v614_v48, %v1569_v58 }
 0x28f   : > { %v616_v52 = vpack.c.bf16 %v615_v51, %v615_v51 }
 0x291   : > { %1214 = vmatmul.msk.bf16.vlgmr.msra.gmra.mxu2 %vm494_vm4, %v616_v52  ;;  %v779_v53 = vpop.permute.xlu2 %778 }
 0x292   : > { %v781_v56 = vmul.f32 %v779_v53, %v1466_v2 }
 0x299   : > { %v788_v21 = vpop.permute.xlu2 %787 }
 0x29a   : > { %970 = vrot.lane.b32.xlu0 %v1466_v2, %s1369_s24  ;;  %v790_v60 = vadd.f32 %v788_v21, %v781_v56 }
 0x29c   : > { %v810_v4 = vsel %vm448_vm3, %v809_v3, %v790_v60 }
 0x2a1   : > { %v801_v62 = vpop.permute.xlu2 %800 }
 0x2a2   : > { %v803_v63 = vsub.f32 %v794_v57, %v801_v62 }
 0x2a4   : > { %v811_v6 = vsel %vm450_vm2, %v810_v4, %v803_v63 }
 0x2a5   : > { %v812_v7 = vpack.c.bf16 %v811_v6, %v811_v6  ;;  %v571_v6 = vld [vmem:[%s1477_s25] sm:$0xf] }
 0x2a7   : > { %v817_v8 = vsel %vm494_vm4, %v812_v7, 0  ;;  %v700_v7 = vunpack.c.l.b16 %v571_v6 }
 0x2a8   : > { %826 = vmatpush.bf16.xpose.msrb.mxu1 %v817_v8 }
 0x2a9   : > { %v1295_v0 = vpop.permute.xlu2 %1294 }
 0x2aa   : > { %v1296_v36 = vunpack.i.l.bf16 %v1295_v0  ;;  %v1297_v38 = vunpack.i.h.bf16 %v1295_v0 }
 0x2ac   : > { %v773_v40 = vsel %vm444_vm0, %v1287_v24, %v1296_v36 }
 0x2ad   : > { %v774_v43 = vsel %vm446_vm1, %v773_v40, %v1297_v38 }
 0x2ae   : > { %v775_v47 = vsel %vm448_vm3, %v774_v43, %v1534_v32 }
 0x2af   : > { %v776_v49 = vsel %vm450_vm2, %v775_v47, %v1569_v58 }
 0x2b0   : > { %v777_v52 = vpack.c.bf16 %v776_v49, %v776_v49 }
 0x2b1   : > { %v1300_v15 = vpop.permute.xlu2 %1299 }
 0x2b2   : > { %v1301_v18 = vunpack.i.l.bf16 %v1300_v15  ;;  %v1302_v26 = vunpack.i.h.bf16 %v1300_v15 }
 0x2b4   : > { %v938_v28 = vsel %vm444_vm0, %v928_v20, %v1301_v18 }
 0x2b5   : > { %v939_v61 = vsel %vm446_vm1, %v938_v28, %v1302_v26 }
 0x2f9   : > { %v527_v5 = vpop.xlane.xlu0 %526 }
 0x2fa   : > { %1315 = vrcp.f32 %v527_v5  ;;  %v539_v1 = vand.u32 2147483648, %v527_v5  ;;  %v537_v14 = vand.u32 2147483647, %v527_v5  ;;  %vm533_vm9 = vweird.f32 %v527_v5 }
 0x2fc   : > { %v540_v17 = vor.u32 1.1754944e-38, %v539_v1  ;;  %vm538_vm11 = vcmp.eq.f32.partialorder %v537_v14, 8.507059e+37 }
 0x300   : > { %v1316_v9 = vpop.eup %1315 }
 0x301   : > { %v529_v10 = vmul.f32 %v1316_v9, %v527_v5  ;;  %vm534_vm8 = vweird.f32 %v1316_v9  ;;  %v701_v5 = vpack.c.b16 %v700_v7, %v700_v7 }
 0x302   : > { %vm535_vm10 = vmor %vm533_vm9, %vm534_vm8 }
 0x303   : > { %v530_v12 = vsub.f32 1.0, %v529_v10 }
 0x305   : > { %v531_v13 = vmul.f32 %v1316_v9, %v530_v12 }
 0x307   : > { %v532_v16 = vadd.f32 %v1316_v9, %v531_v13 }
 0x309   : > { %v536_v19 = vsel %vm535_vm10, %v1316_v9, %v532_v16  ;;  %vm727_vm10 = vcmask 130112  }
 0x30a   : > { %v541_v22 = vsel %vm538_vm11, %v540_v17, %v536_v19  ;;  %vm886_vm11 = vcmask 195712  }
 0x30b   : > { %v542_v23 = vmul.f32 %v1314_v39, %v541_v22 }
 0x30c   : > { %v971_v27 = vpop.permute.xlu0 %970 }
 0x30d   : > { %v981_v30 = vsel %vm444_vm0, %v971_v27, %v1523_v29  ;;  %v543_v33 = vpack.c.bf16 %v542_v23, %v542_v23  ;;  %v940_v29 = vsel %vm448_vm3, %v939_v61, %v1534_v32 }
 0x30e   : > { %v982_v35 = vsel %vm446_vm1, %v981_v30, %v1532_v31  ;;  %v941_v46 = vsel %vm450_vm2, %v940_v29, %v1569_v58 }
 0x30f   : > { %1213 = vmatmul.msk.bf16.vlgmr.msra.gmra.mxu1 %vm444_vm0, %v543_v33  ;;  %v983_v37 = vsel %vm448_vm3, %v982_v35, %v1291_v25  ;;  %v942_v48 = vpack.c.bf16 %v941_v46, %v941_v46 }
 0x310   : > { %v984_v39 = vsel %vm450_vm2, %v983_v37, %v1292_v34  ;;  %v889_v34 = vld [vmem:[%s1477_s25] sm:$0xf] }
 0x311   : > { %v985_v41 = vpack.c.bf16 %v984_v39, %v984_v39  ;;  %v1032_v35 = vunpack.c.l.b16 %v889_v34  ;;  %v730_v37 = vld [vmem:[%s1477_s25] sm:$0xf] }
 0x312   : > { %v859_v61 = vunpack.c.l.b16 %v730_v37 }
 0x313   : > { %v990_v42 = vsel %vm494_vm4, %v985_v41, 0  ;;  %v1033_v38 = vpack.c.b16 %v1032_v35, %v1032_v35 }
 0x314   : > { %v669_v31 = vpop.f32.mrf.mxu2  ;;  %999 = vmatpush.bf16.xpose.msrb.mxu0 %v990_v42  ;;  %v860_v39 = vpack.c.b16 %v859_v61, %v859_v61 }
 0x315   : > { %v673_v44 = vsel %vm1629_vm6, %v669_v31, -1e+30 }
 0x316   : > { %v674_v45 = vsel %vm444_vm0, %v673_v44, -inf }
 0x317   : > { %675 = vmax.xlane.f32.xlu0 %v674_v45 }
 0x31b   : > { %1218 = vmatmul.msk.bf16.vlgmr.msrb.gmra.mxu0 %vm494_vm4, %v942_v48 }
 0x31c   : > { %v671_v51 = vpop.f32.mrf.mxu2 }
 0x31f   : > { %1216 = vmatmul.msk.bf16.vlgmr.msrb.gmra.mxu1 %vm494_vm4, %v777_v52 }
 0x38a   : > { %v676_v53 = vpop.xlane.xlu0 %675 }
 0x38b   : > { %v677_v54 = vsub.f32 %v673_v44, %v676_v53 }
 0x38c   : > { %v565_v21 = vpop.f32.mrf.mxu1 }
 0x38d   : > { %v678_v55 = vmul.f32 1.442695, %v677_v54  ;;  %569 = vst.msk [vmem:[#allocation2] sm:$0xff] %vm444_vm0, %v565_v21 }
 0x38f   : > { %1317 = vpow2.f32 %v678_v55 }
 0x394   : > { %v567_v32 = vpop.f32.mrf.mxu1 }
 0x395   : > { %v1318_v56 = vpop.eup %1317 }
 0x396   : > { %v680_v57 = vsel %vm444_vm0, %v1318_v56, 0.0 }
 0x397   : > { %681 = vadd.xlane.f32.xlu0 %v680_v57 }
 0x398   : > { %v1001_v58 = vpop.f32.mrf.mxu0 }
 0x399   : > { %v1005_v59 = vsel %vm1629_vm6, %v1001_v58, -1e+30 }
 0x39a   : > { %v1006_v60 = vsel %vm444_vm0, %v1005_v59, -inf }
 0x39b   : > { %1007 = vmax.xlane.f32.xlu2 %v1006_v60 }
 0x39c   : > { %v828_v62 = vpop.f32.mrf.mxu1 }
 0x39d   : > { %v832_v63 = vsel %vm1629_vm6, %v828_v62, -1e+30 }
 0x39e   : > { %v833_v3 = vsel %vm444_vm0, %v832_v63, -inf }
 0x39f   : > { %834 = vmax.xlane.f32.xlu1 %v833_v3 }
 0x3a0   : > { %v1003_v4 = vpop.f32.mrf.mxu0 }
 0x3a4   : > { %v830_v8 = vpop.f32.mrf.mxu1 }
 0x3ab   : > { %702 = vrot.lane.b32.xlu0 %v701_v5, %s1370_s17 }
 0x40a   : > { %v682_v0 = vpop.xlane.xlu0 %681 }
 0x40b   : > { %1319 = vrcp.f32 %v682_v0  ;;  %v694_v15 = vand.u32 2147483648, %v682_v0  ;;  %v692_v18 = vand.u32 2147483647, %v682_v0  ;;  %vm688_vm13 = vweird.f32 %v682_v0 }
 0x40d   : > { %v695_v22 = vor.u32 1.1754944e-38, %v694_v15  ;;  %vm693_vm15 = vcmp.eq.f32.partialorder %v692_v18, 8.507059e+37 }
 0x40e   : > { %v1008_v9 = vpop.xlane.xlu2 %1007 }
 0x40f   : > { %v1009_v10 = vsub.f32 %v1005_v59, %v1008_v9 }
 0x411   : > { %v1320_v11 = vpop.eup %1319  ;;  %v1010_v12 = vmul.f32 1.442695, %v1009_v10 }
 0x412   : > { %v684_v1 = vmul.f32 %v1320_v11, %v682_v0  ;;  %v835_v13 = vpop.xlane.xlu1 %834  ;;  %vm689_vm12 = vweird.f32 %v1320_v11 }
 0x413   : > { %1321 = vpow2.f32 %v1010_v12  ;;  %v836_v50 = vsub.f32 %v832_v63, %v835_v13  ;;  %vm690_vm14 = vmor %vm688_vm13, %vm689_vm12  ;;  %vm1063_vm12 = vcmask 261120  }
 0x414   : > { %v685_v14 = vsub.f32 1.0, %v684_v1 }
 0x415   : > { %v837_v16 = vmul.f32 1.442695, %v836_v50 }
 0x416   : > { %v686_v17 = vmul.f32 %v1320_v11, %v685_v14 }
 0x417   : > { %1323 = vpow2.f32 %v837_v16  ;;  %v1373_v16 = vmov 32.0  }
 0x418   : > { %v687_v19 = vadd.f32 %v1320_v11, %v686_v17 }
 0x419   : > { %v1322_v20 = vpop.eup %1321 }
 0x41a   : > { %v1012_v23 = vsel %vm444_vm0, %v1322_v20, 0.0  ;;  %v691_v24 = vsel %vm690_vm14, %v1320_v11, %v687_v19 }
 0x41b   : > { %1013 = vadd.xlane.f32.xlu2 %v1012_v23  ;;  %v696_v25 = vsel %vm693_vm15, %v695_v22, %v691_v24 }
 0x41c   : > { %v697_v26 = vmul.f32 %v1318_v56, %v696_v25 }
 0x41d   : > { %v1324_v27 = vpop.eup %1323  ;;  %v703_v36 = vpop.permute.xlu0 %702 }
 0x41e   : > { %v708_v28 = vsel %vm552_vm7, %v703_v36, 0  ;;  %v839_v30 = vsel %vm444_vm0, %v1324_v27, 0.0  ;;  %v698_v33 = vpack.c.bf16 %v697_v26, %v697_v26 }
 0x41f   : > { %717 = vmatpush.bf16.msra.mxu3 %v708_v28  ;;  %840 = vadd.xlane.f32.xlu1 %v839_v30 }
 0x422   : > { %1215 = vmatmul.msk.bf16.vlgmr.msra.gmra.mxu3 %vm444_vm0, %v698_v33 }
 0x433   : > { %1034 = vrot.lane.b32.xlu2 %v1033_v38, %s1371_s29 }
 0x438   : > { %861 = vrot.lane.b32.xlu1 %v860_v39, %s1372_s13  ;;  %v1311_v39 = vld [vmem:[%s1766_s7] ss:$0 sm:$0xff] }
 0x48e   : > { %v1014_v40 = vpop.xlane.xlu2 %1013 }
 0x48f   : > { %1325 = vrcp.f32 %v1014_v40  ;;  %v1026_v46 = vand.u32 2147483648, %v1014_v40  ;;  %v1024_v48 = vand.u32 2147483647, %v1014_v40  ;;  %vm1020_vm2 = vweird.f32 %v1014_v40 }
 0x491   : > { %v1027_v53 = vor.u32 1.1754944e-38, %v1026_v46  ;;  %vm1025_vm4 = vcmp.eq.f32.partialorder %v1024_v48, 8.507059e+37 }
 0x492   : > { %v841_v41 = vpop.xlane.xlu1 %840 }
 0x493   : > { %1327 = vrcp.f32 %v841_v41  ;;  %v853_v56 = vand.u32 2147483648, %v841_v41  ;;  %vm847_vm6 = vweird.f32 %v841_v41  ;;  %v851_v58 = vand.u32 2147483647, %v841_v41 }
 0x494   : > { %1329 = vrcp.f32 %v1373_v16 }
 0x495   : > { %v1326_v29 = vpop.eup %1325  ;;  %v854_v62 = vor.u32 1.1754944e-38, %v853_v56  ;;  %vm852_vm9 = vcmp.eq.f32.partialorder %v851_v58, 8.507059e+37 }
 0x496   : > { %v1016_v42 = vmul.f32 %v1326_v29, %v1014_v40  ;;  %v1035_v43 = vpop.permute.xlu2 %1034  ;;  %vm1021_vm1 = vweird.f32 %v1326_v29 }
 0x497   : > { %v1040_v31 = vsel %vm552_vm7, %v1035_v43, 0  ;;  %vm1022_vm3 = vmor %vm1020_vm2, %vm1021_vm1 }
 0x498   : > { %v1017_v44 = vsub.f32 1.0, %v1016_v42  ;;  %1049 = vmatpush.bf16.msrb.mxu2 %v1040_v31 }
 0x499   : > { %v1328_v45 = vpop.eup %1327 }
 0x49a   : > { %v1018_v47 = vmul.f32 %v1326_v29, %v1017_v44  ;;  %v843_v49 = vmul.f32 %v1328_v45, %v841_v41  ;;  %vm848_vm5 = vweird.f32 %v1328_v45  ;;  %v1330_v17 = vpop.eup %1329  ;;  %v1312_v41 = vld [vmem:[%s1767_s8] ss:$0 sm:$0xff] }
 0x49b   : > { %vm849_vm8 = vmor %vm847_vm6, %vm848_vm5  ;;  %v1068_v18 = vmul.f32 32.0, %v1330_v17 }
 0x49c   : > { %v1019_v51 = vadd.f32 %v1326_v29, %v1018_v47  ;;  %v844_v52 = vsub.f32 1.0, %v843_v49 }
 0x49d   : > { %v1069_v19 = vsub.f32 1.0, %v1068_v18 }
 0x49e   : > { %v845_v54 = vmul.f32 %v1328_v45, %v844_v52  ;;  %v1023_v21 = vsel %vm1022_vm3, %v1326_v29, %v1019_v51 }
 0x49f   : > { %v1028_v55 = vsel %vm1025_vm4, %v1027_v53, %v1023_v21 }
 0x4a0   : > { %v846_v32 = vadd.f32 %v1328_v45, %v845_v54  ;;  %v1029_v57 = vmul.f32 %v1322_v20, %v1028_v55  ;;  %v1070_v20 = vmul.f32 %v1330_v17, %v1069_v19 }
 0x4a2   : > { %v1030_v59 = vpack.c.bf16 %v1029_v57, %v1029_v57  ;;  %v850_v60 = vsel %vm849_vm8, %v1328_v45, %v846_v32  ;;  %v1071_v22 = vadd.f32 %v1330_v17, %v1070_v20 }
 0x4a3   : > { %v855_v3 = vsel %vm852_vm9, %v854_v62, %v850_v60 }
 0x4a4   : > { %1219 = vmatmul.msk.bf16.vlgmr.msrb.gmra.mxu2 %vm444_vm0, %v1030_v59  ;;  %v856_v4 = vmul.f32 %v1324_v27, %v855_v3 }
 0x4a5   : > { %v719_v63 = vpop.f32.mrf.mxu3 }
 0x4a6   : > { %724 = vrot.lane.b32.xlu0 %v719_v63, %s1358_s26  ;;  %v857_v5 = vpack.c.bf16 %v856_v4, %v856_v4 }
 0x4aa   : > { %v862_v6 = vpop.permute.xlu1 %861 }
 0x4ab   : > { %v867_v7 = vsel %vm552_vm7, %v862_v6, 0  ;;  %vm1059_vm7 = vcmask 261312  }
 0x4ac   : > { %876 = vmatpush.bf16.msrb.mxu3 %v867_v7 }
 0x4ad   : > { %v721_v8 = vpop.f32.mrf.mxu3 }
 0x4af   : > { %1217 = vmatmul.msk.bf16.vlgmr.msrb.gmra.mxu3 %vm444_vm0, %v857_v5  ;;  %vm1072_vm0 = vweird.f32 %v1330_v17 }
 0x4b0   : > { %v1073_v23 = vsel %vm1072_vm0, %v1330_v17, %v1071_v22 }
 0x518   : > { %v725_v0 = vpop.permute.xlu0 %724 }
 0x519   : > { %728 = vst.msk [vmem:[#allocation2] sm:$0xff] %vm727_vm10, %v725_v0 }
 0x527   : > { %v1051_v9 = vpop.f32.mrf.mxu2 }
 0x528   : > { %1056 = vrot.lane.b32.xlu1 %v1051_v9, %s1364_s19 }
 0x52f   : > { %v1053_v10 = vpop.f32.mrf.mxu2 }
 0x532   : > { %v878_v11 = vpop.f32.mrf.mxu3 }
 0x533   : > { %883 = vrot.lane.b32.xlu2 %v878_v11, %s1361_s14 }
 0x53a   : > { %v880_v12 = vpop.f32.mrf.mxu3 }
 0x58d   : > { %v884_v1 = vpop.permute.xlu2 %883 }
 0x58e   : > { %887 = vst.msk [vmem:[#allocation2] sm:$0xff] %vm886_vm11, %v884_v1 }
 0x59a   : > { %v1057_v13 = vpop.permute.xlu1 %1056 }
 0x59b   : > { %1060 = vst.msk [vmem:[#allocation2] sm:$0xff] %vm1059_vm7, %v1057_v13 }
 0x5a2   : > { %v1061_v50 = vld [vmem:[#allocation2] sm:$0xff] }
 0x5a3   : > { %v1062_v14 = vadd.f32 %v1061_v50, %v1466_v2 }
 0x5a5   : > { %v1064_v15 = vsel %vm1063_vm12, %v1062_v14, 0.0 }
 0x5a6   : > { %1065 = vadd.xlane.f32.xlu0 %v1064_v15 }
 0x619   : > { %v1066_v24 = vpop.xlane.xlu0 %1065 }
 0x61a   : > { %v1074_v25 = vmul.f32 %v1073_v23, %v1066_v24 }
 0x61c   : > { %v1075_v26 = vsub.f32 %v1062_v14, %v1074_v25 }
 0x61e   : > { %v1076_v27 = vmul.f32 %v1075_v26, %v1075_v26 }
 0x620   : > { %v1077_v36 = vsel %vm1063_vm12, %v1076_v27, 0.0 }
 0x621   : > { %1078 = vadd.xlane.f32.xlu2 %v1077_v36 }
 0x694   : > { %v1079_v2 = vpop.xlane.xlu2 %1078 }
 0x695   : > { %v1080_v28 = vmul.f32 %v1079_v2, %v1073_v23 }
 0x697   : > { %v1081_v30 = vadd.f32 1e-05, %v1080_v28 }
 0x699   : > { %1331 = vrsqrt.f32 %v1081_v30  ;;  %vm1088_vm14 = vweird.f32 %v1081_v30 }
 0x69f   : > { %v1332_v33 = vpop.eup %1331 }
 0x6a0   : > { %v1083_v34 = vmul.f32 %v1332_v33, %v1081_v30  ;;  %vm1089_vm13 = vweird.f32 %v1332_v33 }
 0x6a1   : > { %vm1090_vm15 = vmor %vm1088_vm14, %vm1089_vm13 }
 0x6a2   : > { %v1084_v35 = vmul.f32 %v1332_v33, %v1083_v34 }
 0x6a4   : > { %v1085_v37 = vmul.f32 0.5, %v1084_v35 }
 0x6a6   : > { %v1086_v38 = vsub.f32 1.5, %v1085_v37 }
 0x6a8   : > { %v1087_v61 = vmul.f32 %v1332_v33, %v1086_v38 }
 0x6aa   : > { %v1091_v40 = vsel %vm1090_vm15, %v1332_v33, %v1087_v61 }
 0x6ab   : > { %v1092_v29 = vmul.f32 %v1091_v40, %v1075_v26 }
 0x6ad   : > { %v1097_v42 = vmul.f32 %v1311_v39, %v1092_v29 }
 0x6af   : > { %v1102_v43 = vadd.f32 %v1312_v41, %v1097_v42 }
 0x6b1   : > { %1103 = vst.msk [vmem:[%s378_s28] sm:$0xff] %vm1063_vm12, %v1102_v43 }
 0x6b2 PF: > { %s19_s11 = sadd.s32 1, %s1355_s11   ;;  %s1771_s30 = smov %s1351_s10 }
 0x6b3   : > { %p16_p5 = scmp.ge.s32.totalorder %s19_s11, 4   ;;  %s1772_s10 = smov %s1774_s12 }
 0x6b5   :  { %18 = sbr.rel (!%p16_p5) target bundleno = 2 (0x2), region = 96 }

// kernel: custom-call.4
= control target key start
LH: loop header
LB: loop body
LE: loop exit
PB: predicated region body
PF: predicated region fallthrough
CT: control target
= control target key end

     0   :  { %s6_s0 = inlined_call_operand.vmem [shape: s32[7,2], index: 0, kind: output, shape index: {}]  }

// kernel: tener_forward.16
= control target key start
LH: loop header
LB: loop body
LE: loop exit
PB: predicated region body
PF: predicated region fallthrough
CT: control target
= control target key end

     0   :  { %vm19_vm0 = vcmask 64512   ;;  %v76_v3 = vmov 0.0   ;;  %vm33_vm1 = vcmask 261120   ;;  %s154_s1 = inlined_call_operand.vmem [shape: f32[32,8], index: 1, kind: input, shape index: {}]   ;;  %s155_s3 = inlined_call_operand.vmem [shape: f32[16,8], index: 3, kind: output, shape index: {}]   ;;  %s156_s0 = inlined_call_operand.vmem [shape: f32[16,32], index: 0, kind: input, shape index: {}]   ;;  %s157_s2 = inlined_call_operand.vmem [shape: f32[1,8], index: 2, kind: input, shape index: {}]  }
   0x1   :  { %v29_v0 = vld [vmem:[%s154_s1 + $0x10] sm:$0xff]  ;;  %v30_v1 = vld [vmem:[%s154_s1 + $0x18] sm:$0xff]  ;;  %v27_v2 = vld [vmem:[%s154_s1] sm:$0xff]  ;;  %20 = vst.msk [vmem:[%s155_s3] sm:$0xff] %vm19_vm0, %v76_v3 }
   0x2   :  { %v32_v4 = vpack.c.bf16 %v30_v1, %v29_v0  ;;  %v28_v5 = vld [vmem:[%s154_s1 + $0x8] sm:$0xff]  ;;  %21 = vst.msk [vmem:[%s155_s3 + $0x8] sm:$0xff] %vm19_vm0, %v76_v3  ;;  %v24_v7 = vld [vmem:[%s156_s0] sm:$0xff] }
   0x3   :  { %v31_v6 = vpack.c.bf16 %v28_v5, %v27_v2  ;;  %v25_v8 = vld [vmem:[%s156_s0 + $0x8] sm:$0xff]  ;;  %v75_v14 = vld [vmem:[%s157_s2] ss:$0 sm:$0xff] }
   0x4   :  { %43 = vmatpush.bf16.msra.mxu0 %v32_v4  ;;  %v26_v9 = vpack.c.bf16 %v25_v8, %v24_v7 }
   0x8   :  { %44 = vmatpush.bf16.msra.mxu0 %v31_v6  ;;  %v22_v10 = vld [vmem:[%s155_s3] sm:$0xff] }
   0x9   :  { %v23_v13 = vld [vmem:[%s155_s3 + $0x8] sm:$0xff] }
   0xb   :  { %73 = vmatmul.msk.bf16.vlgmr.msra.gmra.mxu0 %vm33_vm1, %v26_v9 }
  0x88   :  { %v46_v11 = vpop.f32.mrf.mxu0 }
  0x89   :  { %v51_v12 = vadd.f32 %v46_v11, %v22_v10 }
  0x8b   :  { %54 = vst.msk [vmem:[%s155_s3] sm:$0xff] %vm19_vm0, %v51_v12 }
  0x90   :  { %v48_v15 = vpop.f32.mrf.mxu0 }
  0x91   :  { %v52_v16 = vadd.f32 %v48_v15, %v23_v13 }
  0x92   :  { %v59_v17 = vld [vmem:[%s155_s3] sm:$0xff] }
  0x93   :  { %v65_v18 = vadd.f32 %v75_v14, %v59_v17  ;;  %55 = vst.msk [vmem:[%s155_s3 + $0x8] sm:$0xff] %vm19_vm0, %v52_v16 }
  0x95   :  { %67 = vst.msk [vmem:[%s155_s3] sm:$0xff] %vm19_vm0, %v65_v18 }
  0x9a   :  { %v60_v19 = vld [vmem:[%s155_s3 + $0x8] sm:$0xff] }
  0x9b   :  { %v66_v20 = vadd.f32 %v75_v14, %v60_v19 }
  0x9d   :  { %68 = vst.msk [vmem:[%s155_s3 + $0x8] sm:$0xff] %vm19_vm0, %v66_v20 }

// kernel: tener_forward.17
= control target key start
LH: loop header
LB: loop body
LE: loop exit
PB: predicated region body
PF: predicated region fallthrough
CT: control target
= control target key end

     0   :  { %vm24_vm0 = vcmask 1024   ;;  %v389_v15 = vmov 0   ;;  %s515_s24 = smov 1   ;;  %s600_s1 = inlined_call_operand.vmem [shape: s32[8,2,1], index: 1, kind: input, shape index: {}]   ;;  %s601_s4 = inlined_call_operand.vmem [shape: s32[2,1], index: 4, kind: output, shape index: {1}]   ;;  %s602_s2 = inlined_call_operand.vmem [shape: f32[8,128], index: 2, kind: input, shape index: {}]   ;;  %s603_s3 = inlined_call_operand.vmem [shape: s32[8,2,128], index: 3, kind: output, shape index: {0}]   ;;  %s604_s0 = inlined_call_operand.vmem [shape: f32[8,2,128], index: 0, kind: input, shape index: {}]  }
   0x1   :  { %v16_v0 = vld [vmem:[%s600_s1] sm:$0x3]  ;;  %v17_v1 = vld [vmem:[%s600_s1 + $0x2] sm:$0x3]  ;;  %v18_v2 = vld [vmem:[%s600_s1 + $0x4] sm:$0x3] }
   0x2   :  { %v19_v3 = vld [vmem:[%s600_s1 + $0x6] sm:$0x3]  ;;  %v20_v4 = vld [vmem:[%s600_s1 + $0x8] sm:$0x3]  ;;  %v21_v5 = vld [vmem:[%s600_s1 + $0xa] sm:$0x3] }
   0x3   :  { %v22_v6 = vld [vmem:[%s600_s1 + $0xc] sm:$0x3]  ;;  %v23_v7 = vld [vmem:[%s600_s1 + $0xe] sm:$0x3]  ;;  %v25_v8 = vsel %vm24_vm0, %v16_v0, 0  ;;  %v26_v9 = vsel %vm24_vm0, %v17_v1, 0 }
   0x4   :  { %v27_v10 = vsel %vm24_vm0, %v18_v2, 0  ;;  %v28_v11 = vsel %vm24_vm0, %v19_v3, 0  ;;  %v29_v12 = vsel %vm24_vm0, %v20_v4, 0  ;;  %v31_v13 = vsel %vm24_vm0, %v21_v5, 0  ;;  %v466_v14 = vld [vmem:[%s602_s2] sm:$0xff]  ;;  %41 = vst [vmem:[%s603_s3] sm:$0x3] %v389_v15 }
   0x5   :  { %v30_v16 = vadd.s32 %v29_v12, %v25_v8  ;;  %v32_v17 = vadd.s32 %v31_v13, %v26_v9  ;;  %v33_v18 = vsel %vm24_vm0, %v22_v6, 0  ;;  %v35_v19 = vsel %vm24_vm0, %v23_v7, 0  ;;  %42 = vst [vmem:[%s603_s3 + $0x2] sm:$0x3] %v389_v15  ;;  %v49_v20 = vld [vmem:[%s604_s0] sm:$0x3] }
   0x6   :  { %v34_v21 = vadd.s32 %v33_v18, %v27_v10  ;;  %v36_v22 = vadd.s32 %v35_v19, %v28_v11  ;;  %43 = vst [vmem:[%s603_s3 + $0x4] sm:$0x3] %v389_v15  ;;  %v486_v23 = vperm.slane %v466_v14, 6 }
   0x7   :  { %v37_v24 = vadd.s32 %v32_v17, %v30_v16  ;;  %44 = vst [vmem:[%s603_s3 + $0x6] sm:$0x3] %v389_v15 }
   0x8   :  { %v38_v25 = vadd.s32 %v36_v22, %v34_v21  ;;  %45 = vst [vmem:[%s603_s3 + $0x8] sm:$0x3] %v389_v15  ;;  %v51_v26 = vadd.f32 %v486_v23, %v49_v20  }
   0x9   :  { %46 = vst [vmem:[%s603_s3 + $0xa] sm:$0x3] %v389_v15 }
   0xa   :  { %v501_v27 = vadd.s32 %v38_v25, %v37_v24  ;;  %47 = vst [vmem:[%s603_s3 + $0xc] sm:$0x3] %v389_v15  ;;  %v605_v28 = vmov %v51_v26 }
   0xb   :  { %48 = vst [vmem:[%s603_s3 + $0xe] sm:$0x3] %v389_v15 }
   0xc LB: > { %v390_v29 = vmov 2   ;;  %v391_v30 = vmov 0   ;;  %v392_v31 = vmov 4   ;;  %s280_s25 = sshll.u32 %s383_s24, 1  ;;  %v393_v32 = vmov 3   ;;  %s531_s29 = sadd.s32 1, %s383_s24   ;;  %s383_s24 = sphi %s515_s24, %s607_s24   ;;  %v379_v26 = vphi %v51_v26, %v132_v26   ;;  %v375_v28 = vphi %v605_v28, %v606_v28  }
   0xd   : > { %338 = vset.pattern.permute.xlu1 %v390_v29  ;;  %336 = vset.pattern.permute.xlu0 %v391_v30  ;;  %s133_s28 = scalar_lea.vmem %s600_s1, %s280_s25  ;;  %v394_v33 = vmov 1   ;;  %v395_v35 = vmov 5   ;;  %v396_v37 = vmov 6   ;;  %v147_v38 = vstv %s531_s29  ;;  %s281_s30 = sadd.s32 4294967295, %s383_s24 }
   0xe   : > { %80 = vperm.xlu1 %338, %v379_v26   ;;  %65 = vperm.xlu0 %336, %v379_v26   ;;  %v134_v34 = vld [vmem:[%s133_s28] sm:$0x3]  ;;  %v397_v39 = vmov 7   ;;  %vm148_vm2 = vcmp.eq.s32.totalorder %v501_v27, %v147_v38  ;;  %v68_v44 = vperm.slane %v466_v14, 0  ;;  %v74_v45 = vperm.slane %v466_v14, 1  ;;  %s61_s7 = scalar_lea.vmem %s604_s0, %s280_s25  ;;  %s282_s8 = sshll.u32 %s281_s30, 1 }
   0xf   : > { %340 = vset.pattern.permute.xlu2 %v392_v31  ;;  %vm135_vm1 = vcmp.ne.s32.totalorder %v134_v34, 0  ;;  %v149_v40 = vsel %vm148_vm2, 1, %v391_v30  ;;  %v83_v47 = vperm.slane %v466_v14, 2  ;;  %v92_v51 = vperm.slane %v466_v14, 3  ;;  %v62_v11 = vld [vmem:[%s61_s7] sm:$0x3]  ;;  %s144_s11 = scalar_lea.vmem %s603_s3, %s282_s8  ;;  %s607_s24 = smov %s531_s29 }
  0x10   : > { %98 = vperm.xlu2 %340, %v379_v26   ;;  %v136_v36 = vsel %vm135_vm1, 1, %v391_v30  ;;  %v101_v54 = vperm.slane %v466_v14, 4  ;;  %v110_v58 = vperm.slane %v466_v14, 5  ;;  %v127_v62 = vperm.slane %v466_v14, 7  ;;  %p54_p0 = scmp.ge.s32.totalorder %s531_s29, 8  }
  0x11   :  { %v398_v21 = vmov (%p54_p0), 2   ;;  %v399_v22 = vmov (%p54_p0), 4   ;;  %v400_v24 = vmov (%p54_p0), 1   ;;  %v401_v25 = vmov (%p54_p0), 3   ;;  %s405_s0 = smov (%p54_p0), 121   ;;  %s385_s12 = smov (%p54_p0), 0  }
  0x12   :  { %v402_v29 = vmov (%p54_p0), 5  }
  0x16   : > { %339 = vset.pattern.permute.xlu1 %v393_v32  ;;  %337 = vset.pattern.permute.xlu0 %v394_v33 }
  0x17   : > { %89 = vperm.xlu1 %339, %v379_v26   ;;  %71 = vperm.xlu0 %337, %v379_v26  }
  0x18   : > { %341 = vset.pattern.permute.xlu2 %v395_v35 }
  0x19   : > { %107 = vperm.xlu2 %341, %v379_v26  }
  0x1f   : > { %342 = vset.pattern.permute.xlu1 %v396_v37  ;;  %344 = vset.pattern.permute.xlu0 %v391_v30 }
  0x20   : > { %116 = vperm.xlu1 %342, %v379_v26   ;;  %138 = vperm.xlu0 %344, %v136_v36  }
  0x21   : > { %343 = vset.pattern.permute.xlu2 %v397_v39 }
  0x22   : > { %124 = vperm.xlu2 %343, %v379_v26  }
  0x28   : > { %345 = vset.pattern.permute.xlu1 %v391_v30  ;;  %346 = vset.pattern.permute.xlu0 (%p54_p0), %v389_v15 }
  0x29   : > { %151 = vperm.xlu1 %345, %v149_v40  }
  0x2a   :  { %350 = vset.pattern.permute.xlu2 (%p54_p0), %v399_v22 }
  0x31   :  { %348 = vset.pattern.permute.xlu1 (%p54_p0), %v398_v21 }
  0x6a   : > { %v99_v41 = vpop.permute.xlu2 %98 }
  0x6b   : > { %v102_v61 = vadd.f32 %v101_v54, %v99_v41 }
  0x73   : > { %v108_v46 = vpop.permute.xlu2 %107 }
  0x74   : > { %v111_v2 = vadd.f32 %v110_v58, %v108_v46 }
  0x7c   : > { %v125_v1 = vpop.permute.xlu2 %124 }
  0x7d   : > { %v128_v7 = vadd.f32 %v127_v62, %v125_v1 }
  0x80   : > { %v81_v42 = vpop.permute.xlu1 %80  ;;  %v66_v43 = vpop.permute.xlu0 %65 }
  0x81   : > { %v69_v50 = vadd.f32 %v68_v44, %v66_v43  ;;  %v84_v53 = vadd.f32 %v83_v47, %v81_v42 }
  0x89   : > { %v90_v48 = vpop.permute.xlu1 %89  ;;  %v72_v49 = vpop.permute.xlu0 %71 }
  0x8a   : > { %v75_v52 = vadd.f32 %v74_v45, %v72_v49  ;;  %v93_v57 = vadd.f32 %v92_v51, %v90_v48 }
  0x8c   : > { %vm76_vm3 = vcmp.gt.f32.partialorder %v75_v52, %v69_v50 }
  0x8d   : > { %v77_v55 = vsel %vm76_vm3, %v75_v52, %v69_v50  ;;  %v78_v56 = vsel %vm76_vm3, 1, %v391_v30 }
  0x8e   : > { %vm85_vm4 = vcmp.gt.f32.partialorder %v84_v53, %v77_v55 }
  0x8f   : > { %v86_v59 = vsel %vm85_vm4, %v84_v53, %v77_v55  ;;  %v87_v60 = vsel %vm85_vm4, 2, %v78_v56 }
  0x90   : > { %vm94_vm5 = vcmp.gt.f32.partialorder %v93_v57, %v86_v59 }
  0x91   : > { %v95_v63 = vsel %vm94_vm5, %v93_v57, %v86_v59  ;;  %v96_v0 = vsel %vm94_vm5, 3, %v87_v60 }
  0x92   : > { %vm103_vm6 = vcmp.gt.f32.partialorder %v102_v61, %v95_v63  ;;  %v117_v3 = vpop.permute.xlu1 %116  ;;  %v139_v8 = vpop.permute.xlu0 %138 }
  0x93   : > { %v104_v4 = vsel %vm103_vm6, %v102_v61, %v95_v63  ;;  %v105_v5 = vsel %vm103_vm6, 4, %v96_v0  ;;  %v119_v6 = vadd.f32 %v117_v3, %v486_v23  ;;  %vm140_vm9 = vcmp.eq.s32.totalorder %v139_v8, 1 }
  0x94   : > { %vm112_vm7 = vcmp.gt.f32.partialorder %v111_v2, %v104_v4 }
  0x95   : > { %v114_v9 = vsel %vm112_vm7, 5, %v105_v5  ;;  %v113_v10 = vsel %vm112_vm7, %v111_v2, %v104_v4 }
  0x96   : > { %vm120_vm8 = vcmp.gt.f32.partialorder %v119_v6, %v113_v10 }
  0x97   : > { %v121_v12 = vsel %vm120_vm8, %v119_v6, %v113_v10  ;;  %v122_v13 = vsel %vm120_vm8, 6, %v114_v9 }
  0x98   : > { %vm129_vm10 = vcmp.gt.f32.partialorder %v128_v7, %v121_v12 }
  0x99   : > { %v130_v16 = vsel %vm129_vm10, %v128_v7, %v121_v12  ;;  %v131_v17 = vsel %vm129_vm10, 7, %v122_v13 }
  0x9a   : > { %v132_v26 = vadd.f32 %v130_v16, %v62_v11   ;;  %v141_v18 = vsel %vm140_vm9, %v131_v17, 0  ;;  %56 = sbr.rel (!%p54_p0) target bundleno = 12 (0xc), region = 58 }
  0x9b   : > { %145 = vst [vmem:[%s144_s11] sm:$0x3] %v141_v18  ;;  %v152_v19 = vpop.permute.xlu1 %151 }
  0x9c   : > { %vm153_vm11 = vcmp.eq.s32.totalorder %v152_v19, 1 }
  0x9d   : > { %v154_v20 = vsel %vm153_vm11, %v132_v26, %v375_v28   ;;  %v403_v26 = vmov (%p54_p0), 7  }
  0x9e   : > { %v606_v28 = vmov %v154_v20  ;;  %157 = vperm.xlu0 (%p54_p0), %346, %v154_v20   ;;  %172 = vperm.xlu1 (%p54_p0), %348, %v154_v20  }
  0x9f   :  { %190 = vperm.xlu2 %350, %v154_v20   ;;  %v404_v28 = vmov 6  }
  0xa6   :  { %347 = vset.pattern.permute.xlu0 %v400_v24  ;;  %349 = vset.pattern.permute.xlu1 %v401_v25 }
  0xa7   :  { %163 = vperm.xlu0 %347, %v154_v20   ;;  %181 = vperm.xlu1 %349, %v154_v20  }
  0xa8   :  { %351 = vset.pattern.permute.xlu2 %v402_v29 }
  0xa9   :  { %199 = vperm.xlu2 %351, %v154_v20  }
  0xaf   :  { %354 = vset.pattern.permute.xlu0 %v403_v26  ;;  %352 = vset.pattern.permute.xlu1 %v404_v28 }
  0xb0   :  { %208 = vperm.xlu1 %352, %v154_v20  }
  0xb1   :  { %353 = vset.pattern.permute.xlu2 %v403_v26 }
  0xb2   :  { %216 = vperm.xlu2 %353, %v154_v20  }
  0xf9   :  { %v191_v30 = vpop.permute.xlu2 %190 }
 0x103   :  { %v200_v33 = vpop.permute.xlu2 %199 }
 0x10c   :  { %v217_v48 = vpop.permute.xlu2 %216 }
 0x110   :  { %v158_v31 = vpop.permute.xlu0 %157  ;;  %v173_v32 = vpop.permute.xlu1 %172 }
 0x111   :  { %v161_v35 = vadd.f32 %v158_v31, %v68_v44  ;;  %v176_v38 = vadd.f32 %v173_v32, %v83_v47  ;;  %v194_v44 = vadd.f32 %v191_v30, %v101_v54  ;;  %v203_v47 = vadd.f32 %v200_v33, %v110_v58 }
 0x119   :  { %v164_v34 = vpop.permute.xlu0 %163  ;;  %v182_v37 = vpop.permute.xlu1 %181 }
 0x11a   :  { %v167_v36 = vadd.f32 %v164_v34, %v74_v45  ;;  %v185_v41 = vadd.f32 %v182_v37, %v92_v51  ;;  %v220_v51 = vadd.f32 %v217_v48, %v127_v62 }
 0x11c   :  { %vm168_vm12 = vcmp.gt.f32.partialorder %v167_v36, %v161_v35 }
 0x11d   :  { %v169_v39 = vsel %vm168_vm12, %v167_v36, %v161_v35  ;;  %v170_v40 = vsel %vm168_vm12, 1, %v389_v15 }
 0x11e   :  { %vm177_vm13 = vcmp.gt.f32.partialorder %v176_v38, %v169_v39 }
 0x11f   :  { %v178_v42 = vsel %vm177_vm13, %v176_v38, %v169_v39  ;;  %v179_v43 = vsel %vm177_vm13, 2, %v170_v40 }
 0x120   :  { %vm186_vm14 = vcmp.gt.f32.partialorder %v185_v41, %v178_v42 }
 0x121   :  { %v187_v46 = vsel %vm186_vm14, %v185_v41, %v178_v42  ;;  %v188_v45 = vsel %vm186_vm14, 3, %v179_v43 }
 0x122   :  { %vm195_vm15 = vcmp.gt.f32.partialorder %v194_v44, %v187_v46  ;;  %v209_v15 = vpop.permute.xlu1 %208 }
 0x123   :  { %v196_v49 = vsel %vm195_vm15, %v194_v44, %v187_v46  ;;  %v197_v50 = vsel %vm195_vm15, 4, %v188_v45  ;;  %v211_v52 = vadd.f32 %v209_v15, %v486_v23 }
 0x124   :  { %vm204_vm1 = vcmp.gt.f32.partialorder %v203_v47, %v196_v49 }
 0x125   :  { %v206_v53 = vsel %vm204_vm1, 5, %v197_v50  ;;  %v205_v55 = vsel %vm204_vm1, %v203_v47, %v196_v49 }
 0x126   :  { %vm212_vm2 = vcmp.gt.f32.partialorder %v211_v52, %v205_v55 }
 0x127   :  { %v213_v54 = vsel %vm212_vm2, %v211_v52, %v205_v55  ;;  %v214_v56 = vsel %vm212_vm2, 6, %v206_v53 }
 0x128   :  { %vm221_vm3 = vcmp.gt.f32.partialorder %v220_v51, %v213_v54 }
 0x129   :  { %v222_v57 = vsel %vm221_vm3, 7, %v214_v56 }
 0x12a   :  { %223 = vrot.lane.b32.xlu0 %v222_v57, %s405_s0 }
 0x19c   :  { %v224_v59 = vpop.permute.xlu0 %223 }
 0x19d   :  { %225 = vst.msk [vmem:[%s601_s4] sm:$0x3] %vm24_vm0, %v224_v59 }
 0x19e LB: > { %v284_v14 = vadd.s32 4294967295, %v501_v27  ;;  %v406_v23 = vmov 0   ;;  %v236_v58 = vstv %s387_s12  ;;  %v407_v61 = vmov 7   ;;  %s283_s13 = sshll.u32 %s387_s12, 1  ;;  %s231_s12 = sadd.s32 1, %s387_s12   ;;  %s387_s12 = sphi %s385_s12, %s231_s12  }
 0x19f   : > { %355 = vset.pattern.permute.xlu0 %v406_v23  ;;  %s233_s4 = scalar_lea.vmem %s603_s3, %s283_s13  ;;  %p228_p1 = scmp.ge.s32.totalorder %s231_s12, 8  }
 0x1a0   : > { %vm237_vm4 = vcmp.eq.s32.totalorder %v284_v14, %v236_v58  ;;  %v234_v63 = vld [vmem:[%s233_s4] sm:$0x3] }
 0x1a1   : > { %v238_v60 = vsel %vm237_vm4, 1, %v406_v23 }
 0x1a2   : > { %240 = vperm.xlu0 %355, %v238_v60  }
 0x1aa   : > { %356 = vset.pattern.permute.xlu0 %v407_v61 }
 0x1ab   : > { %244 = vperm.xlu0 %356, %v222_v57  }
 0x214   : > { %v241_v62 = vpop.permute.xlu0 %240 }
 0x215   : > { %vm242_vm0 = vcmp.eq.s32.totalorder %v241_v62, 1 }
 0x21b   :  { %230 = sbr.rel (!%p228_p1) target bundleno = 414 (0x19e), region = 69 }
 0x21d   : > { %v245_v0 = vpop.permute.xlu0 %244 }
 0x21e   : > { %v246_v1 = vsel %vm242_vm0, %v245_v0, %v234_v63 }
 0x21f   : > { %247 = vst [vmem:[%s233_s4] sm:$0x3] %v246_v1 }

</bundles_post_ra>
